<compile_context>
chip_gen: v5e
topology: v5e:2x2
jax: 0.10.0
libtpu: 0.0.40
codegen_flags: <defaults>
</compile_context>

<pallas_src>
import functools
import math

import jax
import jax.numpy as jnp
from jax.experimental import pallas as pl
from jax.experimental.pallas import tpu as pltpu

LEAKY_SLOPE = 0.1
LN_EPS = 1e-5
FILTER_SIZES = (3, 5, 7)
MAX_PAD = (max(FILTER_SIZES) - 1) // 2      # 3
KTAPS = 2 * MAX_PAD + 1                     # 7: every filter zero-padded to 7 taps
LANE = 128


def _leaky(x, slope=LEAKY_SLOPE):
    return jnp.where(x > 0, x, slope * x)


def _round_up(x, m):
    return ((x + m - 1) // m) * m


def _layer_norm(x, gamma, beta, eps=LN_EPS):
    # Plain (unpadded) LayerNorm used by the pure-JAX reference.
    mean = jnp.mean(x, axis=-1, keepdims=True)
    var = jnp.mean(jnp.square(x - mean), axis=-1, keepdims=True)
    return (x - mean) * jax.lax.rsqrt(var + eps) * gamma + beta


def _masked_layer_norm(x, gamma, beta, lane_mask, d_real):
    # LayerNorm over the first d_real lanes only; lanes >= d_real hold zero padding
    # (gamma/beta are zero-padded there, so padded lanes stay exactly 0 on output).
    inv_d = 1.0 / d_real
    mean = jnp.sum(x, axis=-1, keepdims=True) * inv_d
    diff = (x - mean) * lane_mask
    var = jnp.sum(diff * diff, axis=-1, keepdims=True) * inv_d
    return diff * jax.lax.rsqrt(var + LN_EPS) * gamma + beta


# --------------------------------------------------------------------------- #
# Fused kernel: Conv2d(fs,D)+LeakyReLU -> TransformerEncoderLayer -> LeakyReLU
#               -> gating with conved -> running max-pool over L.
# Grid: (branch g in {fs=3,5,7}, L-block lb).  All activations are lane-padded
# to Dp=128; rows are ordered l-major / b-minor, i.e. row = l*B + b.
# --------------------------------------------------------------------------- #
def _tcnn_fused_kernel(x_ref, cw_ref, cb_ref,
                       wq, bq, wk, bk, wv, bv, wo, bo,
                       g1, be1, w1, b1, w2, b2, g2, be2, pmask,
                       o_ref, *, TL, B, D, Dp, L, LP, nhead):
    lb = pl.program_id(1)
    rows = TL * B
    hd = D // nhead
    scale = 1.0 / math.sqrt(hd)

    # ---- Conv(kernel=(fs, D)) + LeakyReLU: KTAPS shifted (rows, Dp)x(Dp, Dp) matmuls.
    #      Unused taps of the smaller filters are zero-padded weights (uniform kernel body).
    acc = jnp.zeros((rows, Dp), jnp.float32)
    for t in range(KTAPS):                                        # static unroll
        win = x_ref[pl.ds((lb * TL + t) * B, rows), :]            # (rows, Dp)
        acc = acc + jnp.dot(win, cw_ref[0, t],
                            preferred_element_type=jnp.float32)
    conved = _leaky(acc + cb_ref[0])                              # padded lanes stay 0

    # ---- QKV projections on all TL*B rows at once; attention scale folded into q.
    q = (jnp.dot(conved, wq[...], preferred_element_type=jnp.float32) + bq[...]) * scale
    k = jnp.dot(conved, wk[...], preferred_element_type=jnp.float32) + bk[...]
    v = jnp.dot(conved, wv[...], preferred_element_type=jnp.float32) + bv[...]

    # ---- Multi-head attention across the batch axis B, independently per L slot.
    #      Heads stay expanded along the lane axis via the block-diagonal `pmask`
    #      matmul (per-head scores replicated across that head's lanes), so no
    #      lane-dim reshapes are needed and one batched MXU matmul covers all
    #      (l, i, j) score rows.
    q3 = q.reshape(TL, B, Dp)
    k3 = k.reshape(TL, B, Dp)
    v3 = v.reshape(TL, B, Dp)
    prod = q3[:, :, None, :] * k3[:, None, :, :]                  # (TL, B, B, Dp)
    s = jnp.dot(prod.reshape(TL * B * B, Dp), pmask[...],
                preferred_element_type=jnp.float32).reshape(TL, B, B, Dp)
    m = jnp.max(s, axis=2, keepdims=True)
    e = jnp.exp(s - m)
    denom = jnp.sum(e, axis=2, keepdims=True)
    attn = e * pl.reciprocal(denom, approx=True)                  # EUP slot, VPU-free
    ctx = jnp.sum(attn * v3[:, None, :, :], axis=2)               # (TL, B, Dp)

    attn_out = (jnp.dot(ctx.reshape(rows, Dp), wo[...],
                        preferred_element_type=jnp.float32) + bo[...])

    # ---- Post-norm encoder layer (ReLU FFN); LayerNorm masked to the real D lanes.
    lane_mask = (jax.lax.broadcasted_iota(jnp.int32, (1, Dp), 1) < D).astype(jnp.float32)
    src = _masked_layer_norm(conved + attn_out, g1[...], be1[...], lane_mask, D)
    h = jnp.maximum(jnp.dot(src, w1[...], preferred_element_type=jnp.float32) + b1[...], 0.0)
    ff = jnp.dot(h, w2[...], preferred_element_type=jnp.float32) + b2[...]
    src = _masked_layer_norm(src + ff, g2[...], be2[...], lane_mask, D)

    # ---- LeakyReLU gate * conved, then max over the TL positions of this block.
    contrib = (_leaky(src) * conved).reshape(TL, B, Dp)
    if LP != L:  # only traced when L is not a multiple of TL (tail positions exist)
        pos = lb * TL + jax.lax.broadcasted_iota(jnp.int32, (TL, B, Dp), 0)
        contrib = jnp.where(pos < L, contrib, -jnp.inf)
    block_max = jnp.max(contrib, axis=0)                          # (B, Dp)

    @pl.when(lb == 0)
    def _():
        o_ref[0] = block_max          # init folded into first block: no -inf fill pass

    @pl.when(lb > 0)
    def _():
        o_ref[0] = jnp.maximum(o_ref[0], block_max)


def _prep_padded_params(params, *, D, Dp, ff, ffp, nhead):
    """Zero-pad feature dims to lane multiples; stack per-branch conv weights (KTAPS taps)."""
    def pad_to(x, shape):
        return jnp.pad(x, [(0, t - s) for s, t in zip(x.shape, shape)])

    n_br = len(FILTER_SIZES)
    cw = jnp.zeros((n_br, KTAPS, Dp, Dp), jnp.float32)
    cb = jnp.zeros((n_br, 1, Dp), jnp.float32)
    for g, fs in enumerate(FILTER_SIZES):
        off = MAX_PAD - (fs - 1) // 2
        cw = cw.at[g, off:off + fs].set(pad_to(params[f"conv{fs}_w"], (fs, Dp, Dp)))
        cb = cb.at[g].set(pad_to(params[f"conv{fs}_b"], (1, Dp)))

    tr = (
        pad_to(params["wqT"], (Dp, Dp)), pad_to(params["bq"], (1, Dp)),
        pad_to(params["wkT"], (Dp, Dp)), pad_to(params["bk"], (1, Dp)),
        pad_to(params["wvT"], (Dp, Dp)), pad_to(params["bv"], (1, Dp)),
        pad_to(params["woT"], (Dp, Dp)), pad_to(params["bo"], (1, Dp)),
        pad_to(params["g1"], (1, Dp)), pad_to(params["beta1"], (1, Dp)),
        pad_to(params["w1T"], (Dp, ffp)), pad_to(params["b1"], (1, ffp)),
        pad_to(params["w2T"], (ffp, Dp)), pad_to(params["b2"], (1, Dp)),
        pad_to(params["g2"], (1, Dp)), pad_to(params["beta2"], (1, Dp)),
    )
    # Block-diagonal "same head" mask, zero outside the real D lanes.
    hd = D // nhead
    ids = jnp.arange(Dp) // hd
    real = jnp.arange(Dp) < D
    pmask = ((ids[:, None] == ids[None, :]) & real[:, None] & real[None, :]).astype(jnp.float32)
    return cw, cb, tr + (pmask,)


def tcnn_fused(x_flat, cw, cb, tr_weights, *, D, Dp, L, LP, TL, B, nhead):
    n_br = len(FILTER_SIZES)
    l_blocks = LP // TL
    rows_tot = (LP + 2 * MAX_PAD) * B

    in_specs = [
        # Padded embedded text, flattened to (rows, Dp); resident across the whole grid.
        pl.BlockSpec((rows_tot, Dp), lambda g, l: (0, 0)),
        # Per-branch conv weights / bias (only the active branch is DMA'd per step).
        pl.BlockSpec((1, KTAPS, Dp, Dp), lambda g, l: (g, 0, 0, 0)),
        pl.BlockSpec((1, 1, Dp), lambda g, l: (g, 0, 0)),
    ]
    # Transformer weights: shared by all branches, constant index map -> fetched once.
    for w in tr_weights:
        in_specs.append(pl.BlockSpec(w.shape, lambda g, l, n=w.ndim: (0,) * n))

    kern = functools.partial(_tcnn_fused_kernel, TL=TL, B=B, D=D, Dp=Dp,
                             L=L, LP=LP, nhead=nhead)

    # Explicit VMEM budget (v7x only has 64 MiB physical): double-buffered operands + slack.
    operand_bytes = sum(int(a.size) * a.dtype.itemsize
                        for a in (x_flat, cw, cb, *tr_weights))
    vmem_budget = int(min(2 * operand_bytes + (16 << 20), 56 << 20))

    return pl.pallas_call(
        kern,
        out_shape=jax.ShapeDtypeStruct((n_br, B, Dp), jnp.float32),
        grid=(n_br, l_blocks),
        in_specs=in_specs,
        out_specs=pl.BlockSpec((1, B, Dp), lambda g, l: (g, 0, 0)),
        compiler_params=pltpu.CompilerParams(
            dimension_semantics=("parallel", "arbitrary"),   # branches -> megacore; L carries max
            vmem_limit_bytes=vmem_budget),
    )(x_flat, cw, cb, *tr_weights)


# --------------------------------------------------------------------------- #
# Forward (glue) + deterministic parameter init
# --------------------------------------------------------------------------- #
def tcnn_l_forward(text, text_length, params, *, nhead):
    del text_length                                   # unused, as in the PyTorch forward
    B, L = text.shape
    D = params["embed"].shape[1]
    Dp = _round_up(D, LANE)
    ff = params["w1T"].shape[1]
    ffp = _round_up(ff, LANE)

    # Lane-pad the embedding table once and gather directly in (L, B, Dp) order so the
    # fused kernel walks L without any HBM transpose of activations.
    embed_p = jnp.pad(params["embed"], ((0, 0), (0, Dp - D)))
    emb = jnp.take(embed_p, text.T, axis=0)           # (L, B, Dp)

    TL = max(1, min(L, 256 // max(B, 1)))             # aim for >=256 MXU rows per grid step
    LP = _round_up(L, TL)
    emb_pad = jnp.pad(emb, ((MAX_PAD, MAX_PAD + (LP - L)), (0, 0), (0, 0)))
    x_flat = emb_pad.reshape((LP + 2 * MAX_PAD) * B, Dp)   # row = l*B + b

    cw, cb, tr_weights = _prep_padded_params(params, D=D, Dp=Dp, ff=ff, ffp=ffp, nhead=nhead)
    pooled = tcnn_fused(x_flat, cw, cb, tr_weights, D=D, Dp=Dp, L=L, LP=LP, TL=TL,
                        B=B, nhead=nhead)             # (3, B, Dp)

    # Final Linear(3*D -> 2): a 2-lane-wide output; cheaper as plain XLA than a pallas_call.
    cat = jnp.transpose(pooled[:, :, :D], (1, 0, 2)).reshape(B, len(FILTER_SIZES) * D)
    return cat @ params["fcT"] + params["fc_b"][0]


def init_params(key, *, vocab, D, nhead, ff, n_class=2):
    del nhead
    kit = iter(jax.random.split(key, 32))
    p = {"embed": jax.random.normal(next(kit), (vocab, D), jnp.float32)}
    for fs in FILTER_SIZES:
        p[f"conv{fs}_w"] = (jax.random.normal(next(kit), (fs, D, D), jnp.float32)
                            / math.sqrt(fs * D))
        p[f"conv{fs}_b"] = 0.1 * jax.random.normal(next(kit), (1, D), jnp.float32)
    # One TransformerEncoder layer shared by all 3 branches ([TransformerEncoder]*3).
    for name in ("wqT", "wkT", "wvT", "woT"):
        p[name] = jax.random.normal(next(kit), (D, D), jnp.float32) / math.sqrt(D)
    for name in ("bq", "bk", "bv", "bo", "b2"):
        p[name] = 0.02 * jax.random.normal(next(kit), (1, D), jnp.float32)
    p["w1T"] = jax.random.normal(next(kit), (D, ff), jnp.float32) / math.sqrt(D)
    p["b1"] = 0.02 * jax.random.normal(next(kit), (1, ff), jnp.float32)
    p["w2T"] = jax.random.normal(next(kit), (ff, D), jnp.float32) / math.sqrt(ff)
    p["g1"] = jnp.ones((1, D), jnp.float32)
    p["beta1"] = jnp.zeros((1, D), jnp.float32)
    p["g2"] = jnp.ones((1, D), jnp.float32)
    p["beta2"] = jnp.zeros((1, D), jnp.float32)
    p["fcT"] = (jax.random.normal(next(kit), (len(FILTER_SIZES) * D, n_class), jnp.float32)
                / math.sqrt(len(FILTER_SIZES) * D))
    p["fc_b"] = 0.02 * jax.random.normal(next(kit), (1, n_class), jnp.float32)
    return p


# --------------------------------------------------------------------------- #
# Pure-JAX reference (mirrors the PyTorch forward, incl. seq-first attention)
# --------------------------------------------------------------------------- #
def _reference_transformer(x, p, nhead):
    S, Lb, D = x.shape
    hd = D // nhead
    q = jnp.einsum("sld,de->sle", x, p["wqT"]) + p["bq"][0]
    k = jnp.einsum("sld,de->sle", x, p["wkT"]) + p["bk"][0]
    v = jnp.einsum("sld,de->sle", x, p["wvT"]) + p["bv"][0]
    qh = q.reshape(S, Lb, nhead, hd)
    kh = k.reshape(S, Lb, nhead, hd)
    vh = v.reshape(S, Lb, nhead, hd)
    scores = jnp.einsum("slhd,tlhd->lhst", qh, kh) / math.sqrt(hd)
    attn = jax.nn.softmax(scores, axis=-1)
    ctx = jnp.einsum("lhst,tlhd->slhd", attn, vh).reshape(S, Lb, D)
    attn_out = jnp.einsum("sld,de->sle", ctx, p["woT"]) + p["bo"][0]
    src = _layer_norm(x + attn_out, p["g1"][0], p["beta1"][0])
    h = jax.nn.relu(jnp.einsum("sld,df->slf", src, p["w1T"]) + p["b1"][0])
    ff = jnp.einsum("slf,fd->sld", h, p["w2T"]) + p["b2"][0]
    return _layer_norm(src + ff, p["g2"][0], p["beta2"][0])


def reference_forward(text, params, *, nhead):
    emb = jnp.take(params["embed"], text, axis=0)
    B, L, D = emb.shape
    pooled = []
    for fs in FILTER_SIZES:
        pad = (fs - 1) // 2
        xp = jnp.pad(emb, ((0, 0), (pad, pad), (0, 0)))
        conv = sum(jnp.einsum("bld,dc->blc", xp[:, k:k + L, :], params[f"conv{fs}_w"][k])
                   for k in range(fs)) + params[f"conv{fs}_b"][0]
        conved = _leaky(conv)
        wm = _leaky(_reference_transformer(conved, params, nhead))
        pooled.append(jnp.max(wm * conved, axis=1))
    cat = jnp.concatenate(pooled, axis=1)
    return cat @ params["fcT"] + params["fc_b"][0]


if __name__ == "__main__":
    B, L, VOCAB, D, NHEAD, FF = 2, 8, 50, 40, 10, 2048   # D % NHEAD == 0 (nhead=10)
    key = jax.random.PRNGKey(0)
    pkey, tkey = jax.random.split(key)
    params = init_params(pkey, vocab=VOCAB, D=D, nhead=NHEAD, ff=FF)
    text = jax.random.randint(tkey, (B, L), 0, VOCAB, dtype=jnp.int32)
    text_length = jnp.full((B,), L, dtype=jnp.int32)

    fwd = jax.jit(functools.partial(tcnn_l_forward, nhead=NHEAD))
    pred = jax.block_until_ready(fwd(text, text_length, params))

    ref = reference_forward(text, params, nhead=NHEAD)
    assert pred.shape == (B, 2), pred.shape
    # 5e-3 tolerance: the only deviation from pure-f32 math is the EUP approximate
    # reciprocal used for the softmax denominator inside the kernel.
    assert jnp.allclose(pred, ref, rtol=5e-3, atol=5e-3), (pred, ref)
    print("KERNEL_OK")
</pallas_src>

<mosaic_0001>
module attributes {stable_mosaic.version = 11 : i64} {
  func.func @_tcnn_fused_kernel(%arg0: i32, %arg1: i32, %arg2: memref<28x128xf32, #tpu.memory_space<vmem>>, %arg3: memref<1x7x128x128xf32, #tpu.memory_space<vmem>>, %arg4: memref<1x1x128xf32, #tpu.memory_space<vmem>>, %arg5: memref<128x128xf32, #tpu.memory_space<vmem>>, %arg6: memref<1x128xf32, #tpu.memory_space<vmem>>, %arg7: memref<128x128xf32, #tpu.memory_space<vmem>>, %arg8: memref<1x128xf32, #tpu.memory_space<vmem>>, %arg9: memref<128x128xf32, #tpu.memory_space<vmem>>, %arg10: memref<1x128xf32, #tpu.memory_space<vmem>>, %arg11: memref<128x128xf32, #tpu.memory_space<vmem>>, %arg12: memref<1x128xf32, #tpu.memory_space<vmem>>, %arg13: memref<1x128xf32, #tpu.memory_space<vmem>>, %arg14: memref<1x128xf32, #tpu.memory_space<vmem>>, %arg15: memref<128x2048xf32, #tpu.memory_space<vmem>>, %arg16: memref<1x2048xf32, #tpu.memory_space<vmem>>, %arg17: memref<2048x128xf32, #tpu.memory_space<vmem>>, %arg18: memref<1x128xf32, #tpu.memory_space<vmem>>, %arg19: memref<1x128xf32, #tpu.memory_space<vmem>>, %arg20: memref<1x128xf32, #tpu.memory_space<vmem>>, %arg21: memref<128x128xf32, #tpu.memory_space<vmem>>, %arg22: memref<1x2x128xf32, #tpu.memory_space<vmem>>) attributes {dimension_semantics = [#tpu.dimension_semantics<parallel>, #tpu.dimension_semantics<arbitrary>], iteration_bounds = array<i64: 3, 1>, scalar_prefetch = 0 : i64, scratch_operands = 0 : i64, tpu.core_type = #tpu.core_type<tc>, window_params = [{pipeline_mode = #tpu.pipeline_mode<synchronous>, transform_indices = @transform_0, window_bounds = array<i64: 28, 128>}, {transform_indices = @transform_1, window_bounds = array<i64: 1, 7, 128, 128>}, {transform_indices = @transform_2, window_bounds = array<i64: 1, 1, 128>}, {pipeline_mode = #tpu.pipeline_mode<synchronous>, transform_indices = @transform_3, window_bounds = array<i64: 128, 128>}, {pipeline_mode = #tpu.pipeline_mode<synchronous>, transform_indices = @transform_4, window_bounds = array<i64: 1, 128>}, {pipeline_mode = #tpu.pipeline_mode<synchronous>, transform_indices = @transform_5, window_bounds = array<i64: 128, 128>}, {pipeline_mode = #tpu.pipeline_mode<synchronous>, transform_indices = @transform_6, window_bounds = array<i64: 1, 128>}, {pipeline_mode = #tpu.pipeline_mode<synchronous>, transform_indices = @transform_7, window_bounds = array<i64: 128, 128>}, {pipeline_mode = #tpu.pipeline_mode<synchronous>, transform_indices = @transform_8, window_bounds = array<i64: 1, 128>}, {pipeline_mode = #tpu.pipeline_mode<synchronous>, transform_indices = @transform_9, window_bounds = array<i64: 128, 128>}, {pipeline_mode = #tpu.pipeline_mode<synchronous>, transform_indices = @transform_10, window_bounds = array<i64: 1, 128>}, {pipeline_mode = #tpu.pipeline_mode<synchronous>, transform_indices = @transform_11, window_bounds = array<i64: 1, 128>}, {pipeline_mode = #tpu.pipeline_mode<synchronous>, transform_indices = @transform_12, window_bounds = array<i64: 1, 128>}, {pipeline_mode = #tpu.pipeline_mode<synchronous>, transform_indices = @transform_13, window_bounds = array<i64: 128, 2048>}, {pipeline_mode = #tpu.pipeline_mode<synchronous>, transform_indices = @transform_14, window_bounds = array<i64: 1, 2048>}, {pipeline_mode = #tpu.pipeline_mode<synchronous>, transform_indices = @transform_15, window_bounds = array<i64: 2048, 128>}, {pipeline_mode = #tpu.pipeline_mode<synchronous>, transform_indices = @transform_16, window_bounds = array<i64: 1, 128>}, {pipeline_mode = #tpu.pipeline_mode<synchronous>, transform_indices = @transform_17, window_bounds = array<i64: 1, 128>}, {pipeline_mode = #tpu.pipeline_mode<synchronous>, transform_indices = @transform_18, window_bounds = array<i64: 1, 128>}, {pipeline_mode = #tpu.pipeline_mode<synchronous>, transform_indices = @transform_19, window_bounds = array<i64: 128, 128>}, {transform_indices = @transform_20, window_bounds = array<i64: 1, 2, 128>}]} {
    %cst = arith.constant 0.000000e+00 : f32
    %0 = vector.broadcast %cst : f32 to vector<16x128xf32>
    %c8_i32 = arith.constant 8 : i32
    %1 = arith.muli %arg1, %c8_i32 : i32
    %c0_i32 = arith.constant 0 : i32
    %2 = arith.addi %1, %c0_i32 : i32
    %c2_i32 = arith.constant 2 : i32
    %3 = arith.muli %2, %c2_i32 : i32
    %4 = arith.index_cast %3 : i32 to index
    %c0 = arith.constant 0 : index
    %5 = vector.load %arg2[%4, %c0] : memref<28x128xf32, #tpu.memory_space<vmem>>, vector<16x128xf32>
    %c0_0 = arith.constant 0 : index
    %c0_1 = arith.constant 0 : index
    %c0_2 = arith.constant 0 : index
    %c0_3 = arith.constant 0 : index
    %6 = vector.load %arg3[%c0_0, %c0_1, %c0_2, %c0_3] : memref<1x7x128x128xf32, #tpu.memory_space<vmem>>, vector<1x1x128x128xf32>
    %7 = vector.shape_cast %6 : vector<1x1x128x128xf32> to vector<128x128xf32>
    %cst_4 = arith.constant dense<0.000000e+00> : vector<16x128xf32>
    %8 = tpu.matmul %5, %7, %cst_4 {dimension_numbers = #tpu.dot_dimension_numbers<[1], [0], [0], [1], [0, 0, 1, 1], [], []>} : vector<16x128xf32>, vector<128x128xf32>, vector<16x128xf32> -> vector<16x128xf32>
    %9 = arith.addf %0, %8 : vector<16x128xf32>
    %c8_i32_5 = arith.constant 8 : i32
    %10 = arith.muli %arg1, %c8_i32_5 : i32
    %c1_i32 = arith.constant 1 : i32
    %11 = arith.addi %10, %c1_i32 : i32
    %c2_i32_6 = arith.constant 2 : i32
    %12 = arith.muli %11, %c2_i32_6 : i32
    %13 = arith.index_cast %12 : i32 to index
    %c0_7 = arith.constant 0 : index
    %14 = vector.load %arg2[%13, %c0_7] : memref<28x128xf32, #tpu.memory_space<vmem>>, vector<16x128xf32>
    %c0_8 = arith.constant 0 : index
    %c1 = arith.constant 1 : index
    %c0_9 = arith.constant 0 : index
    %c0_10 = arith.constant 0 : index
    %15 = vector.load %arg3[%c0_8, %c1, %c0_9, %c0_10] : memref<1x7x128x128xf32, #tpu.memory_space<vmem>>, vector<1x1x128x128xf32>
    %16 = vector.shape_cast %15 : vector<1x1x128x128xf32> to vector<128x128xf32>
    %cst_11 = arith.constant dense<0.000000e+00> : vector<16x128xf32>
    %17 = tpu.matmul %14, %16, %cst_11 {dimension_numbers = #tpu.dot_dimension_numbers<[1], [0], [0], [1], [0, 0, 1, 1], [], []>} : vector<16x128xf32>, vector<128x128xf32>, vector<16x128xf32> -> vector<16x128xf32>
    %18 = arith.addf %9, %17 : vector<16x128xf32>
    %c8_i32_12 = arith.constant 8 : i32
    %19 = arith.muli %arg1, %c8_i32_12 : i32
    %c2_i32_13 = arith.constant 2 : i32
    %20 = arith.addi %19, %c2_i32_13 : i32
    %c2_i32_14 = arith.constant 2 : i32
    %21 = arith.muli %20, %c2_i32_14 : i32
    %22 = arith.index_cast %21 : i32 to index
    %c0_15 = arith.constant 0 : index
    %23 = vector.load %arg2[%22, %c0_15] : memref<28x128xf32, #tpu.memory_space<vmem>>, vector<16x128xf32>
    %c0_16 = arith.constant 0 : index
    %c2 = arith.constant 2 : index
    %c0_17 = arith.constant 0 : index
    %c0_18 = arith.constant 0 : index
    %24 = vector.load %arg3[%c0_16, %c2, %c0_17, %c0_18] : memref<1x7x128x128xf32, #tpu.memory_space<vmem>>, vector<1x1x128x128xf32>
    %25 = vector.shape_cast %24 : vector<1x1x128x128xf32> to vector<128x128xf32>
    %cst_19 = arith.constant dense<0.000000e+00> : vector<16x128xf32>
    %26 = tpu.matmul %23, %25, %cst_19 {dimension_numbers = #tpu.dot_dimension_numbers<[1], [0], [0], [1], [0, 0, 1, 1], [], []>} : vector<16x128xf32>, vector<128x128xf32>, vector<16x128xf32> -> vector<16x128xf32>
    %27 = arith.addf %18, %26 : vector<16x128xf32>
    %c8_i32_20 = arith.constant 8 : i32
    %28 = arith.muli %arg1, %c8_i32_20 : i32
    %c3_i32 = arith.constant 3 : i32
    %29 = arith.addi %28, %c3_i32 : i32
    %c2_i32_21 = arith.constant 2 : i32
    %30 = arith.muli %29, %c2_i32_21 : i32
    %31 = arith.index_cast %30 : i32 to index
    %c0_22 = arith.constant 0 : index
    %32 = vector.load %arg2[%31, %c0_22] : memref<28x128xf32, #tpu.memory_space<vmem>>, vector<16x128xf32>
    %c0_23 = arith.constant 0 : index
    %c3 = arith.constant 3 : index
    %c0_24 = arith.constant 0 : index
    %c0_25 = arith.constant 0 : index
    %33 = vector.load %arg3[%c0_23, %c3, %c0_24, %c0_25] : memref<1x7x128x128xf32, #tpu.memory_space<vmem>>, vector<1x1x128x128xf32>
    %34 = vector.shape_cast %33 : vector<1x1x128x128xf32> to vector<128x128xf32>
    %cst_26 = arith.constant dense<0.000000e+00> : vector<16x128xf32>
    %35 = tpu.matmul %32, %34, %cst_26 {dimension_numbers = #tpu.dot_dimension_numbers<[1], [0], [0], [1], [0, 0, 1, 1], [], []>} : vector<16x128xf32>, vector<128x128xf32>, vector<16x128xf32> -> vector<16x128xf32>
    %36 = arith.addf %27, %35 : vector<16x128xf32>
    %c8_i32_27 = arith.constant 8 : i32
    %37 = arith.muli %arg1, %c8_i32_27 : i32
    %c4_i32 = arith.constant 4 : i32
    %38 = arith.addi %37, %c4_i32 : i32
    %c2_i32_28 = arith.constant 2 : i32
    %39 = arith.muli %38, %c2_i32_28 : i32
    %40 = arith.index_cast %39 : i32 to index
    %c0_29 = arith.constant 0 : index
    %41 = vector.load %arg2[%40, %c0_29] : memref<28x128xf32, #tpu.memory_space<vmem>>, vector<16x128xf32>
    %c0_30 = arith.constant 0 : index
    %c4 = arith.constant 4 : index
    %c0_31 = arith.constant 0 : index
    %c0_32 = arith.constant 0 : index
    %42 = vector.load %arg3[%c0_30, %c4, %c0_31, %c0_32] : memref<1x7x128x128xf32, #tpu.memory_space<vmem>>, vector<1x1x128x128xf32>
    %43 = vector.shape_cast %42 : vector<1x1x128x128xf32> to vector<128x128xf32>
    %cst_33 = arith.constant dense<0.000000e+00> : vector<16x128xf32>
    %44 = tpu.matmul %41, %43, %cst_33 {dimension_numbers = #tpu.dot_dimension_numbers<[1], [0], [0], [1], [0, 0, 1, 1], [], []>} : vector<16x128xf32>, vector<128x128xf32>, vector<16x128xf32> -> vector<16x128xf32>
    %45 = arith.addf %36, %44 : vector<16x128xf32>
    %c8_i32_34 = arith.constant 8 : i32
    %46 = arith.muli %arg1, %c8_i32_34 : i32
    %c5_i32 = arith.constant 5 : i32
    %47 = arith.addi %46, %c5_i32 : i32
    %c2_i32_35 = arith.constant 2 : i32
    %48 = arith.muli %47, %c2_i32_35 : i32
    %49 = arith.index_cast %48 : i32 to index
    %c0_36 = arith.constant 0 : index
    %50 = vector.load %arg2[%49, %c0_36] : memref<28x128xf32, #tpu.memory_space<vmem>>, vector<16x128xf32>
    %c0_37 = arith.constant 0 : index
    %c5 = arith.constant 5 : index
    %c0_38 = arith.constant 0 : index
    %c0_39 = arith.constant 0 : index
    %51 = vector.load %arg3[%c0_37, %c5, %c0_38, %c0_39] : memref<1x7x128x128xf32, #tpu.memory_space<vmem>>, vector<1x1x128x128xf32>
    %52 = vector.shape_cast %51 : vector<1x1x128x128xf32> to vector<128x128xf32>
    %cst_40 = arith.constant dense<0.000000e+00> : vector<16x128xf32>
    %53 = tpu.matmul %50, %52, %cst_40 {dimension_numbers = #tpu.dot_dimension_numbers<[1], [0], [0], [1], [0, 0, 1, 1], [], []>} : vector<16x128xf32>, vector<128x128xf32>, vector<16x128xf32> -> vector<16x128xf32>
    %54 = arith.addf %45, %53 : vector<16x128xf32>
    %c8_i32_41 = arith.constant 8 : i32
    %55 = arith.muli %arg1, %c8_i32_41 : i32
    %c6_i32 = arith.constant 6 : i32
    %56 = arith.addi %55, %c6_i32 : i32
    %c2_i32_42 = arith.constant 2 : i32
    %57 = arith.muli %56, %c2_i32_42 : i32
    %58 = arith.index_cast %57 : i32 to index
    %c0_43 = arith.constant 0 : index
    %59 = vector.load %arg2[%58, %c0_43] : memref<28x128xf32, #tpu.memory_space<vmem>>, vector<16x128xf32>
    %c0_44 = arith.constant 0 : index
    %c6 = arith.constant 6 : index
    %c0_45 = arith.constant 0 : index
    %c0_46 = arith.constant 0 : index
    %60 = vector.load %arg3[%c0_44, %c6, %c0_45, %c0_46] : memref<1x7x128x128xf32, #tpu.memory_space<vmem>>, vector<1x1x128x128xf32>
    %61 = vector.shape_cast %60 : vector<1x1x128x128xf32> to vector<128x128xf32>
    %cst_47 = arith.constant dense<0.000000e+00> : vector<16x128xf32>
    %62 = tpu.matmul %59, %61, %cst_47 {dimension_numbers = #tpu.dot_dimension_numbers<[1], [0], [0], [1], [0, 0, 1, 1], [], []>} : vector<16x128xf32>, vector<128x128xf32>, vector<16x128xf32> -> vector<16x128xf32>
    %63 = arith.addf %54, %62 : vector<16x128xf32>
    %c0_48 = arith.constant 0 : index
    %c0_49 = arith.constant 0 : index
    %c0_50 = arith.constant 0 : index
    %64 = vector.load %arg4[%c0_48, %c0_49, %c0_50] : memref<1x1x128xf32, #tpu.memory_space<vmem>>, vector<1x1x128xf32>
    %65 = vector.shape_cast %64 : vector<1x1x128xf32> to vector<1x128xf32>
    %66 = vector.broadcast %65 : vector<1x128xf32> to vector<16x128xf32>
    %67 = arith.addf %63, %66 : vector<16x128xf32>
    %cst_51 = arith.constant 0.000000e+00 : f32
    %68 = vector.broadcast %cst_51 : f32 to vector<16x128xf32>
    %69 = arith.cmpf ogt, %67, %68 : vector<16x128xf32>
    %cst_52 = arith.constant 1.000000e-01 : f32
    %70 = vector.broadcast %cst_52 : f32 to vector<16x128xf32>
    %71 = arith.mulf %70, %67 : vector<16x128xf32>
    %72 = arith.select %69, %67, %71 : vector<16x128xi1>, vector<16x128xf32>
    %c0_53 = arith.constant 0 : index
    %c0_54 = arith.constant 0 : index
    %73 = vector.load %arg5[%c0_53, %c0_54] : memref<128x128xf32, #tpu.memory_space<vmem>>, vector<128x128xf32>
    %cst_55 = arith.constant dense<0.000000e+00> : vector<16x128xf32>
    %74 = tpu.matmul %72, %73, %cst_55 {dimension_numbers = #tpu.dot_dimension_numbers<[1], [0], [0], [1], [0, 0, 1, 1], [], []>} : vector<16x128xf32>, vector<128x128xf32>, vector<16x128xf32> -> vector<16x128xf32>
    %c0_56 = arith.constant 0 : index
    %c0_57 = arith.constant 0 : index
    %75 = vector.load %arg6[%c0_56, %c0_57] : memref<1x128xf32, #tpu.memory_space<vmem>>, vector<1x128xf32>
    %76 = vector.broadcast %75 : vector<1x128xf32> to vector<16x128xf32>
    %77 = arith.addf %74, %76 : vector<16x128xf32>
    %cst_58 = arith.constant 5.000000e-01 : f32
    %78 = vector.broadcast %cst_58 : f32 to vector<16x128xf32>
    %79 = arith.mulf %77, %78 : vector<16x128xf32>
    %c0_59 = arith.constant 0 : index
    %c0_60 = arith.constant 0 : index
    %80 = vector.load %arg7[%c0_59, %c0_60] : memref<128x128xf32, #tpu.memory_space<vmem>>, vector<128x128xf32>
    %cst_61 = arith.constant dense<0.000000e+00> : vector<16x128xf32>
    %81 = tpu.matmul %72, %80, %cst_61 {dimension_numbers = #tpu.dot_dimension_numbers<[1], [0], [0], [1], [0, 0, 1, 1], [], []>} : vector<16x128xf32>, vector<128x128xf32>, vector<16x128xf32> -> vector<16x128xf32>
    %c0_62 = arith.constant 0 : index
    %c0_63 = arith.constant 0 : index
    %82 = vector.load %arg8[%c0_62, %c0_63] : memref<1x128xf32, #tpu.memory_space<vmem>>, vector<1x128xf32>
    %83 = vector.broadcast %82 : vector<1x128xf32> to vector<16x128xf32>
    %84 = arith.addf %81, %83 : vector<16x128xf32>
    %c0_64 = arith.constant 0 : index
    %c0_65 = arith.constant 0 : index
    %85 = vector.load %arg9[%c0_64, %c0_65] : memref<128x128xf32, #tpu.memory_space<vmem>>, vector<128x128xf32>
    %cst_66 = arith.constant dense<0.000000e+00> : vector<16x128xf32>
    %86 = tpu.matmul %72, %85, %cst_66 {dimension_numbers = #tpu.dot_dimension_numbers<[1], [0], [0], [1], [0, 0, 1, 1], [], []>} : vector<16x128xf32>, vector<128x128xf32>, vector<16x128xf32> -> vector<16x128xf32>
    %c0_67 = arith.constant 0 : index
    %c0_68 = arith.constant 0 : index
    %87 = vector.load %arg10[%c0_67, %c0_68] : memref<1x128xf32, #tpu.memory_space<vmem>>, vector<1x128xf32>
    %88 = vector.broadcast %87 : vector<1x128xf32> to vector<16x128xf32>
    %89 = arith.addf %86, %88 : vector<16x128xf32>
    %90 = vector.shape_cast %79 : vector<16x128xf32> to vector<8x2x128xf32>
    %91 = vector.shape_cast %84 : vector<16x128xf32> to vector<8x2x128xf32>
    %92 = vector.shape_cast %89 : vector<16x128xf32> to vector<8x2x128xf32>
    %93 = vector.shape_cast %90 : vector<8x2x128xf32> to vector<8x2x1x128xf32>
    %94 = vector.shape_cast %91 : vector<8x2x128xf32> to vector<8x1x2x128xf32>
    %95 = vector.broadcast %93 : vector<8x2x1x128xf32> to vector<8x2x2x128xf32>
    %96 = vector.broadcast %94 : vector<8x1x2x128xf32> to vector<8x2x2x128xf32>
    %97 = arith.mulf %95, %96 : vector<8x2x2x128xf32>
    %98 = vector.shape_cast %97 : vector<8x2x2x128xf32> to vector<32x128xf32>
    %c0_69 = arith.constant 0 : index
    %c0_70 = arith.constant 0 : index
    %99 = vector.load %arg21[%c0_69, %c0_70] : memref<128x128xf32, #tpu.memory_space<vmem>>, vector<128x128xf32>
    %cst_71 = arith.constant dense<0.000000e+00> : vector<32x128xf32>
    %100 = tpu.matmul %98, %99, %cst_71 {dimension_numbers = #tpu.dot_dimension_numbers<[1], [0], [0], [1], [0, 0, 1, 1], [], []>} : vector<32x128xf32>, vector<128x128xf32>, vector<32x128xf32> -> vector<32x128xf32>
    %101 = vector.shape_cast %100 : vector<32x128xf32> to vector<8x2x2x128xf32>
    %cst_72 = arith.constant dense<0xFF800000> : vector<8x2x128xf32>
    %102 = vector.multi_reduction <maximumf>, %101, %cst_72 [2] : vector<8x2x2x128xf32> to vector<8x2x128xf32>
    %103 = vector.shape_cast %102 : vector<8x2x128xf32> to vector<8x2x1x128xf32>
    %104 = vector.broadcast %103 : vector<8x2x1x128xf32> to vector<8x2x2x128xf32>
    %105 = arith.subf %101, %104 : vector<8x2x2x128xf32>
    %106 = math.exp %105 : vector<8x2x2x128xf32>
    %cst_73 = arith.constant dense<0.000000e+00> : vector<8x2x128xf32>
    %107 = vector.multi_reduction <add>, %106, %cst_73 [2] : vector<8x2x2x128xf32> to vector<8x2x128xf32>
    %108 = vector.shape_cast %107 : vector<8x2x128xf32> to vector<8x2x1x128xf32>
    %109 = tpu.reciprocal %108 {approx = true} : vector<8x2x1x128xf32> -> vector<8x2x1x128xf32>
    %110 = vector.broadcast %109 : vector<8x2x1x128xf32> to vector<8x2x2x128xf32>
    %111 = arith.mulf %106, %110 : vector<8x2x2x128xf32>
    %112 = vector.shape_cast %92 : vector<8x2x128xf32> to vector<8x1x2x128xf32>
    %113 = vector.broadcast %112 : vector<8x1x2x128xf32> to vector<8x2x2x128xf32>
    %114 = arith.mulf %111, %113 : vector<8x2x2x128xf32>
    %cst_74 = arith.constant dense<0.000000e+00> : vector<8x2x128xf32>
    %115 = vector.multi_reduction <add>, %114, %cst_74 [2] : vector<8x2x2x128xf32> to vector<8x2x128xf32>
    %116 = vector.shape_cast %115 : vector<8x2x128xf32> to vector<16x128xf32>
    %c0_75 = arith.constant 0 : index
    %c0_76 = arith.constant 0 : index
    %117 = vector.load %arg11[%c0_75, %c0_76] : memref<128x128xf32, #tpu.memory_space<vmem>>, vector<128x128xf32>
    %cst_77 = arith.constant dense<0.000000e+00> : vector<16x128xf32>
    %118 = tpu.matmul %116, %117, %cst_77 {dimension_numbers = #tpu.dot_dimension_numbers<[1], [0], [0], [1], [0, 0, 1, 1], [], []>} : vector<16x128xf32>, vector<128x128xf32>, vector<16x128xf32> -> vector<16x128xf32>
    %c0_78 = arith.constant 0 : index
    %c0_79 = arith.constant 0 : index
    %119 = vector.load %arg12[%c0_78, %c0_79] : memref<1x128xf32, #tpu.memory_space<vmem>>, vector<1x128xf32>
    %120 = vector.broadcast %119 : vector<1x128xf32> to vector<16x128xf32>
    %121 = arith.addf %118, %120 : vector<16x128xf32>
    %122 = tpu.iota {dimensions = array<i32: 1>} : vector<1x128xi32>
    %c40_i32 = arith.constant 40 : i32
    %123 = vector.broadcast %c40_i32 : i32 to vector<1x128xi32>
    %124 = arith.cmpi slt, %122, %123 : vector<1x128xi32>
    %125 = arith.extui %124 : vector<1x128xi1> to vector<1x128xi32>
    %126 = arith.sitofp %125 : vector<1x128xi32> to vector<1x128xf32>
    %127 = arith.addf %72, %121 : vector<16x128xf32>
    %c0_80 = arith.constant 0 : index
    %c0_81 = arith.constant 0 : index
    %128 = vector.load %arg13[%c0_80, %c0_81] : memref<1x128xf32, #tpu.memory_space<vmem>>, vector<1x128xf32>
    %c0_82 = arith.constant 0 : index
    %c0_83 = arith.constant 0 : index
    %129 = vector.load %arg14[%c0_82, %c0_83] : memref<1x128xf32, #tpu.memory_space<vmem>>, vector<1x128xf32>
    %cst_84 = arith.constant dense<0.000000e+00> : vector<16xf32>
    %130 = vector.multi_reduction <add>, %127, %cst_84 [1] : vector<16x128xf32> to vector<16xf32>
    %131 = vector.shape_cast %130 : vector<16xf32> to vector<16x1xf32>
    %cst_85 = arith.constant 2.500000e-02 : f32
    %132 = vector.broadcast %cst_85 : f32 to vector<16x1xf32>
    %133 = arith.mulf %131, %132 : vector<16x1xf32>
    %134 = vector.broadcast %133 : vector<16x1xf32> to vector<16x128xf32>
    %135 = arith.subf %127, %134 : vector<16x128xf32>
    %136 = vector.broadcast %126 : vector<1x128xf32> to vector<16x128xf32>
    %137 = arith.mulf %135, %136 : vector<16x128xf32>
    %138 = arith.mulf %137, %137 : vector<16x128xf32>
    %cst_86 = arith.constant dense<0.000000e+00> : vector<16xf32>
    %139 = vector.multi_reduction <add>, %138, %cst_86 [1] : vector<16x128xf32> to vector<16xf32>
    %140 = vector.shape_cast %139 : vector<16xf32> to vector<16x1xf32>
    %cst_87 = arith.constant 2.500000e-02 : f32
    %141 = vector.broadcast %cst_87 : f32 to vector<16x1xf32>
    %142 = arith.mulf %140, %141 : vector<16x1xf32>
    %cst_88 = arith.constant 9.99999974E-6 : f32
    %143 = vector.broadcast %cst_88 : f32 to vector<16x1xf32>
    %144 = arith.addf %142, %143 : vector<16x1xf32>
    %145 = math.rsqrt %144 : vector<16x1xf32>
    %146 = vector.broadcast %145 : vector<16x1xf32> to vector<16x128xf32>
    %147 = arith.mulf %137, %146 : vector<16x128xf32>
    %148 = vector.broadcast %128 : vector<1x128xf32> to vector<16x128xf32>
    %149 = arith.mulf %147, %148 : vector<16x128xf32>
    %150 = vector.broadcast %129 : vector<1x128xf32> to vector<16x128xf32>
    %151 = arith.addf %149, %150 : vector<16x128xf32>
    %c0_89 = arith.constant 0 : index
    %c0_90 = arith.constant 0 : index
    %152 = vector.load %arg15[%c0_89, %c0_90] : memref<128x2048xf32, #tpu.memory_space<vmem>>, vector<128x2048xf32>
    %cst_91 = arith.constant dense<0.000000e+00> : vector<16x2048xf32>
    %153 = tpu.matmul %151, %152, %cst_91 {dimension_numbers = #tpu.dot_dimension_numbers<[1], [0], [0], [1], [0, 0, 1, 1], [], []>} : vector<16x128xf32>, vector<128x2048xf32>, vector<16x2048xf32> -> vector<16x2048xf32>
    %c0_92 = arith.constant 0 : index
    %c0_93 = arith.constant 0 : index
    %154 = vector.load %arg16[%c0_92, %c0_93] : memref<1x2048xf32, #tpu.memory_space<vmem>>, vector<1x2048xf32>
    %155 = vector.broadcast %154 : vector<1x2048xf32> to vector<16x2048xf32>
    %156 = arith.addf %153, %155 : vector<16x2048xf32>
    %cst_94 = arith.constant 0.000000e+00 : f32
    %157 = vector.broadcast %cst_94 : f32 to vector<16x2048xf32>
    %158 = arith.maximumf %156, %157 : vector<16x2048xf32>
    %c0_95 = arith.constant 0 : index
    %c0_96 = arith.constant 0 : index
    %159 = vector.load %arg17[%c0_95, %c0_96] : memref<2048x128xf32, #tpu.memory_space<vmem>>, vector<2048x128xf32>
    %cst_97 = arith.constant dense<0.000000e+00> : vector<16x128xf32>
    %160 = tpu.matmul %158, %159, %cst_97 {dimension_numbers = #tpu.dot_dimension_numbers<[1], [0], [0], [1], [0, 0, 1, 1], [], []>} : vector<16x2048xf32>, vector<2048x128xf32>, vector<16x128xf32> -> vector<16x128xf32>
    %c0_98 = arith.constant 0 : index
    %c0_99 = arith.constant 0 : index
    %161 = vector.load %arg18[%c0_98, %c0_99] : memref<1x128xf32, #tpu.memory_space<vmem>>, vector<1x128xf32>
    %162 = vector.broadcast %161 : vector<1x128xf32> to vector<16x128xf32>
    %163 = arith.addf %160, %162 : vector<16x128xf32>
    %164 = arith.addf %151, %163 : vector<16x128xf32>
    %c0_100 = arith.constant 0 : index
    %c0_101 = arith.constant 0 : index
    %165 = vector.load %arg19[%c0_100, %c0_101] : memref<1x128xf32, #tpu.memory_space<vmem>>, vector<1x128xf32>
    %c0_102 = arith.constant 0 : index
    %c0_103 = arith.constant 0 : index
    %166 = vector.load %arg20[%c0_102, %c0_103] : memref<1x128xf32, #tpu.memory_space<vmem>>, vector<1x128xf32>
    %cst_104 = arith.constant dense<0.000000e+00> : vector<16xf32>
    %167 = vector.multi_reduction <add>, %164, %cst_104 [1] : vector<16x128xf32> to vector<16xf32>
    %168 = vector.shape_cast %167 : vector<16xf32> to vector<16x1xf32>
    %cst_105 = arith.constant 2.500000e-02 : f32
    %169 = vector.broadcast %cst_105 : f32 to vector<16x1xf32>
    %170 = arith.mulf %168, %169 : vector<16x1xf32>
    %171 = vector.broadcast %170 : vector<16x1xf32> to vector<16x128xf32>
    %172 = arith.subf %164, %171 : vector<16x128xf32>
    %173 = vector.broadcast %126 : vector<1x128xf32> to vector<16x128xf32>
    %174 = arith.mulf %172, %173 : vector<16x128xf32>
    %175 = arith.mulf %174, %174 : vector<16x128xf32>
    %cst_106 = arith.constant dense<0.000000e+00> : vector<16xf32>
    %176 = vector.multi_reduction <add>, %175, %cst_106 [1] : vector<16x128xf32> to vector<16xf32>
    %177 = vector.shape_cast %176 : vector<16xf32> to vector<16x1xf32>
    %cst_107 = arith.constant 2.500000e-02 : f32
    %178 = vector.broadcast %cst_107 : f32 to vector<16x1xf32>
    %179 = arith.mulf %177, %178 : vector<16x1xf32>
    %cst_108 = arith.constant 9.99999974E-6 : f32
    %180 = vector.broadcast %cst_108 : f32 to vector<16x1xf32>
    %181 = arith.addf %179, %180 : vector<16x1xf32>
    %182 = math.rsqrt %181 : vector<16x1xf32>
    %183 = vector.broadcast %182 : vector<16x1xf32> to vector<16x128xf32>
    %184 = arith.mulf %174, %183 : vector<16x128xf32>
    %185 = vector.broadcast %165 : vector<1x128xf32> to vector<16x128xf32>
    %186 = arith.mulf %184, %185 : vector<16x128xf32>
    %187 = vector.broadcast %166 : vector<1x128xf32> to vector<16x128xf32>
    %188 = arith.addf %186, %187 : vector<16x128xf32>
    %cst_109 = arith.constant 0.000000e+00 : f32
    %189 = vector.broadcast %cst_109 : f32 to vector<16x128xf32>
    %190 = arith.cmpf ogt, %188, %189 : vector<16x128xf32>
    %cst_110 = arith.constant 1.000000e-01 : f32
    %191 = vector.broadcast %cst_110 : f32 to vector<16x128xf32>
    %192 = arith.mulf %191, %188 : vector<16x128xf32>
    %193 = arith.select %190, %188, %192 : vector<16x128xi1>, vector<16x128xf32>
    %194 = arith.mulf %193, %72 : vector<16x128xf32>
    %195 = vector.shape_cast %194 : vector<16x128xf32> to vector<8x2x128xf32>
    %cst_111 = arith.constant dense<0xFF800000> : vector<2x128xf32>
    %196 = vector.multi_reduction <maximumf>, %195, %cst_111 [0] : vector<8x2x128xf32> to vector<2x128xf32>
    %c0_i32_112 = arith.constant 0 : i32
    %197 = arith.cmpi eq, %arg1, %c0_i32_112 : i32
    %198 = arith.extui %197 : i1 to i32
    %c0_i32_113 = arith.constant 0 : i32
    %199 = arith.cmpi ne, %198, %c0_i32_113 : i32
    scf.if %199 {
      %c0_116 = arith.constant 0 : index
      %c0_117 = arith.constant 0 : index
      %c0_118 = arith.constant 0 : index
      %203 = vector.load %arg22[%c0_116, %c0_117, %c0_118] : memref<1x2x128xf32, #tpu.memory_space<vmem>>, vector<1x2x128xf32>
      %204 = vector.shape_cast %203 : vector<1x2x128xf32> to vector<2x128xf32>
      %205 = vector.shape_cast %196 : vector<2x128xf32> to vector<1x2x128xf32>
      tpu.vector_store %arg22[%c0_116, %c0_117, %c0_118], %205 {strides = array<i32>} : memref<1x2x128xf32, #tpu.memory_space<vmem>>, vector<1x2x128xf32>,
    } else {
    }
    %c0_i32_114 = arith.constant 0 : i32
    %200 = arith.cmpi sgt, %arg1, %c0_i32_114 : i32
    %201 = arith.extui %200 : i1 to i32
    %c0_i32_115 = arith.constant 0 : i32
    %202 = arith.cmpi ne, %201, %c0_i32_115 : i32
    scf.if %202 {
      %c0_116 = arith.constant 0 : index
      %c0_117 = arith.constant 0 : index
      %c0_118 = arith.constant 0 : index
      %203 = vector.load %arg22[%c0_116, %c0_117, %c0_118] : memref<1x2x128xf32, #tpu.memory_space<vmem>>, vector<1x2x128xf32>
      %204 = vector.shape_cast %203 : vector<1x2x128xf32> to vector<2x128xf32>
      %205 = arith.maximumf %204, %196 : vector<2x128xf32>
      %c0_119 = arith.constant 0 : index
      %c0_120 = arith.constant 0 : index
      %c0_121 = arith.constant 0 : index
      %206 = vector.load %arg22[%c0_119, %c0_120, %c0_121] : memref<1x2x128xf32, #tpu.memory_space<vmem>>, vector<1x2x128xf32>
      %207 = vector.shape_cast %206 : vector<1x2x128xf32> to vector<2x128xf32>
      %208 = vector.shape_cast %205 : vector<2x128xf32> to vector<1x2x128xf32>
      tpu.vector_store %arg22[%c0_119, %c0_120, %c0_121], %208 {strides = array<i32>} : memref<1x2x128xf32, #tpu.memory_space<vmem>>, vector<1x2x128xf32>,
    } else {
    }
    return
  }
  func.func @transform_0(%arg0: i32, %arg1: i32) -> (i32, i32) {
    %c0_i32 = arith.constant 0 : i32
    %c0_i32_0 = arith.constant 0 : i32
    %c0_i32_1 = arith.constant 0 : i32
    return %c0_i32, %c0_i32_0 : i32, i32
  }
  func.func @transform_1(%arg0: i32, %arg1: i32) -> (i32, i32, i32, i32) {
    %c0_i32 = arith.constant 0 : i32
    %c0_i32_0 = arith.constant 0 : i32
    %c0_i32_1 = arith.constant 0 : i32
    %c0_i32_2 = arith.constant 0 : i32
    return %arg0, %c0_i32, %c0_i32_0, %c0_i32_1 : i32, i32, i32, i32
  }
  func.func @transform_2(%arg0: i32, %arg1: i32) -> (i32, i32, i32) {
    %c0_i32 = arith.constant 0 : i32
    %c0_i32_0 = arith.constant 0 : i32
    %c0_i32_1 = arith.constant 0 : i32
    return %arg0, %c0_i32, %c0_i32_0 : i32, i32, i32
  }
  func.func @transform_3(%arg0: i32, %arg1: i32) -> (i32, i32) {
    %c0_i32 = arith.constant 0 : i32
    %c0_i32_0 = arith.constant 0 : i32
    %c0_i32_1 = arith.constant 0 : i32
    return %c0_i32, %c0_i32_0 : i32, i32
  }
  func.func @transform_4(%arg0: i32, %arg1: i32) -> (i32, i32) {
    %c0_i32 = arith.constant 0 : i32
    %c0_i32_0 = arith.constant 0 : i32
    %c0_i32_1 = arith.constant 0 : i32
    return %c0_i32, %c0_i32_0 : i32, i32
  }
  func.func @transform_5(%arg0: i32, %arg1: i32) -> (i32, i32) {
    %c0_i32 = arith.constant 0 : i32
    %c0_i32_0 = arith.constant 0 : i32
    %c0_i32_1 = arith.constant 0 : i32
    return %c0_i32, %c0_i32_0 : i32, i32
  }
  func.func @transform_6(%arg0: i32, %arg1: i32) -> (i32, i32) {
    %c0_i32 = arith.constant 0 : i32
    %c0_i32_0 = arith.constant 0 : i32
    %c0_i32_1 = arith.constant 0 : i32
    return %c0_i32, %c0_i32_0 : i32, i32
  }
  func.func @transform_7(%arg0: i32, %arg1: i32) -> (i32, i32) {
    %c0_i32 = arith.constant 0 : i32
    %c0_i32_0 = arith.constant 0 : i32
    %c0_i32_1 = arith.constant 0 : i32
    return %c0_i32, %c0_i32_0 : i32, i32
  }
  func.func @transform_8(%arg0: i32, %arg1: i32) -> (i32, i32) {
    %c0_i32 = arith.constant 0 : i32
    %c0_i32_0 = arith.constant 0 : i32
    %c0_i32_1 = arith.constant 0 : i32
    return %c0_i32, %c0_i32_0 : i32, i32
  }
  func.func @transform_9(%arg0: i32, %arg1: i32) -> (i32, i32) {
    %c0_i32 = arith.constant 0 : i32
    %c0_i32_0 = arith.constant 0 : i32
    %c0_i32_1 = arith.constant 0 : i32
    return %c0_i32, %c0_i32_0 : i32, i32
  }
  func.func @transform_10(%arg0: i32, %arg1: i32) -> (i32, i32) {
    %c0_i32 = arith.constant 0 : i32
    %c0_i32_0 = arith.constant 0 : i32
    %c0_i32_1 = arith.constant 0 : i32
    return %c0_i32, %c0_i32_0 : i32, i32
  }
  func.func @transform_11(%arg0: i32, %arg1: i32) -> (i32, i32) {
    %c0_i32 = arith.constant 0 : i32
    %c0_i32_0 = arith.constant 0 : i32
    %c0_i32_1 = arith.constant 0 : i32
    return %c0_i32, %c0_i32_0 : i32, i32
  }
  func.func @transform_12(%arg0: i32, %arg1: i32) -> (i32, i32) {
    %c0_i32 = arith.constant 0 : i32
    %c0_i32_0 = arith.constant 0 : i32
    %c0_i32_1 = arith.constant 0 : i32
    return %c0_i32, %c0_i32_0 : i32, i32
  }
  func.func @transform_13(%arg0: i32, %arg1: i32) -> (i32, i32) {
    %c0_i32 = arith.constant 0 : i32
    %c0_i32_0 = arith.constant 0 : i32
    %c0_i32_1 = arith.constant 0 : i32
    return %c0_i32, %c0_i32_0 : i32, i32
  }
  func.func @transform_14(%arg0: i32, %arg1: i32) -> (i32, i32) {
    %c0_i32 = arith.constant 0 : i32
    %c0_i32_0 = arith.constant 0 : i32
    %c0_i32_1 = arith.constant 0 : i32
    return %c0_i32, %c0_i32_0 : i32, i32
  }
  func.func @transform_15(%arg0: i32, %arg1: i32) -> (i32, i32) {
    %c0_i32 = arith.constant 0 : i32
    %c0_i32_0 = arith.constant 0 : i32
    %c0_i32_1 = arith.constant 0 : i32
    return %c0_i32, %c0_i32_0 : i32, i32
  }
  func.func @transform_16(%arg0: i32, %arg1: i32) -> (i32, i32) {
    %c0_i32 = arith.constant 0 : i32
    %c0_i32_0 = arith.constant 0 : i32
    %c0_i32_1 = arith.constant 0 : i32
    return %c0_i32, %c0_i32_0 : i32, i32
  }
  func.func @transform_17(%arg0: i32, %arg1: i32) -> (i32, i32) {
    %c0_i32 = arith.constant 0 : i32
    %c0_i32_0 = arith.constant 0 : i32
    %c0_i32_1 = arith.constant 0 : i32
    return %c0_i32, %c0_i32_0 : i32, i32
  }
  func.func @transform_18(%arg0: i32, %arg1: i32) -> (i32, i32) {
    %c0_i32 = arith.constant 0 : i32
    %c0_i32_0 = arith.constant 0 : i32
    %c0_i32_1 = arith.constant 0 : i32
    return %c0_i32, %c0_i32_0 : i32, i32
  }
  func.func @transform_19(%arg0: i32, %arg1: i32) -> (i32, i32) {
    %c0_i32 = arith.constant 0 : i32
    %c0_i32_0 = arith.constant 0 : i32
    %c0_i32_1 = arith.constant 0 : i32
    return %c0_i32, %c0_i32_0 : i32, i32
  }
  func.func @transform_20(%arg0: i32, %arg1: i32) -> (i32, i32, i32) {
    %c0_i32 = arith.constant 0 : i32
    %c0_i32_0 = arith.constant 0 : i32
    %c0_i32_1 = arith.constant 0 : i32
    return %arg0, %c0_i32, %c0_i32_0 : i32, i32, i32
  }
}

</mosaic_0001>

<bundles_post_ra>
// kernel: tcnn_l_forward.1
= control target key start
LH: loop header
LB: loop body
LE: loop exit
PB: predicated region body
PF: predicated region fallthrough
CT: control target
= control target key end

     0   :  { %s3788_s22 = smov 0   ;;  %s3790_s23 = smov 0   ;;  %s6226_s0 = inlined_call_operand.vmem [shape: f32[28,128], index: 0, kind: input, shape index: {}]   ;;  %s6227_s1 = inlined_call_operand.vmem [shape: f32[3,7,128,128], index: 1, kind: input, shape index: {}]   ;;  %s6228_s2 = inlined_call_operand.vmem [shape: f32[3,1,128], index: 2, kind: input, shape index: {}]   ;;  %s6229_s3 = inlined_call_operand.vmem [shape: f32[128,128], index: 3, kind: input, shape index: {}]   ;;  %s6230_s4 = inlined_call_operand.vmem [shape: f32[1,128], index: 4, kind: input, shape index: {}]   ;;  %s6231_s5 = inlined_call_operand.vmem [shape: f32[128,128], index: 5, kind: input, shape index: {}]   ;;  %s6232_s6 = inlined_call_operand.vmem [shape: f32[1,128], index: 6, kind: input, shape index: {}]   ;;  %s6233_s7 = inlined_call_operand.vmem [shape: f32[128,128], index: 7, kind: input, shape index: {}]   ;;  %s6234_s8 = inlined_call_operand.vmem [shape: f32[1,128], index: 8, kind: input, shape index: {}]   ;;  %s6235_s9 = inlined_call_operand.vmem [shape: f32[128,128], index: 9, kind: input, shape index: {}]   ;;  %s6236_s10 = inlined_call_operand.vmem [shape: f32[1,128], index: 10, kind: input, shape index: {}]   ;;  %s6237_s11 = inlined_call_operand.vmem [shape: f32[1,128], index: 11, kind: input, shape index: {}]   ;;  %s6238_s12 = inlined_call_operand.vmem [shape: f32[1,128], index: 12, kind: input, shape index: {}]   ;;  %s6239_s13 = inlined_call_operand.vmem [shape: f32[128,2048], index: 13, kind: input, shape index: {}]   ;;  %s6240_s14 = inlined_call_operand.vmem [shape: f32[1,2048], index: 14, kind: input, shape index: {}]   ;;  %s6241_s15 = inlined_call_operand.vmem [shape: f32[2048,128], index: 15, kind: input, shape index: {}]   ;;  %s6242_s16 = inlined_call_operand.vmem [shape: f32[1,128], index: 16, kind: input, shape index: {}]   ;;  %s6243_s17 = inlined_call_operand.vmem [shape: f32[1,128], index: 17, kind: input, shape index: {}]   ;;  %s6244_s18 = inlined_call_operand.vmem [shape: f32[1,128], index: 18, kind: input, shape index: {}]   ;;  %s6245_s19 = inlined_call_operand.vmem [shape: f32[128,128], index: 19, kind: input, shape index: {}]   ;;  %s6246_s20 = inlined_call_operand.vmem [shape: f32[3,2,128], index: 20, kind: output, shape index: {}]  }
   0x1   :  { %6252 = sst [smem:[#allocation4_spill]] %s6226_s0 }
   0x2   :  { %6253 = sst [smem:[#allocation5_spill]] %s6227_s1  ;;  %s3786_s1 = smov 0  }
   0x3   :  { %6254 = sst [smem:[#allocation6_spill]] %s6228_s2 }
   0x4   :  { %6255 = sst [smem:[#allocation7_spill]] %s6229_s3 }
   0x5   :  { %6256 = sst [smem:[#allocation8_spill]] %s6230_s4 }
   0x6 LB: > { %6257 = sst [smem:[#allocation2_spill]] %s3674_s22  ;;  %s42_s24 = sadd.s32 1, %s3674_s22  ;;  %s3678_s23 = sphi %s3790_s23, %s30_s23   ;;  %s3674_s22 = sphi %s3788_s22, %s6266_s22   ;;  %s3670_s1 = sphi %s3786_s1, %s6265_s1  }
   0x7   : > { %p3434_p0 = scmp.ge.s32.totalorder %s3678_s23, 1  ;;  %p44_p1 = scmp.ge.s32.totalorder %s42_s24, 3 }
   0x8   : > { %p582_p2 = scmp.lt.s32.totalorder %s3678_s23, 4 }
   0x9   : > { %s6268_s24 = smov (%p44_p1, %s42_s24), 0 }
   0xa   : > { %6258 = sst [smem:[#allocation3_spill]] %s6268_s24  ;;  %p583_p3 = pnand %p3434_p0, %p582_p2 }
   0xb   : > { %p642_p4 = scmp.lt.s32.totalorder (!%p583_p3), %s3670_s1, 2  ;;  %s6259_s26 = sld [smem:[#allocation5_spill]] (!%p583_p3) }
   0xc   : > { %586 = sbr.rel (%p583_p3) target bundleno = 1672 (0x688), region = 100  ;;  %s6260_s29 = sld [smem:[#allocation4_spill]] (!%p583_p3) }
   0xd   : > { %s6261_s4 = sld [smem:[#allocation7_spill]] (!%p583_p3) }
   0xe   : > { %s6264_s30 = sld [smem:[#allocation8_spill]] (!%p583_p3) }
  0x11   : > { %s6270_s1 = smov (!%p642_p4, %s3670_s1), 2  ;;  %vm1319_vm2 = vcmask 1041408   ;;  %vm1802_vm3 = vcmask 1041409   ;;  %vm1804_vm4 = vcmask 1042434   ;;  %vm1806_vm5 = vcmask 1043459  }
  0x12   : > { %s3548_s2 = smul.u32 896, %s6270_s1  ;;  %vm1808_vm6 = vcmask 1044484   ;;  %vm1810_vm7 = vcmask 1045509   ;;  %vm1812_vm8 = vcmask 1046534   ;;  %vm1814_vm9 = vcmask 1047559  }
  0x14   : > { %s3810_s27 = scalar_lea.vmem %s6259_s26, %s3548_s2  ;;  %s6262_s26 = sld [smem:[#allocation6_spill]] }
  0x15   : > { %v3454_v0 = vld [vmem:[%s3810_s27 + $0xf8] sm:$0xff]  ;;  %v3453_v2 = vld [vmem:[%s3810_s27 + $0xf0] sm:$0xff]  ;;  %v3452_v5 = vld [vmem:[%s3810_s27 + $0xe8] sm:$0xff] }
  0x16   : > { %v3472_v1 = vld [vmem:[%s3810_s27 + $0x178] sm:$0xff]  ;;  %697 = vmatpush.msra.mxu0 %v3454_v0  ;;  %v3471_v4 = vld [vmem:[%s3810_s27 + $0x170] sm:$0xff]  ;;  %v3470_v7 = vld [vmem:[%s3810_s27 + $0x168] sm:$0xff] }
  0x17   : > { %765 = vmatpush.msra.mxu2 %v3472_v1  ;;  %v673_v3 = vld [vmem:[%s3810_s27 + $0x78] sm:$0xff]  ;;  %v672_v6 = vld [vmem:[%s3810_s27 + $0x70] sm:$0xff]  ;;  %v671_v8 = vld [vmem:[%s3810_s27 + $0x68] sm:$0xff] }
  0x18   : > { %720 = vmatpush.msra.mxu1 %v673_v3  ;;  %698 = vmatpush.msra.mxu0 %v3453_v2  ;;  %v3451_v9 = vld [vmem:[%s3810_s27 + $0xe0] sm:$0xff]  ;;  %v3450_v12 = vld [vmem:[%s3810_s27 + $0xd8] sm:$0xff]  ;;  %v3449_v16 = vld [vmem:[%s3810_s27 + $0xd0] sm:$0xff] }
  0x19   : > { %766 = vmatpush.msra.mxu2 %v3471_v4  ;;  %v3469_v10 = vld [vmem:[%s3810_s27 + $0x160] sm:$0xff]  ;;  %v3468_v13 = vld [vmem:[%s3810_s27 + $0x158] sm:$0xff]  ;;  %v3467_v17 = vld [vmem:[%s3810_s27 + $0x150] sm:$0xff] }
  0x1a   : > { %721 = vmatpush.msra.mxu1 %v672_v6  ;;  %699 = vmatpush.msra.mxu0 %v3452_v5  ;;  %v670_v11 = vld [vmem:[%s3810_s27 + $0x60] sm:$0xff]  ;;  %v669_v14 = vld [vmem:[%s3810_s27 + $0x58] sm:$0xff]  ;;  %v668_v18 = vld [vmem:[%s3810_s27 + $0x50] sm:$0xff]  ;;  %s6263_s0 = scalar_lea.vmem %s6262_s26, %s6270_s1 }
  0x1b   : > { %767 = vmatpush.msra.mxu2 %v3470_v7  ;;  %v3490_v15 = vld [vmem:[%s3810_s27 + $0x1f8] sm:$0xff]  ;;  %v3489_v19 = vld [vmem:[%s3810_s27 + $0x1f0] sm:$0xff]  ;;  %v3448_v20 = vld [vmem:[%s3810_s27 + $0xc8] sm:$0xff] }
  0x1c   : > { %722 = vmatpush.msra.mxu1 %v671_v8  ;;  %700 = vmatpush.msra.mxu0 %v3451_v9  ;;  %v3466_v21 = vld [vmem:[%s3810_s27 + $0x148] sm:$0xff]  ;;  %v3487_v24 = vld [vmem:[%s3810_s27 + $0x1e0] sm:$0xff]  ;;  %v3486_v28 = vld [vmem:[%s3810_s27 + $0x1d8] sm:$0xff] }
  0x1d   : > { %768 = vmatpush.msra.mxu2 %v3469_v10  ;;  %812 = vmatpush.msra.mxu3 %v3490_v15  ;;  %v3488_v22 = vld [vmem:[%s3810_s27 + $0x1e8] sm:$0xff]  ;;  %v3447_v25 = vld [vmem:[%s3810_s27 + $0xc0] sm:$0xff]  ;;  %v3446_v29 = vld [vmem:[%s3810_s27 + $0xb8] sm:$0xff] }
  0x1e   : > { %723 = vmatpush.msra.mxu1 %v670_v11  ;;  %701 = vmatpush.msra.mxu0 %v3450_v12  ;;  %v667_v23 = vld [vmem:[%s3810_s27 + $0x48] sm:$0xff]  ;;  %v3465_v26 = vld [vmem:[%s3810_s27 + $0x140] sm:$0xff]  ;;  %v3464_v30 = vld [vmem:[%s3810_s27 + $0x138] sm:$0xff] }
  0x1f   : > { %769 = vmatpush.msra.mxu2 %v3468_v13  ;;  %813 = vmatpush.msra.mxu3 %v3489_v19  ;;  %v666_v27 = vld [vmem:[%s3810_s27 + $0x40] sm:$0xff]  ;;  %v665_v31 = vld [vmem:[%s3810_s27 + $0x38] sm:$0xff]  ;;  %v3485_v32 = vld [vmem:[%s3810_s27 + $0x1d0] sm:$0xff] }
  0x20   : > { %724 = vmatpush.msra.mxu1 %v669_v14  ;;  %702 = vmatpush.msra.mxu0 %v3449_v16  ;;  %v3445_v33 = vld [vmem:[%s3810_s27 + $0xb0] sm:$0xff]  ;;  %v3484_v36 = vld [vmem:[%s3810_s27 + $0x1c8] sm:$0xff]  ;;  %v3483_v40 = vld [vmem:[%s3810_s27 + $0x1c0] sm:$0xff] }
  0x21   : > { %770 = vmatpush.msra.mxu2 %v3467_v17  ;;  %814 = vmatpush.msra.mxu3 %v3488_v22  ;;  %v3463_v34 = vld [vmem:[%s3810_s27 + $0x130] sm:$0xff]  ;;  %v3444_v37 = vld [vmem:[%s3810_s27 + $0xa8] sm:$0xff]  ;;  %v3443_v41 = vld [vmem:[%s3810_s27 + $0xa0] sm:$0xff] }
  0x22   : > { %725 = vmatpush.msra.mxu1 %v668_v18  ;;  %703 = vmatpush.msra.mxu0 %v3448_v20  ;;  %v664_v35 = vld [vmem:[%s3810_s27 + $0x30] sm:$0xff]  ;;  %v3462_v38 = vld [vmem:[%s3810_s27 + $0x128] sm:$0xff]  ;;  %v3461_v42 = vld [vmem:[%s3810_s27 + $0x120] sm:$0xff] }
  0x23   : > { %771 = vmatpush.msra.mxu2 %v3466_v21  ;;  %815 = vmatpush.msra.mxu3 %v3487_v24  ;;  %v663_v39 = vld [vmem:[%s3810_s27 + $0x28] sm:$0xff]  ;;  %v662_v43 = vld [vmem:[%s3810_s27 + $0x20] sm:$0xff]  ;;  %v3482_v44 = vld [vmem:[%s3810_s27 + $0x1b8] sm:$0xff] }
  0x24   : > { %726 = vmatpush.msra.mxu1 %v667_v23  ;;  %704 = vmatpush.msra.mxu0 %v3447_v25  ;;  %v3442_v45 = vld [vmem:[%s3810_s27 + $0x98] sm:$0xff]  ;;  %v3481_v48 = vld [vmem:[%s3810_s27 + $0x1b0] sm:$0xff]  ;;  %v3480_v52 = vld [vmem:[%s3810_s27 + $0x1a8] sm:$0xff] }
  0x25   : > { %772 = vmatpush.msra.mxu2 %v3465_v26  ;;  %816 = vmatpush.msra.mxu3 %v3486_v28  ;;  %v3460_v46 = vld [vmem:[%s3810_s27 + $0x118] sm:$0xff]  ;;  %v3441_v49 = vld [vmem:[%s3810_s27 + $0x90] sm:$0xff]  ;;  %v3440_v53 = vld [vmem:[%s3810_s27 + $0x88] sm:$0xff] }
  0x26   : > { %727 = vmatpush.msra.mxu1 %v666_v27  ;;  %705 = vmatpush.msra.mxu0 %v3446_v29  ;;  %v661_v47 = vld [vmem:[%s3810_s27 + $0x18] sm:$0xff]  ;;  %v3459_v50 = vld [vmem:[%s3810_s27 + $0x110] sm:$0xff]  ;;  %v3458_v54 = vld [vmem:[%s3810_s27 + $0x108] sm:$0xff] }
  0x27   : > { %773 = vmatpush.msra.mxu2 %v3464_v30  ;;  %817 = vmatpush.msra.mxu3 %v3485_v32  ;;  %v660_v51 = vld [vmem:[%s3810_s27 + $0x10] sm:$0xff]  ;;  %v659_v55 = vld [vmem:[%s3810_s27 + $0x8] sm:$0xff]  ;;  %v3479_v56 = vld [vmem:[%s3810_s27 + $0x1a0] sm:$0xff] }
  0x28   : > { %728 = vmatpush.msra.mxu1 %v665_v31  ;;  %706 = vmatpush.msra.mxu0 %v3445_v33  ;;  %v3439_v57 = vld [vmem:[%s3810_s27 + $0x80] sm:$0xff]  ;;  %v3508_v59 = vld [vmem:[%s3810_s27 + $0x278] sm:$0xff]  ;;  %v3507_v63 = vld [vmem:[%s3810_s27 + $0x270] sm:$0xff] }
  0x29   : > { %774 = vmatpush.msra.mxu2 %v3463_v34  ;;  %818 = vmatpush.msra.mxu3 %v3484_v36  ;;  %v3457_v58 = vld [vmem:[%s3810_s27 + $0x100] sm:$0xff]  ;;  %v3544_v60 = vld [vmem:[%s3810_s27 + $0x378] sm:$0xff]  ;;  %v3543_v1 = vld [vmem:[%s3810_s27 + $0x370] sm:$0xff] }
  0x2a   : > { %729 = vmatpush.msra.mxu1 %v664_v35  ;;  %707 = vmatpush.msra.mxu0 %v3444_v37  ;;  %v658_v61 = vld [vmem:[%s3810_s27] sm:$0xff]  ;;  %v3478_v62 = vld [vmem:[%s3810_s27 + $0x198] sm:$0xff]  ;;  %v3477_v2 = vld [vmem:[%s3810_s27 + $0x190] sm:$0xff] }
  0x2b   : > { %775 = vmatpush.msra.mxu2 %v3462_v38  ;;  %819 = vmatpush.msra.mxu3 %v3483_v40  ;;  %v3526_v0 = vld [vmem:[%s3810_s27 + $0x2f8] sm:$0xff]  ;;  %v3506_v3 = vld [vmem:[%s3810_s27 + $0x268] sm:$0xff]  ;;  %v3525_v4 = vld [vmem:[%s3810_s27 + $0x2f0] sm:$0xff] }
  0x2c   : > { %730 = vmatpush.msra.mxu1 %v663_v39  ;;  %708 = vmatpush.msra.mxu0 %v3443_v41  ;;  %v3542_v5 = vld [vmem:[%s3810_s27 + $0x368] sm:$0xff]  ;;  %v3505_v7 = vld [vmem:[%s3810_s27 + $0x260] sm:$0xff]  ;;  %v3504_v11 = vld [vmem:[%s3810_s27 + $0x258] sm:$0xff] }
  0x2d   : > { %776 = vmatpush.msra.mxu2 %v3461_v42  ;;  %820 = vmatpush.msra.mxu3 %v3482_v44  ;;  %v3476_v6 = vld [vmem:[%s3810_s27 + $0x188] sm:$0xff]  ;;  %v3541_v9 = vld [vmem:[%s3810_s27 + $0x360] sm:$0xff]  ;;  %v3540_v13 = vld [vmem:[%s3810_s27 + $0x358] sm:$0xff] }
  0x2e   : > { %731 = vmatpush.msra.mxu1 %v662_v43  ;;  %709 = vmatpush.msra.mxu0 %v3442_v45  ;;  %v3524_v8 = vld [vmem:[%s3810_s27 + $0x2e8] sm:$0xff]  ;;  %v3475_v10 = vld [vmem:[%s3810_s27 + $0x180] sm:$0xff]  ;;  %v3503_v15 = vld [vmem:[%s3810_s27 + $0x250] sm:$0xff] }
  0x2f   : > { %777 = vmatpush.msra.mxu2 %v3460_v46  ;;  %821 = vmatpush.msra.mxu3 %v3481_v48  ;;  %v3523_v12 = vld [vmem:[%s3810_s27 + $0x2e0] sm:$0xff]  ;;  %v3522_v16 = vld [vmem:[%s3810_s27 + $0x2d8] sm:$0xff]  ;;  %v3539_v17 = vld [vmem:[%s3810_s27 + $0x350] sm:$0xff] }
  0x30   : > { %732 = vmatpush.msra.mxu1 %v661_v47  ;;  %710 = vmatpush.msra.mxu0 %v3441_v49  ;;  %v3437_v14 = vld [vmem:[%s6260_s29 + $0x2] sm:$0xff]  ;;  %v3521_v20 = vld [vmem:[%s3810_s27 + $0x2d0] sm:$0xff]  ;;  %v3500_v27 = vld [vmem:[%s3810_s27 + $0x238] sm:$0xff] }
  0x31   : > { %778 = vmatpush.msra.mxu2 %v3459_v50  ;;  %822 = vmatpush.msra.mxu3 %v3480_v52  ;;  %v3473_v18 = vld [vmem:[%s6260_s29 + $0x6] sm:$0xff]  ;;  %v1005_v28 = vld [vmem:[%s6261_s4 + $0x78] sm:$0xff]  ;;  %v3499_v31 = vld [vmem:[%s3810_s27 + $0x230] sm:$0xff] }
  0x32   : > { %733 = vmatpush.msra.mxu1 %v660_v51  ;;  %711 = vmatpush.msra.mxu0 %v3440_v53  ;;  %v3502_v19 = vld [vmem:[%s3810_s27 + $0x248] sm:$0xff]  ;;  %v656_v22 = vld [vmem:[%s6260_s29] sm:$0xff]  ;;  %v3536_v30 = vld [vmem:[%s3810_s27 + $0x338] sm:$0xff] }
  0x33   : > { %779 = vmatpush.msra.mxu2 %v3458_v54  ;;  %823 = vmatpush.msra.mxu3 %v3479_v56  ;;  %v3538_v21 = vld [vmem:[%s3810_s27 + $0x348] sm:$0xff]  ;;  %v3501_v24 = vld [vmem:[%s3810_s27 + $0x240] sm:$0xff]  ;;  %v3518_v32 = vld [vmem:[%s3810_s27 + $0x2b8] sm:$0xff] }
  0x34   : > { %734 = vmatpush.msra.mxu1 %v659_v55  ;;  %712 = vmatpush.msra.mxu0 %v3439_v57  ;;  %v3455_v23 = vld [vmem:[%s6260_s29 + $0x4] sm:$0xff]  ;;  %v3535_v33 = vld [vmem:[%s3810_s27 + $0x330] sm:$0xff]  ;;  %v3496_v44 = vld [vmem:[%s3810_s27 + $0x218] sm:$0xff] }
  0x35   : > { %780 = vmatpush.msra.mxu2 %v3457_v58  ;;  %824 = vmatpush.msra.mxu3 %v3478_v62  ;;  %v3520_v25 = vld [vmem:[%s3810_s27 + $0x2c8] sm:$0xff]  ;;  %v3537_v26 = vld [vmem:[%s3810_s27 + $0x340] sm:$0xff]  ;;  %v3517_v36 = vld [vmem:[%s3810_s27 + $0x2b0] sm:$0xff] }
  0x36   : > { %859 = vmatpush.msrb.mxu0 %v3508_v59  ;;  %735 = vmatpush.msra.mxu1 %v658_v61  ;;  %v3519_v29 = vld [vmem:[%s3810_s27 + $0x2c0] sm:$0xff]  ;;  %v3498_v34 = vld [vmem:[%s3810_s27 + $0x228] sm:$0xff]  ;;  %v3532_v46 = vld [vmem:[%s3810_s27 + $0x318] sm:$0xff] }
  0x37   : > { %953 = vmatpush.msrb.mxu2 %v3544_v60  ;;  %825 = vmatpush.msra.mxu3 %v3477_v2  ;;  %v3474_v35 = vld [vmem:[%s6260_s29 + $0xe] sm:$0xff]  ;;  %v3497_v39 = vld [vmem:[%s3810_s27 + $0x220] sm:$0xff]  ;;  %v3514_v48 = vld [vmem:[%s3810_s27 + $0x298] sm:$0xff] }
  0x38   : > { %860 = vmatpush.msrb.mxu0 %v3507_v63  ;;  %906 = vmatpush.msrb.mxu1 %v3526_v0  ;;  %v3534_v37 = vld [vmem:[%s3810_s27 + $0x328] sm:$0xff]  ;;  %v3533_v41 = vld [vmem:[%s3810_s27 + $0x320] sm:$0xff]  ;;  %v3495_v47 = vld [vmem:[%s3810_s27 + $0x210] sm:$0xff] }
  0x39   : > { %954 = vmatpush.msrb.mxu2 %v3543_v1  ;;  %826 = vmatpush.msra.mxu3 %v3476_v6  ;;  %v3456_v38 = vld [vmem:[%s6260_s29 + $0xc] sm:$0xff]  ;;  %v3515_v45 = vld [vmem:[%s3810_s27 + $0x2a0] sm:$0xff]  ;;  %v1050_v57 = vld [vmem:[%s6231_s5 + $0x78] sm:$0xff] }
  0x3a   : > { %861 = vmatpush.msrb.mxu0 %v3506_v3  ;;  %907 = vmatpush.msrb.mxu1 %v3525_v4  ;;  %v3516_v40 = vld [vmem:[%s3810_s27 + $0x2a8] sm:$0xff]  ;;  %v3531_v49 = vld [vmem:[%s3810_s27 + $0x310] sm:$0xff]  ;;  %v3493_v53 = vld [vmem:[%s3810_s27 + $0x200] sm:$0xff] }
  0x3b   : > { %955 = vmatpush.msrb.mxu2 %v3542_v5  ;;  %827 = vmatpush.msra.mxu3 %v3475_v10  ;;  %v3438_v42 = vld [vmem:[%s6260_s29 + $0xa] sm:$0xff]  ;;  %v3529_v55 = vld [vmem:[%s3810_s27 + $0x300] sm:$0xff]  ;;  %v1093_v58 = vld [vmem:[%s6233_s7 + $0x78] sm:$0xff] }
  0x3c   : > { %862 = vmatpush.msrb.mxu0 %v3505_v7  ;;  %908 = vmatpush.msrb.mxu1 %v3524_v8  ;;  %v657_v43 = vld [vmem:[%s6260_s29 + $0x8] sm:$0xff]  ;;  %v3513_v51 = vld [vmem:[%s3810_s27 + $0x290] sm:$0xff]  ;;  %v3511_v56 = vld [vmem:[%s3810_s27 + $0x280] sm:$0xff] }
  0x3d   : > { %956 = vmatpush.msrb.mxu2 %v3541_v9  ;;  %713 = vmatmul.f32.vlgmr.msra.gmra.mxu0 %v3437_v14  ;;  %v3494_v50 = vld [vmem:[%s3810_s27 + $0x208] sm:$0xff]  ;;  %v3492_v59 = vld [vmem:[%s6260_s29 + $0x10] sm:$0xff]  ;;  %v1002_v4 = vld [vmem:[%s6261_s4 + $0x60] sm:$0xff] }
  0x3e   : > { %863 = vmatpush.msrb.mxu0 %v3504_v11  ;;  %909 = vmatpush.msrb.mxu1 %v3523_v12  ;;  %v3530_v52 = vld [vmem:[%s3810_s27 + $0x308] sm:$0xff]  ;;  %v3528_v60 = vld [vmem:[%s6260_s29 + $0x14] sm:$0xff]  ;;  %v1047_v5 = vld [vmem:[%s6231_s5 + $0x60] sm:$0xff] }
  0x3f   : > { %957 = vmatpush.msrb.mxu2 %v3540_v13  ;;  %828 = vmatmul.f32.vlgmr.msra.gmra.mxu3 %v3473_v18  ;;  %v3512_v54 = vld [vmem:[%s3810_s27 + $0x288] sm:$0xff]  ;;  %v3510_v61 = vld [vmem:[%s6260_s29 + $0x12] sm:$0xff]  ;;  %v1090_v6 = vld [vmem:[%s6233_s7 + $0x60] sm:$0xff]  ;;  %s3436_s27 = sshll.u32 %s6270_s1, 1 }
  0x40   : > { %864 = vmatpush.msrb.mxu0 %v3503_v15  ;;  %910 = vmatpush.msrb.mxu1 %v3522_v16  ;;  %v1004_v62 = vld [vmem:[%s6261_s4 + $0x70] sm:$0xff]  ;;  %v1003_v1 = vld [vmem:[%s6261_s4 + $0x68] sm:$0xff]  ;;  %v1001_v7 = vld [vmem:[%s6261_s4 + $0x58] sm:$0xff] }
  0x41   : > { %958 = vmatpush.msrb.mxu2 %v3539_v17  ;;  %736 = vmatmul.f32.vlgmr.msra.gmra.mxu1 %v656_v22  ;;  %v1049_v63 = vld [vmem:[%s6231_s5 + $0x70] sm:$0xff]  ;;  %v1048_v2 = vld [vmem:[%s6231_s5 + $0x68] sm:$0xff]  ;;  %v1046_v8 = vld [vmem:[%s6231_s5 + $0x58] sm:$0xff] }
  0x42   : > { %865 = vmatpush.msrb.mxu0 %v3502_v19  ;;  %911 = vmatpush.msrb.mxu1 %v3521_v20  ;;  %v1092_v0 = vld [vmem:[%s6233_s7 + $0x70] sm:$0xff]  ;;  %v1091_v3 = vld [vmem:[%s6233_s7 + $0x68] sm:$0xff]  ;;  %v1089_v9 = vld [vmem:[%s6233_s7 + $0x58] sm:$0xff] }
  0x43   : > { %959 = vmatpush.msrb.mxu2 %v3538_v21  ;;  %1010 = vmatpush.msrb.mxu3 %v1005_v28  ;;  %v1000_v10 = vld [vmem:[%s6261_s4 + $0x50] sm:$0xff]  ;;  %v999_v13 = vld [vmem:[%s6261_s4 + $0x48] sm:$0xff]  ;;  %v998_v16 = vld [vmem:[%s6261_s4 + $0x40] sm:$0xff] }
  0x44   : > { %781 = vmatmul.f32.vlgmr.msra.gmra.mxu2 %v3455_v23  ;;  %866 = vmatpush.msrb.mxu0 %v3501_v24  ;;  %v1045_v11 = vld [vmem:[%s6231_s5 + $0x50] sm:$0xff]  ;;  %v1044_v14 = vld [vmem:[%s6231_s5 + $0x48] sm:$0xff]  ;;  %v1043_v17 = vld [vmem:[%s6231_s5 + $0x40] sm:$0xff] }
  0x45   : > { %912 = vmatpush.msrb.mxu1 %v3520_v25  ;;  %960 = vmatpush.msrb.mxu2 %v3537_v26  ;;  %v1088_v12 = vld [vmem:[%s6233_s7 + $0x50] sm:$0xff]  ;;  %v1087_v15 = vld [vmem:[%s6233_s7 + $0x48] sm:$0xff]  ;;  %v1086_v18 = vld [vmem:[%s6233_s7 + $0x40] sm:$0xff] }
  0x46   : > { %867 = vmatpush.msrb.mxu0 %v3500_v27  ;;  %1011 = vmatpush.msrb.mxu3 %v1004_v62  ;;  %v997_v19 = vld [vmem:[%s6261_s4 + $0x38] sm:$0xff]  ;;  %v996_v22 = vld [vmem:[%s6261_s4 + $0x30] sm:$0xff]  ;;  %v995_v25 = vld [vmem:[%s6261_s4 + $0x28] sm:$0xff] }
  0x47   : > { %913 = vmatpush.msrb.mxu1 %v3519_v29  ;;  %961 = vmatpush.msrb.mxu2 %v3536_v30  ;;  %v1042_v20 = vld [vmem:[%s6231_s5 + $0x38] sm:$0xff]  ;;  %v1041_v23 = vld [vmem:[%s6231_s5 + $0x30] sm:$0xff]  ;;  %v1040_v26 = vld [vmem:[%s6231_s5 + $0x28] sm:$0xff] }
  0x48   : > { %868 = vmatpush.msrb.mxu0 %v3499_v31  ;;  %831 = vmatmul.f32.gmra.mxu3 %v3474_v35  ;;  %v1085_v21 = vld [vmem:[%s6233_s7 + $0x38] sm:$0xff]  ;;  %v1084_v24 = vld [vmem:[%s6233_s7 + $0x30] sm:$0xff]  ;;  %v1083_v27 = vld [vmem:[%s6233_s7 + $0x28] sm:$0xff] }
  0x49   : > { %914 = vmatpush.msrb.mxu1 %v3518_v32  ;;  %962 = vmatpush.msrb.mxu2 %v3535_v33  ;;  %v994_v28 = vld [vmem:[%s6261_s4 + $0x20] sm:$0xff]  ;;  %v993_v31 = vld [vmem:[%s6261_s4 + $0x18] sm:$0xff]  ;;  %v1037_v35 = vld [vmem:[%s6231_s5 + $0x10] sm:$0xff] }
  0x4a   : > { %869 = vmatpush.msrb.mxu0 %v3498_v34  ;;  %739 = vmatmul.f32.gmra.mxu1 %v657_v43  ;;  %v1039_v29 = vld [vmem:[%s6231_s5 + $0x20] sm:$0xff]  ;;  %v1038_v32 = vld [vmem:[%s6231_s5 + $0x18] sm:$0xff]  ;;  %v992_v34 = vld [vmem:[%s6261_s4 + $0x10] sm:$0xff] }
  0x4b   : > { %915 = vmatpush.msrb.mxu1 %v3517_v36  ;;  %963 = vmatpush.msrb.mxu2 %v3534_v37  ;;  %v1082_v30 = vld [vmem:[%s6233_s7 + $0x20] sm:$0xff]  ;;  %v1081_v33 = vld [vmem:[%s6233_s7 + $0x18] sm:$0xff]  ;;  %v1080_v36 = vld [vmem:[%s6233_s7 + $0x10] sm:$0xff] }
  0x4c   : > { %784 = vmatmul.f32.gmra.mxu2 %v3456_v38  ;;  %870 = vmatpush.msrb.mxu0 %v3497_v39  ;;  %v991_v37 = vld [vmem:[%s6261_s4 + $0x8] sm:$0xff] }
  0x4d   : > { %916 = vmatpush.msrb.mxu1 %v3516_v40  ;;  %964 = vmatpush.msrb.mxu2 %v3533_v41  ;;  %v1079_v39 = vld [vmem:[%s6233_s7 + $0x8] sm:$0xff]  ;;  %v990_v40 = vld [vmem:[%s6261_s4] sm:$0xff] }
  0x4e   : > { %716 = vmatmul.f32.gmra.mxu0 %v3438_v42  ;;  %1012 = vmatpush.msrb.mxu3 %v1003_v1  ;;  %v1035_v41 = vld [vmem:[%s6231_s5] sm:$0xff] }
  0x4f   : > { %871 = vmatpush.msrb.mxu0 %v3496_v44  ;;  %917 = vmatpush.msrb.mxu1 %v3515_v45 }
  0x50   : > { %965 = vmatpush.msrb.mxu2 %v3532_v46  ;;  %1013 = vmatpush.msrb.mxu3 %v1002_v4 }
  0x51   : > { %872 = vmatpush.msrb.mxu0 %v3495_v47  ;;  %918 = vmatpush.msrb.mxu1 %v3514_v48 }
  0x52   : > { %966 = vmatpush.msrb.mxu2 %v3531_v49  ;;  %1014 = vmatpush.msrb.mxu3 %v1001_v7  ;;  %v1214_v49 = vld [vmem:[%s6245_s19 + $0x78] sm:$0xff] }
  0x53   : > { %873 = vmatpush.msrb.mxu0 %v3494_v50  ;;  %919 = vmatpush.msrb.mxu1 %v3513_v51  ;;  %v1213_v50 = vld [vmem:[%s6245_s19 + $0x70] sm:$0xff]  ;;  %v1212_v51 = vld [vmem:[%s6245_s19 + $0x68] sm:$0xff] }
  0x54   : > { %967 = vmatpush.msrb.mxu2 %v3530_v52  ;;  %1015 = vmatpush.msrb.mxu3 %v1000_v10 }
  0x55   : > { %874 = vmatpush.msrb.mxu0 %v3493_v53  ;;  %920 = vmatpush.msrb.mxu1 %v3512_v54 }
  0x56   : > { %968 = vmatpush.msrb.mxu2 %v3529_v55  ;;  %875 = vmatmul.f32.vlgmr.msrb.gmra.mxu0 %v657_v43 }
  0x57   : > { %969 = vmatmul.f32.vlgmr.msrb.gmra.mxu2 %v3456_v38  ;;  %921 = vmatpush.msrb.mxu1 %v3511_v56  ;;  %v1036_v38 = vld [vmem:[%s6231_s5 + $0x8] sm:$0xff] }
  0x58   : > { %922 = vmatmul.f32.vlgmr.msrb.gmra.mxu1 %v3438_v42  ;;  %1055 = vmatpush.msra.mxu0 %v1050_v57  ;;  %v1078_v42 = vld [vmem:[%s6233_s7] sm:$0xff] }
  0x59   : > { %1098 = vmatpush.msra.mxu1 %v1093_v58  ;;  %1016 = vmatpush.msrb.mxu3 %v999_v13 }
  0x5a   : > { %1056 = vmatpush.msra.mxu0 %v1049_v63  ;;  %1262 = vmatpush.msra.mxu2 %v1214_v49  ;;  %v3574_v63 = vld [vmem:[%s6263_s0] ss:$0 sm:$0xff]  ;;  %s653_s0 = scalar_lea.vmem %s6246_s20, %s3436_s27 }
  0x5b   : > { %1099 = vmatpush.msra.mxu1 %v1092_v0  ;;  %1017 = vmatpush.msrb.mxu3 %v998_v16  ;;  %v1210_v16 = vld [vmem:[%s6245_s19 + $0x58] sm:$0xff] }
  0x5c   : > { %1057 = vmatpush.msra.mxu0 %v1048_v2  ;;  %1263 = vmatpush.msra.mxu2 %v1213_v50 }
  0x5d   : > { %1100 = vmatpush.msra.mxu1 %v1091_v3  ;;  %1018 = vmatpush.msrb.mxu3 %v997_v19  ;;  %v1207_v19 = vld [vmem:[%s6245_s19 + $0x40] sm:$0xff] }
  0x5e   : > { %878 = vmatmul.f32.gmra.mxu0 %v3492_v59  ;;  %1264 = vmatpush.msra.mxu2 %v1212_v51 }
  0x5f   : > { %972 = vmatmul.f32.gmra.mxu2 %v3528_v60  ;;  %1058 = vmatpush.msra.mxu0 %v1047_v5 }
  0x60   : > { %925 = vmatmul.f32.gmra.mxu1 %v3510_v61  ;;  %1019 = vmatpush.msrb.mxu3 %v996_v22  ;;  %v1204_v22 = vld [vmem:[%s6245_s19 + $0x28] sm:$0xff] }
  0x61   : > { %1101 = vmatpush.msra.mxu1 %v1090_v6  ;;  %1059 = vmatpush.msra.mxu0 %v1046_v8 }
  0x62   : > { %1020 = vmatpush.msrb.mxu3 %v995_v25  ;;  %v1201_v25 = vld [vmem:[%s6245_s19 + $0x10] sm:$0xff] }
  0x63   : > { %1102 = vmatpush.msra.mxu1 %v1089_v9  ;;  %1060 = vmatpush.msra.mxu0 %v1045_v11 }
  0x64   : > { %1021 = vmatpush.msrb.mxu3 %v994_v28  ;;  %v3577_v28 = vld [vmem:[%s6264_s30] ss:$0 sm:$0xff] }
  0x65   : > { %1103 = vmatpush.msra.mxu1 %v1088_v12  ;;  %1061 = vmatpush.msra.mxu0 %v1044_v14 }
  0x66   : > { %1022 = vmatpush.msrb.mxu3 %v993_v31 }
  0x67   : > { %1104 = vmatpush.msra.mxu1 %v1087_v15  ;;  %1062 = vmatpush.msra.mxu0 %v1043_v17  ;;  %v1211_v15 = vld [vmem:[%s6245_s19 + $0x60] sm:$0xff]  ;;  %v1209_v17 = vld [vmem:[%s6245_s19 + $0x50] sm:$0xff] }
  0x68   : > { %1023 = vmatpush.msrb.mxu3 %v992_v34  ;;  %1265 = vmatpush.msra.mxu2 %v1211_v15 }
  0x69   : > { %1105 = vmatpush.msra.mxu1 %v1086_v18  ;;  %1063 = vmatpush.msra.mxu0 %v1042_v20  ;;  %v1208_v18 = vld [vmem:[%s6245_s19 + $0x48] sm:$0xff]  ;;  %v1206_v20 = vld [vmem:[%s6245_s19 + $0x38] sm:$0xff] }
  0x6a   : > { %1024 = vmatpush.msrb.mxu3 %v991_v37  ;;  %1266 = vmatpush.msra.mxu2 %v1210_v16 }
  0x6b   : > { %1106 = vmatpush.msra.mxu1 %v1085_v21  ;;  %1064 = vmatpush.msra.mxu0 %v1041_v23  ;;  %v1205_v21 = vld [vmem:[%s6245_s19 + $0x30] sm:$0xff]  ;;  %v1203_v23 = vld [vmem:[%s6245_s19 + $0x20] sm:$0xff] }
  0x6c   : > { %1025 = vmatpush.msrb.mxu3 %v990_v40  ;;  %1267 = vmatpush.msra.mxu2 %v1209_v17 }
  0x6d   : > { %1107 = vmatpush.msra.mxu1 %v1084_v24  ;;  %1065 = vmatpush.msra.mxu0 %v1040_v26  ;;  %v1202_v24 = vld [vmem:[%s6245_s19 + $0x18] sm:$0xff]  ;;  %v1200_v26 = vld [vmem:[%s6245_s19 + $0x8] sm:$0xff] }
  0x6e   : > { %1268 = vmatpush.msra.mxu2 %v1208_v18 }
  0x6f   : > { %1108 = vmatpush.msra.mxu1 %v1083_v27  ;;  %1066 = vmatpush.msra.mxu0 %v1039_v29  ;;  %v1199_v27 = vld [vmem:[%s6245_s19] sm:$0xff] }
  0x70   : > { %1269 = vmatpush.msra.mxu2 %v1207_v19  ;;  %v3575_v29 = vld [vmem:[%s6232_s6] ss:$0 sm:$0xff] }
  0x71   : > { %1109 = vmatpush.msra.mxu1 %v1082_v30  ;;  %1067 = vmatpush.msra.mxu0 %v1038_v32 }
  0x72   : > { %1270 = vmatpush.msra.mxu2 %v1206_v20 }
  0x73   : > { %1110 = vmatpush.msra.mxu1 %v1081_v33  ;;  %1068 = vmatpush.msra.mxu0 %v1037_v35 }
  0x74   : > { %1271 = vmatpush.msra.mxu2 %v1205_v21 }
  0x75   : > { %1111 = vmatpush.msra.mxu1 %v1080_v36  ;;  %1069 = vmatpush.msra.mxu0 %v1036_v38 }
  0x76   : > { %1272 = vmatpush.msra.mxu2 %v1204_v22 }
  0x77   : > { %1112 = vmatpush.msra.mxu1 %v1079_v39  ;;  %1070 = vmatpush.msra.mxu0 %v1035_v41 }
  0x78   : > { %1273 = vmatpush.msra.mxu2 %v1203_v23 }
  0x79   : > { %1113 = vmatpush.msra.mxu1 %v1078_v42 }
  0x7a   : > { %1274 = vmatpush.msra.mxu2 %v1202_v24 }
  0x7c   : > { %1275 = vmatpush.msra.mxu2 %v1201_v25 }
  0x7e   : > { %1276 = vmatpush.msra.mxu2 %v1200_v26 }
  0x80   : > { %1277 = vmatpush.msra.mxu2 %v1199_v27 }
  0xba   : > { %v714_v43 = vpop.f32.mrf.mxu0 }
  0xbe   : > { %v737_v44 = vpop.f32.mrf.mxu1 }
  0xbf   : > { %v738_v46 = vadd.f32 %v737_v44, %v714_v43 }
  0xc2   : > { %v829_v52 = vpop.f32.mrf.mxu3 }
  0xc7   : > { %v782_v45 = vpop.f32.mrf.mxu2  ;;  %v740_v48 = vpop.f32.mrf.mxu1 }
  0xc8   : > { %v788_v53 = vadd.f32 %v782_v45, %v738_v46 }
  0xca   : > { %v835_v55 = vadd.f32 %v829_v52, %v788_v53 }
  0xcb   : > { %v717_v47 = vpop.f32.mrf.mxu0  ;;  %v832_v61 = vpop.f32.mrf.mxu3 }
  0xcc   : > { %v741_v56 = vadd.f32 %v740_v48, %v717_v47 }
  0xcf   : > { %v785_v54 = vpop.f32.mrf.mxu2 }
  0xd0   : > { %v789_v60 = vadd.f32 %v785_v54, %v741_v56 }
  0xd2   : > { %v836_v1 = vadd.f32 %v832_v61, %v789_v60 }
  0xd3   : > { %v876_v57 = vpop.f32.mrf.mxu0 }
  0xd4   : > { %v882_v58 = vadd.f32 %v876_v57, %v835_v55 }
  0xd5   : > { %v923_v59 = vpop.f32.mrf.mxu1 }
  0xd6   : > { %v929_v62 = vadd.f32 %v923_v59, %v882_v58 }
  0xda   : > { %v970_v0 = vpop.f32.mrf.mxu2 }
  0xdb   : > { %v976_v2 = vadd.f32 %v970_v0, %v929_v62  ;;  %v879_v3 = vpop.f32.mrf.mxu0 }
  0xdc   : > { %v883_v5 = vadd.f32 %v879_v3, %v836_v1 }
  0xdd   : > { %v982_v4 = vadd.f32 %v3574_v63, %v976_v2  ;;  %v926_v6 = vpop.f32.mrf.mxu1 }
  0xde   : > { %v930_v8 = vadd.f32 %v926_v6, %v883_v5 }
  0xdf   : > { %vm984_vm0 = vcmp.gt.f32.partialorder %v982_v4, 0.0  ;;  %v986_v7 = vmul.f32 0.1, %v982_v4 }
  0xe1   : > { %v4119_v9 = vsel %vm984_vm0, %v982_v4, %v986_v7 }
  0xe2   : > { %v973_v10 = vpop.f32.mrf.mxu2  ;;  %1026 = vmatmul.f32.vlgmr.msrb.gmra.mxu3 %v4119_v9  ;;  %1071 = vmatmul.f32.vlgmr.msra.gmra.mxu0 %v4119_v9 }
  0xe3   : > { %v977_v11 = vadd.f32 %v973_v10, %v930_v8  ;;  %1114 = vmatmul.f32.vlgmr.msra.gmra.mxu1 %v4119_v9 }
  0xe5   : > { %v983_v12 = vadd.f32 %v3574_v63, %v977_v11 }
  0xe7   : > { %vm985_vm1 = vcmp.gt.f32.partialorder %v983_v12, 0.0  ;;  %v987_v13 = vmul.f32 0.1, %v983_v12 }
  0xe9   : > { %v4124_v14 = vsel %vm985_vm1, %v983_v12, %v987_v13 }
  0xea   : > { %1029 = vmatmul.f32.gmra.mxu3 %v4124_v14  ;;  %1074 = vmatmul.f32.gmra.mxu0 %v4124_v14 }
  0xeb   : > { %1117 = vmatmul.f32.gmra.mxu1 %v4124_v14 }
 0x15f   : > { %v1072_v30 = vpop.f32.mrf.mxu0 }
 0x160   : > { %v1073_v33 = vadd.f32 %v3575_v29, %v1072_v30 }
 0x162   : > { %v1139_v36 = vrot.slane %v1073_v33, 2  ;;  %v1140_v37 = vrot.slane %v1073_v33, 4  ;;  %v1141_v56 = vrot.slane %v1073_v33, 6 }
 0x165   : > { %v1027_v31 = vpop.f32.mrf.mxu3 }
 0x166   : > { %v1028_v32 = vadd.f32 %v3577_v28, %v1027_v31 }
 0x167   : > { %v1075_v57 = vpop.f32.mrf.mxu0 }
 0x168   : > { %v1033_v34 = vmul.f32 0.5, %v1028_v32  ;;  %v1076_v3 = vadd.f32 %v3575_v29, %v1075_v57 }
 0x16a   : > { %v1123_v35 = vrot.slane %v1033_v34, 1  ;;  %v1124_v38 = vrot.slane %v1033_v34, 2  ;;  %v1125_v39 = vrot.slane %v1033_v34, 3  ;;  %v1151_v40 = vperm.slane %v1033_v34, 0 }
 0x16b   : > { %v1126_v42 = vrot.slane %v1033_v34, 4  ;;  %v1127_v45 = vrot.slane %v1033_v34, 5  ;;  %v1128_v46 = vrot.slane %v1033_v34, 6  ;;  %v1129_v47 = vrot.slane %v1033_v34, 7  ;;  %v1115_v34 = vpop.f32.mrf.mxu1 }
 0x16c   : > { %v1152_v41 = vperm.slane %v1123_v35, 0  ;;  %v1153_v44 = vperm.slane %v1124_v38, 0  ;;  %v1154_v49 = vperm.slane %v1125_v39, 0  ;;  %v1183_v50 = vmul.f32 %v1151_v40, %v1073_v33  ;;  %v3576_v35 = vld [vmem:[%s6234_s8] ss:$0 sm:$0xff] }
 0x16d   : > { %v1030_v43 = vpop.f32.mrf.mxu3  ;;  %v1155_v53 = vperm.slane %v1126_v42, 0  ;;  %v1156_v54 = vperm.slane %v1127_v45, 0  ;;  %v1157_v55 = vperm.slane %v1128_v46, 0  ;;  %v1158_v60 = vperm.slane %v1129_v47, 0 }
 0x16e   : > { %v1031_v48 = vadd.f32 %v3577_v28, %v1030_v43  ;;  %v1184_v51 = vmul.f32 %v1152_v41, %v1073_v33  ;;  %v1185_v52 = vmul.f32 %v1153_v44, %v1139_v36  ;;  %v1186_v59 = vmul.f32 %v1154_v49, %v1139_v36  ;;  %1231 = vst [vmem:[#allocation1] ss:$4 sm:$0xff] %v1183_v50 }
 0x16f   : > { %v1187_v61 = vmul.f32 %v1155_v53, %v1140_v37  ;;  %v1188_v62 = vmul.f32 %v1156_v54, %v1140_v37  ;;  %v1189_v2 = vmul.f32 %v1157_v55, %v1141_v56  ;;  %v1190_v12 = vmul.f32 %v1158_v60, %v1141_v56 }
 0x170   : > { %v1034_v58 = vmul.f32 0.5, %v1031_v48  ;;  %1233 = vst [vmem:[#allocation1 + $0x1] ss:$4 sm:$0xff] %v1184_v51  ;;  %v1142_v13 = vrot.slane %v1076_v3, 2  ;;  %v1143_v21 = vrot.slane %v1076_v3, 4  ;;  %v1144_v26 = vrot.slane %v1076_v3, 6 }
 0x171   : > { %1235 = vst [vmem:[#allocation1 + $0x2] ss:$4 sm:$0xff] %v1185_v52  ;;  %v4177_v36 = vadd.f32 %v3576_v35, %v1115_v34 }
 0x172   : > { %v1130_v63 = vrot.slane %v1034_v58, 1  ;;  %v1131_v0 = vrot.slane %v1034_v58, 2  ;;  %v1132_v1 = vrot.slane %v1034_v58, 3  ;;  %1237 = vst [vmem:[#allocation1 + $0x3] ss:$4 sm:$0xff] %v1186_v59  ;;  %v1133_v5 = vrot.slane %v1034_v58, 4 }
 0x173   : > { %1239 = vst [vmem:[#allocation1 + $0x20] ss:$4 sm:$0xff] %v1187_v61  ;;  %v1159_v6 = vperm.slane %v1034_v58, 0  ;;  %v1134_v8 = vrot.slane %v1034_v58, 5  ;;  %v1135_v11 = vrot.slane %v1034_v58, 6  ;;  %v1136_v15 = vrot.slane %v1034_v58, 7  ;;  %v1118_v37 = vpop.f32.mrf.mxu1 }
 0x174   : > { %v1160_v4 = vperm.slane %v1130_v63, 0  ;;  %v1161_v7 = vperm.slane %v1131_v0, 0  ;;  %1241 = vst [vmem:[#allocation1 + $0x21] ss:$4 sm:$0xff] %v1188_v62  ;;  %v1162_v10 = vperm.slane %v1132_v1, 0  ;;  %v1163_v17 = vperm.slane %v1133_v5, 0 }
 0x175   : > { %1243 = vst [vmem:[#allocation1 + $0x22] ss:$4 sm:$0xff] %v1189_v2  ;;  %v1191_v18 = vmul.f32 %v1159_v6, %v1076_v3  ;;  %v1164_v20 = vperm.slane %v1134_v8, 0  ;;  %v1165_v24 = vperm.slane %v1135_v11, 0  ;;  %v1166_v25 = vperm.slane %v1136_v15, 0 }
 0x176   : > { %v1192_v16 = vmul.f32 %v1160_v4, %v1076_v3  ;;  %1245 = vst [vmem:[#allocation1 + $0x23] ss:$4 sm:$0xff] %v1190_v12  ;;  %v1193_v19 = vmul.f32 %v1161_v7, %v1142_v13  ;;  %v1194_v22 = vmul.f32 %v1162_v10, %v1142_v13  ;;  %v1195_v27 = vmul.f32 %v1163_v17, %v1143_v21 }
 0x177   : > { %v1196_v28 = vmul.f32 %v1164_v20, %v1143_v21  ;;  %v1197_v29 = vmul.f32 %v1165_v24, %v1144_v26  ;;  %v1198_v30 = vmul.f32 %v1166_v25, %v1144_v26  ;;  %v4180_v44 = vadd.f32 %v3576_v35, %v1118_v37 }
 0x178   : > { %v1626_v52 = vrot.slane %v4177_v36, 2  ;;  %v1627_v57 = vrot.slane %v4177_v36, 4  ;;  %v1628_v58 = vrot.slane %v4177_v36, 6 }
 0x179   : > { %v1246_v23 = vld.sshfl [vmem:[#allocation1] sm:$0xff pattern:$0x73625140]  ;;  %v1629_v59 = vrot.slane %v4180_v44, 2  ;;  %v1630_v60 = vrot.slane %v4180_v44, 4 }
 0x17a   : > { %1248 = vst [vmem:[#allocation1] ss:$4 sm:$0xff] %v1191_v18  ;;  %1278 = vmatmul.f32.vlgmr.msra.gmra.mxu2 %v1246_v23 }
 0x17b   : > { %1249 = vst [vmem:[#allocation1 + $0x1] ss:$4 sm:$0xff] %v1192_v16 }
 0x17c   : > { %1250 = vst [vmem:[#allocation1 + $0x2] ss:$4 sm:$0xff] %v1193_v19 }
 0x17d   : > { %1251 = vst [vmem:[#allocation1 + $0x3] ss:$4 sm:$0xff] %v1194_v22  ;;  %v1247_v31 = vld.sshfl [vmem:[#allocation1 + $0x20] sm:$0xff pattern:$0x73625140] }
 0x17e   : > { %1252 = vst [vmem:[#allocation1 + $0x20] ss:$4 sm:$0xff] %v1195_v27 }
 0x17f   : > { %1253 = vst [vmem:[#allocation1 + $0x21] ss:$4 sm:$0xff] %v1196_v28 }
 0x180   : > { %1254 = vst [vmem:[#allocation1 + $0x22] ss:$4 sm:$0xff] %v1197_v29 }
 0x181   : > { %1255 = vst [vmem:[#allocation1 + $0x23] ss:$4 sm:$0xff] %v1198_v30 }
 0x182   : > { %1281 = vmatmul.f32.gmra.mxu2 %v1247_v31 }
 0x184   : > { %v1256_v32 = vld.sshfl [vmem:[#allocation1] sm:$0xff pattern:$0x73625140] }
 0x188   : > { %v1257_v33 = vld.sshfl [vmem:[#allocation1 + $0x20] sm:$0xff pattern:$0x73625140] }
 0x18a   : > { %1284 = vmatmul.f32.gmra.mxu2 %v1256_v32 }
 0x192   : > { %1287 = vmatmul.f32.gmra.mxu2 %v1257_v33 }
 0x1fd   : > { %v1279_v38 = vpop.f32.mrf.mxu2 }
 0x1fe   : > { %v1295_v39 = vrot.slane %v1279_v38, 2  ;;  %v1296_v40 = vrot.slane %v1279_v38, 4  ;;  %v1297_v41 = vrot.slane %v1279_v38, 6  ;;  %v1320_v42 = vsel %vm1319_vm2, %v1279_v38, -inf }
 0x1ff   : > { %v1321_v43 = vrot.slane %v1320_v42, 4 }
 0x200   : > { %v1327_v45 = vsel %vm1319_vm2, %v1295_v39, -inf  ;;  %v1334_v46 = vsel %vm1319_vm2, %v1296_v40, -inf  ;;  %v1341_v47 = vsel %vm1319_vm2, %v1297_v41, -inf }
 0x201   : > { %v1322_v48 = vmax.f32 %v1320_v42, %v1321_v43  ;;  %v1328_v49 = vrot.slane %v1327_v45, 4  ;;  %v1335_v50 = vrot.slane %v1334_v46, 4  ;;  %v1342_v51 = vrot.slane %v1341_v47, 4 }
 0x203   : > { %v1323_v53 = vrot.slane %v1322_v48, 2  ;;  %v1329_v54 = vmax.f32 %v1327_v45, %v1328_v49  ;;  %v1336_v55 = vmax.f32 %v1334_v46, %v1335_v50  ;;  %v1343_v56 = vmax.f32 %v1341_v47, %v1342_v51 }
 0x205   : > { %v1324_v61 = vmax.f32 %v1322_v48, %v1323_v53  ;;  %v1330_v62 = vrot.slane %v1329_v54, 2  ;;  %v1337_v63 = vrot.slane %v1336_v55, 2  ;;  %v1344_v0 = vrot.slane %v1343_v56, 2  ;;  %v4190_v1 = vpop.f32.mrf.mxu2 }
 0x206   : > { %v1298_v2 = vrot.slane %v4190_v1, 2  ;;  %v1299_v3 = vrot.slane %v4190_v1, 4  ;;  %v1300_v4 = vrot.slane %v4190_v1, 6  ;;  %v1348_v5 = vsel %vm1319_vm2, %v4190_v1, -inf }
 0x207   : > { %v1325_v6 = vrot.slane %v1324_v61, 1  ;;  %v1331_v7 = vmax.f32 %v1329_v54, %v1330_v62  ;;  %v1338_v8 = vmax.f32 %v1336_v55, %v1337_v63  ;;  %v1345_v10 = vmax.f32 %v1343_v56, %v1344_v0 }
 0x208   : > { %v1349_v11 = vrot.slane %v1348_v5, 4  ;;  %v1355_v12 = vsel %vm1319_vm2, %v1298_v2, -inf  ;;  %v1362_v13 = vsel %vm1319_vm2, %v1299_v3, -inf  ;;  %v1369_v15 = vsel %vm1319_vm2, %v1300_v4, -inf }
 0x209   : > { %v1326_v16 = vmax.f32 %v1324_v61, %v1325_v6  ;;  %v1332_v17 = vrot.slane %v1331_v7, 1  ;;  %v1339_v18 = vrot.slane %v1338_v8, 1  ;;  %v1346_v19 = vrot.slane %v1345_v10, 1 }
 0x20a   : > { %v1350_v20 = vmax.f32 %v1348_v5, %v1349_v11  ;;  %v1356_v21 = vrot.slane %v1355_v12, 4  ;;  %v1363_v22 = vrot.slane %v1362_v13, 4  ;;  %v1370_v23 = vrot.slane %v1369_v15, 4 }
 0x20b   : > { %v1333_v24 = vmax.f32 %v1331_v7, %v1332_v17  ;;  %v1340_v25 = vmax.f32 %v1338_v8, %v1339_v18  ;;  %v1347_v26 = vmax.f32 %v1345_v10, %v1346_v19  ;;  %v1432_v27 = vsub.f32 %v1279_v38, %v1326_v16 }
 0x20c   : > { %v1351_v28 = vrot.slane %v1350_v20, 2  ;;  %v1357_v29 = vmax.f32 %v1355_v12, %v1356_v21  ;;  %v1364_v30 = vmax.f32 %v1362_v13, %v1363_v22  ;;  %v1371_v31 = vmax.f32 %v1369_v15, %v1370_v23 }
 0x20d   : > { %v1433_v32 = vsub.f32 %v1295_v39, %v1333_v24  ;;  %v1434_v33 = vsub.f32 %v1296_v40, %v1340_v25  ;;  %v1435_v34 = vsub.f32 %v1297_v41, %v1347_v26  ;;  %v1448_v35 = vmul.f32 1.442695, %v1432_v27  ;;  %v4206_v46 = vpop.f32.mrf.mxu2 }
 0x20e   : > { %v1352_v37 = vmax.f32 %v1350_v20, %v1351_v28  ;;  %v1358_v42 = vrot.slane %v1357_v29, 2  ;;  %v1365_v43 = vrot.slane %v1364_v30, 2  ;;  %v1372_v45 = vrot.slane %v1371_v31, 2 }
 0x20f   : > { %3584 = vpow2.f32 %v1448_v35  ;;  %v1450_v47 = vmul.f32 1.442695, %v1433_v32  ;;  %v1452_v48 = vmul.f32 1.442695, %v1434_v33  ;;  %v1454_v49 = vmul.f32 1.442695, %v1435_v34 }
 0x210   : > { %v1353_v50 = vrot.slane %v1352_v37, 1  ;;  %v1359_v38 = vmax.f32 %v1357_v29, %v1358_v42  ;;  %v1366_v51 = vmax.f32 %v1364_v30, %v1365_v43  ;;  %v1373_v53 = vmax.f32 %v1371_v31, %v1372_v45 }
 0x211   : > { %3586 = vpow2.f32 %v1450_v47  ;;  %v1301_v39 = vrot.slane %v4206_v46, 2  ;;  %v1302_v40 = vrot.slane %v4206_v46, 4  ;;  %v1303_v41 = vrot.slane %v4206_v46, 6 }
 0x212   : > { %3588 = vpow2.f32 %v1452_v48  ;;  %v1354_v54 = vmax.f32 %v1352_v37, %v1353_v50  ;;  %v1360_v55 = vrot.slane %v1359_v38, 1  ;;  %v1367_v56 = vrot.slane %v1366_v51, 1 }
 0x213   : > { %3590 = vpow2.f32 %v1454_v49  ;;  %v1374_v61 = vrot.slane %v1373_v53, 1  ;;  %v1376_v62 = vsel %vm1319_vm2, %v4206_v46, -inf  ;;  %v1383_v63 = vsel %vm1319_vm2, %v1301_v39, -inf }
 0x214   : > { %v1361_v0 = vmax.f32 %v1359_v38, %v1360_v55  ;;  %v1368_v5 = vmax.f32 %v1366_v51, %v1367_v56  ;;  %v1436_v6 = vsub.f32 %v4190_v1, %v1354_v54  ;;  %v1377_v7 = vrot.slane %v1376_v62, 4 }
 0x215   : > { %v4217_v8 = vpop.eup %3584  ;;  %v1375_v10 = vmax.f32 %v1373_v53, %v1374_v61  ;;  %v1384_v11 = vrot.slane %v1383_v63, 4  ;;  %v4222_v12 = vsel %vm1319_vm2, %v1302_v40, -inf  ;;  %v4227_v13 = vsel %vm1319_vm2, %v1303_v41, -inf }
 0x216   : > { %v1480_v15 = vsel %vm1319_vm2, %v4217_v8, 0.0  ;;  %v1437_v16 = vsub.f32 %v1298_v2, %v1361_v0  ;;  %v1438_v17 = vsub.f32 %v1299_v3, %v1368_v5  ;;  %v1456_v18 = vmul.f32 1.442695, %v1436_v6 }
 0x217   : > { %v4235_v19 = vpop.eup %3586  ;;  %v1481_v20 = vrot.slane %v1480_v15, 4  ;;  %v1439_v21 = vsub.f32 %v1300_v4, %v1375_v10  ;;  %v1378_v22 = vmax.f32 %v1376_v62, %v1377_v7  ;;  %v1385_v23 = vmax.f32 %v1383_v63, %v1384_v11 }
 0x218   : > { %v4239_v24 = vpop.eup %3588  ;;  %v1487_v25 = vsel %vm1319_vm2, %v4235_v19, 0.0  ;;  %3592 = vpow2.f32 %v1456_v18  ;;  %v1458_v26 = vmul.f32 1.442695, %v1437_v16  ;;  %v1460_v2 = vmul.f32 1.442695, %v1438_v17 }
 0x219   : > { %v4243_v27 = vpop.eup %3590  ;;  %v1482_v3 = vadd.f32 %v1481_v20, %v1480_v15  ;;  %v1488_v28 = vrot.slane %v1487_v25, 4  ;;  %v1494_v29 = vsel %vm1319_vm2, %v4239_v24, 0.0  ;;  %v1462_v30 = vmul.f32 1.442695, %v1439_v21 }
 0x21a   : > { %v1495_v1 = vrot.slane %v1494_v29, 4  ;;  %v1501_v4 = vsel %vm1319_vm2, %v4243_v27, 0.0  ;;  %3594 = vpow2.f32 %v1458_v26  ;;  %v1379_v31 = vrot.slane %v1378_v22, 2 }
 0x21b   : > { %v1483_v32 = vrot.slane %v1482_v3, 2  ;;  %v1489_v33 = vadd.f32 %v1488_v28, %v1487_v25  ;;  %v1502_v34 = vrot.slane %v1501_v4, 4  ;;  %3596 = vpow2.f32 %v1460_v2 }
 0x21c   : > { %v1496_v35 = vadd.f32 %v1495_v1, %v1494_v29  ;;  %3598 = vpow2.f32 %v1462_v30  ;;  %v1380_v37 = vmax.f32 %v1378_v22, %v1379_v31  ;;  %v1386_v42 = vrot.slane %v1385_v23, 2 }
 0x21d   : > { %v1484_v43 = vadd.f32 %v1483_v32, %v1482_v3  ;;  %v1490_v45 = vrot.slane %v1489_v33, 2  ;;  %v1503_v47 = vadd.f32 %v1502_v34, %v1501_v4  ;;  %v1391_v48 = vrot.slane %v4222_v12, 4 }
 0x21e   : > { %v4250_v49 = vpop.eup %3592  ;;  %v1497_v50 = vrot.slane %v1496_v35, 2  ;;  %v1381_v38 = vrot.slane %v1380_v37, 1  ;;  %v1387_v51 = vmax.f32 %v1385_v23, %v1386_v42  ;;  %v1398_v53 = vrot.slane %v4227_v13, 4 }
 0x21f   : > { %v1485_v54 = vrot.slane %v1484_v43, 1  ;;  %v1491_v55 = vadd.f32 %v1490_v45, %v1489_v33  ;;  %v1504_v56 = vrot.slane %v1503_v47, 2  ;;  %v1508_v61 = vsel %vm1319_vm2, %v4250_v49, 0.0 }
 0x220   : > { %v4255_v62 = vpop.eup %3594  ;;  %v1498_v63 = vadd.f32 %v1497_v50, %v1496_v35  ;;  %v1509_v0 = vrot.slane %v1508_v61, 4  ;;  %v1382_v5 = vmax.f32 %v1380_v37, %v1381_v38  ;;  %v1388_v6 = vrot.slane %v1387_v51, 1 }
 0x221   : > { %v4257_v7 = vpop.eup %3596  ;;  %v1486_v10 = vadd.f32 %v1485_v54, %v1484_v43  ;;  %v1492_v11 = vrot.slane %v1491_v55, 1  ;;  %v1505_v15 = vadd.f32 %v1504_v56, %v1503_v47  ;;  %v1515_v16 = vsel %vm1319_vm2, %v4255_v62, 0.0 }
 0x222   : > { %v4261_v17 = vpop.eup %3598  ;;  %v1499_v18 = vrot.slane %v1498_v63, 1  ;;  %v1510_v20 = vadd.f32 %v1509_v0, %v1508_v61  ;;  %v1516_v21 = vrot.slane %v1515_v16, 4  ;;  %v1522_v22 = vsel %vm1319_vm2, %v4257_v7, 0.0 }
 0x223   : > { %v1493_v23 = vadd.f32 %v1492_v11, %v1491_v55  ;;  %v1506_v25 = vrot.slane %v1505_v15, 1  ;;  %3600 = vrcp.f32 %v1486_v10  ;;  %v1523_v26 = vrot.slane %v1522_v22, 4 }
 0x224   : > { %v1500_v2 = vadd.f32 %v1499_v18, %v1498_v63  ;;  %v1511_v3 = vrot.slane %v1510_v20, 2  ;;  %v1517_v28 = vadd.f32 %v1516_v21, %v1515_v16  ;;  %v1529_v29 = vsel %vm1319_vm2, %v4261_v17, 0.0 }
 0x225   : > { %v1507_v30 = vadd.f32 %v1506_v25, %v1505_v15  ;;  %3602 = vrcp.f32 %v1493_v23  ;;  %v1524_v1 = vadd.f32 %v1523_v26, %v1522_v22  ;;  %v1530_v4 = vrot.slane %v1529_v29, 4  ;;  %v1780_v25 = vld [vmem:[%s6235_s9 + $0x70] sm:$0xff] }
 0x226   : > { %3604 = vrcp.f32 %v1500_v2  ;;  %v1512_v31 = vadd.f32 %v1511_v3, %v1510_v20  ;;  %v1518_v32 = vrot.slane %v1517_v28, 2  ;;  %v1389_v33 = vmax.f32 %v1387_v51, %v1388_v6 }
 0x227   : > { %3606 = vrcp.f32 %v1507_v30  ;;  %v1525_v34 = vrot.slane %v1524_v1, 2  ;;  %v1531_v35 = vadd.f32 %v1530_v4, %v1529_v29  ;;  %v1392_v37 = vmax.f32 %v4222_v12, %v1391_v48  ;;  %v4292_v30 = vpop.f32.mrf.mxu2 }
 0x228   : > { %v1513_v42 = vrot.slane %v1512_v31, 1  ;;  %v1519_v43 = vadd.f32 %v1518_v32, %v1517_v28  ;;  %v1399_v45 = vmax.f32 %v4227_v13, %v1398_v53  ;;  %v1440_v47 = vsub.f32 %v4206_v46, %v1382_v5 }
 0x229   : > { %v3601_v50 = vpop.eup %3600  ;;  %v1526_v38 = vadd.f32 %v1525_v34, %v1524_v1  ;;  %v1532_v54 = vrot.slane %v1531_v35, 2  ;;  %v1393_v55 = vrot.slane %v1392_v37, 2  ;;  %v1441_v56 = vsub.f32 %v1301_v39, %v1389_v33  ;;  %v1781_v39 = vld [vmem:[%s6235_s9 + $0x78] sm:$0xff]  ;;  %v1779_v1 = vld [vmem:[%s6235_s9 + $0x68] sm:$0xff] }
 0x22a   : > { %v1608_v51 = vmul.f32 %v3601_v50, %v4217_v8  ;;  %v1514_v61 = vadd.f32 %v1513_v42, %v1512_v31  ;;  %v1520_v63 = vrot.slane %v1519_v43, 1  ;;  %v1400_v0 = vrot.slane %v1399_v45, 2  ;;  %1825 = vmatpush.msra.mxu3 %v1781_v39  ;;  %v1778_v42 = vld [vmem:[%s6235_s9 + $0x60] sm:$0xff] }
 0x22b   : > { %v3603_v6 = vpop.eup %3602  ;;  %v1527_v12 = vrot.slane %v1526_v38, 1  ;;  %v1533_v48 = vadd.f32 %v1532_v54, %v1531_v35  ;;  %v1394_v10 = vmax.f32 %v1392_v37, %v1393_v55  ;;  %v1464_v11 = vmul.f32 1.442695, %v1440_v47 }
 0x22c   : > { %v3605_v13 = vpop.eup %3604  ;;  %v1609_v53 = vmul.f32 %v3603_v6, %v4235_v19  ;;  %v1638_v5 = vmul.f32 %v1608_v51, %v4177_v36  ;;  %v1521_v15 = vadd.f32 %v1520_v63, %v1519_v43  ;;  %3608 = vrcp.f32 %v1514_v61  ;;  %1826 = vmatpush.msra.mxu3 %v1780_v25 }
 0x22d   : > { %v3607_v8 = vpop.eup %3606  ;;  %v1610_v16 = vmul.f32 %v3605_v13, %v4239_v24  ;;  %v1528_v18 = vadd.f32 %v1527_v12, %v1526_v38  ;;  %v1534_v20 = vrot.slane %v1533_v48, 1  ;;  %v1395_v21 = vrot.slane %v1394_v10, 1 }
 0x22e   : > { %v1611_v22 = vmul.f32 %v3607_v8, %v4243_v27  ;;  %v1639_v23 = vmul.f32 %v1609_v53, %v4177_v36  ;;  %v1654_v19 = vsel %vm1319_vm2, %v1638_v5, 0.0  ;;  %3610 = vrcp.f32 %v1521_v15  ;;  %1827 = vmatpush.msra.mxu3 %v1779_v1  ;;  %v1775_v15 = vld [vmem:[%s6235_s9 + $0x48] sm:$0xff] }
 0x22f   : > { %v1640_v26 = vmul.f32 %v1626_v52, %v1610_v16  ;;  %v1655_v2 = vrot.slane %v1654_v19, 4  ;;  %v1535_v24 = vadd.f32 %v1534_v20, %v1533_v48  ;;  %3612 = vrcp.f32 %v1528_v18 }
 0x230   : > { %v4289_v3 = vmul.f32 %v1626_v52, %v1611_v22  ;;  %v1661_v27 = vsel %vm1319_vm2, %v1639_v23, 0.0  ;;  %v1396_v28 = vmax.f32 %v1394_v10, %v1395_v21  ;;  %v1401_v29 = vmax.f32 %v1399_v45, %v1400_v0  ;;  %1828 = vmatpush.msra.mxu3 %v1778_v42  ;;  %v1774_v23 = vld [vmem:[%s6235_s9 + $0x40] sm:$0xff] }
 0x231   : > { %v1656_v4 = vadd.f32 %v1655_v2, %v1654_v19  ;;  %v1662_v31 = vrot.slane %v1661_v27, 4  ;;  %v4298_v32 = vsel %vm1319_vm2, %v1640_v26, 0.0  ;;  %3614 = vpow2.f32 %v1464_v11 }
 0x232   : > { %v3609_v33 = vpop.eup %3608  ;;  %v1669_v52 = vrot.slane %v4298_v32, 4  ;;  %v1402_v34 = vrot.slane %v1401_v29, 1  ;;  %v1442_v35 = vsub.f32 %v1302_v40, %v1396_v28  ;;  %v1466_v37 = vmul.f32 1.442695, %v1441_v56  ;;  %v1777_v40 = vld [vmem:[%s6235_s9 + $0x58] sm:$0xff] }
 0x233   : > { %v1657_v43 = vrot.slane %v1656_v4, 2  ;;  %v4306_v45 = vadd.f32 %v1662_v31, %v1661_v27  ;;  %v1612_v47 = vmul.f32 %v3609_v33, %v4250_v49  ;;  %v1304_v50 = vrot.slane %v4292_v30, 2  ;;  %1829 = vmatpush.msra.mxu3 %v1777_v40 }
 0x234   : > { %v3611_v38 = vpop.eup %3610  ;;  %v1403_v54 = vmax.f32 %v1401_v29, %v1402_v34  ;;  %3616 = vpow2.f32 %v1466_v37  ;;  %v1468_v55 = vmul.f32 1.442695, %v1442_v35  ;;  %v1305_v51 = vrot.slane %v4292_v30, 4 }
 0x235   : > { %v3613_v56 = vpop.eup %3612  ;;  %v1613_v61 = vmul.f32 %v3611_v38, %v4255_v62  ;;  %v4317_v63 = vmul.f32 %v1627_v57, %v1612_v47  ;;  %v1306_v49 = vrot.slane %v4292_v30, 6  ;;  %v1404_v0 = vsel %vm1319_vm2, %v4292_v30, -inf  ;;  %v1776_v62 = vld [vmem:[%s6235_s9 + $0x50] sm:$0xff] }
 0x236   : > { %v1614_v6 = vmul.f32 %v3613_v56, %v4257_v7  ;;  %v1443_v12 = vsub.f32 %v1303_v41, %v1403_v54  ;;  %3618 = vpow2.f32 %v1468_v55  ;;  %v1405_v48 = vrot.slane %v1404_v0, 4  ;;  %1830 = vmatpush.msra.mxu3 %v1776_v62  ;;  %v1772_v54 = vld [vmem:[%s6235_s9 + $0x30] sm:$0xff] }
 0x237   : > { %v4328_v10 = vpop.eup %3614  ;;  %v1411_v11 = vsel %vm1319_vm2, %v1304_v50, -inf  ;;  %v1418_v13 = vsel %vm1319_vm2, %v1305_v51, -inf  ;;  %v1425_v46 = vsel %vm1319_vm2, %v1306_v49, -inf  ;;  %3620 = vrcp.f32 %v1535_v24 }
 0x238   : > { %v1470_v41 = vmul.f32 1.442695, %v1443_v12  ;;  %v1536_v7 = vsel %vm1319_vm2, %v4328_v10, 0.0  ;;  %v1406_v53 = vmax.f32 %v1404_v0, %v1405_v48  ;;  %v1412_v5 = vrot.slane %v1411_v11, 4  ;;  %1831 = vmatpush.msra.mxu3 %v1775_v15 }
 0x239   : > { %v1537_v39 = vrot.slane %v1536_v7, 4  ;;  %v1419_v8 = vrot.slane %v1418_v13, 4  ;;  %v1426_v16 = vrot.slane %v1425_v46, 4  ;;  %v4344_v18 = vadd.f32 %v1657_v43, %v1656_v4  ;;  %v1773_v4 = vld [vmem:[%s6235_s9 + $0x38] sm:$0xff] }
 0x23a   : > { %v4346_v20 = vpop.eup %3616  ;;  %3622 = vpow2.f32 %v1470_v41  ;;  %v1407_v21 = vrot.slane %v1406_v53, 2  ;;  %v1413_v22 = vmax.f32 %v1411_v11, %v1412_v5  ;;  %v4353_v19 = vmul.f32 %v1627_v57, %v1613_v61  ;;  %1832 = vmatpush.msra.mxu3 %v1774_v23  ;;  %v1771_v11 = vld [vmem:[%s6235_s9 + $0x28] sm:$0xff] }
 0x23b   : > { %v1538_v25 = vadd.f32 %v1537_v39, %v1536_v7  ;;  %v1543_v26 = vsel %vm1319_vm2, %v4346_v20, 0.0  ;;  %v1420_v2 = vmax.f32 %v1418_v13, %v1419_v8  ;;  %v1427_v24 = vmax.f32 %v1425_v46, %v1426_v16  ;;  %v1770_v39 = vld [vmem:[%s6235_s9 + $0x20] sm:$0xff] }
 0x23c   : > { %v4357_v27 = vpop.eup %3618  ;;  %v1544_v28 = vrot.slane %v1543_v26, 4  ;;  %v1408_v29 = vmax.f32 %v1406_v53, %v1407_v21  ;;  %v1414_v1 = vrot.slane %v1413_v22, 2  ;;  %v4364_v57 = vmul.f32 %v1628_v58, %v1614_v6  ;;  %1833 = vmatpush.msra.mxu3 %v1773_v4 }
 0x23d   : > { %v3621_v31 = vpop.eup %3620  ;;  %v1539_v33 = vrot.slane %v1538_v25, 2  ;;  %v1550_v34 = vsel %vm1319_vm2, %v4357_v27, 0.0  ;;  %v1421_v35 = vrot.slane %v1420_v2, 2  ;;  %v1428_v37 = vrot.slane %v1427_v24, 2 }
 0x23e   : > { %v1545_v42 = vadd.f32 %v1544_v28, %v1543_v26  ;;  %v1551_v43 = vrot.slane %v1550_v34, 4  ;;  %v1409_v47 = vrot.slane %v1408_v29, 1  ;;  %v1415_v38 = vmax.f32 %v1413_v22, %v1414_v1  ;;  %1834 = vmatpush.msra.mxu3 %v1772_v54  ;;  %v1768_v28 = vld [vmem:[%s6235_s9 + $0x10] sm:$0xff] }
 0x23f   : > { %v1540_v55 = vadd.f32 %v1539_v33, %v1538_v25  ;;  %v1422_v40 = vmax.f32 %v1420_v2, %v1421_v35  ;;  %v1429_v56 = vmax.f32 %v1427_v24, %v1428_v37  ;;  %v1615_v61 = vmul.f32 %v3621_v31, %v4261_v17  ;;  %v1769_v24 = vld [vmem:[%s6235_s9 + $0x18] sm:$0xff]  ;;  %v1767_v35 = vld [vmem:[%s6235_s9 + $0x8] sm:$0xff] }
 0x240   : > { %v4372_v0 = vpop.eup %3622  ;;  %v1546_v6 = vrot.slane %v1545_v42, 2  ;;  %v1552_v12 = vadd.f32 %v1551_v43, %v1550_v34  ;;  %v1410_v48 = vmax.f32 %v1408_v29, %v1409_v47  ;;  %v1416_v62 = vrot.slane %v1415_v38, 1  ;;  %1835 = vmatpush.msra.mxu3 %v1771_v11  ;;  %v1766_v43 = vld [vmem:[%s6235_s9] sm:$0xff] }
 0x241   : > { %v1541_v13 = vrot.slane %v1540_v55, 1  ;;  %v1557_v46 = vsel %vm1319_vm2, %v4372_v0, 0.0  ;;  %v1423_v41 = vrot.slane %v1422_v40, 1  ;;  %v1430_v7 = vrot.slane %v1429_v56, 1 }
 0x242   : > { %v1547_v53 = vadd.f32 %v1546_v6, %v1545_v42  ;;  %v1553_v5 = vrot.slane %v1552_v12, 2  ;;  %v1558_v17 = vrot.slane %v1557_v46, 4  ;;  %v1417_v15 = vmax.f32 %v1415_v38, %v1416_v62  ;;  %1836 = vmatpush.msra.mxu3 %v1770_v39 }
 0x243   : > { %v1542_v8 = vadd.f32 %v1541_v13, %v1540_v55  ;;  %v1424_v16 = vmax.f32 %v1422_v40, %v1423_v41  ;;  %v1431_v21 = vmax.f32 %v1429_v56, %v1430_v7  ;;  %v1444_v22 = vsub.f32 %v4292_v30, %v1410_v48 }
 0x244   : > { %v1548_v23 = vrot.slane %v1547_v53, 1  ;;  %v1554_v25 = vadd.f32 %v1553_v5, %v1552_v12  ;;  %v1559_v26 = vadd.f32 %v1558_v17, %v1557_v46  ;;  %v1445_v2 = vsub.f32 %v1304_v50, %v1417_v15  ;;  %1837 = vmatpush.msra.mxu3 %v1769_v24 }
 0x245   : > { %3624 = vrcp.f32 %v1542_v8  ;;  %v1446_v29 = vsub.f32 %v1305_v51, %v1424_v16  ;;  %v1447_v1 = vsub.f32 %v1306_v49, %v1431_v21  ;;  %v1472_v4 = vmul.f32 1.442695, %v1444_v22 }
 0x246   : > { %v1549_v31 = vadd.f32 %v1548_v23, %v1547_v53  ;;  %v1555_v33 = vrot.slane %v1554_v25, 1  ;;  %v1560_v50 = vrot.slane %v1559_v26, 2  ;;  %v1474_v34 = vmul.f32 1.442695, %v1445_v2  ;;  %1838 = vmatpush.msra.mxu3 %v1768_v28 }
 0x247   : > { %3626 = vpow2.f32 %v1472_v4  ;;  %v1476_v37 = vmul.f32 1.442695, %v1446_v29  ;;  %v1478_v42 = vmul.f32 1.442695, %v1447_v1  ;;  %v4400_v51 = vmul.f32 %v1628_v58, %v1615_v61 }
 0x248   : > { %v1556_v30 = vadd.f32 %v1555_v33, %v1554_v25  ;;  %v1561_v49 = vadd.f32 %v1560_v50, %v1559_v26  ;;  %3628 = vrcp.f32 %v1549_v31  ;;  %v1659_v47 = vrot.slane %v4344_v18, 1  ;;  %1839 = vmatpush.msra.mxu3 %v1767_v35 }
 0x249   : > { %3630 = vpow2.f32 %v1474_v34  ;;  %v1664_v38 = vrot.slane %v4306_v45, 2  ;;  %v1670_v54 = vadd.f32 %v1669_v52, %v4298_v32  ;;  %v1675_v36 = vsel %vm1319_vm2, %v4289_v3, 0.0 }
 0x24a   : > { %v1562_v58 = vrot.slane %v1561_v49, 1  ;;  %3632 = vrcp.f32 %v1556_v30  ;;  %v4413_v55 = vadd.f32 %v1659_v47, %v4344_v18  ;;  %v1676_v40 = vrot.slane %v1675_v36, 4  ;;  %1840 = vmatpush.msra.mxu3 %v1766_v43 }
 0x24b   : > { %v3625_v56 = vpop.eup %3624  ;;  %3634 = vpow2.f32 %v1476_v37  ;;  %v1665_v61 = vadd.f32 %v1664_v38, %v4306_v45  ;;  %v1671_v6 = vrot.slane %v1670_v54, 2  ;;  %v1682_v12 = vsel %vm1319_vm2, %v4317_v63, 0.0 }
 0x24c   : > { %v1563_v48 = vadd.f32 %v1562_v58, %v1561_v49  ;;  %v1616_v32 = vmul.f32 %v3625_v56, %v4328_v10  ;;  %3636 = vpow2.f32 %v1478_v42  ;;  %v1677_v3 = vadd.f32 %v1676_v40, %v1675_v36 }
 0x24d   : > { %v4419_v52 = vpop.eup %3626  ;;  %v1666_v62 = vrot.slane %v1665_v61, 1  ;;  %v1672_v18 = vadd.f32 %v1671_v6, %v1670_v54  ;;  %v1683_v11 = vrot.slane %v1682_v12, 4  ;;  %v1689_v13 = vsel %vm1319_vm2, %v4353_v19, 0.0 }
 0x24e   : > { %v3629_v46 = vpop.eup %3628  ;;  %3638 = vrcp.f32 %v1563_v48  ;;  %v1646_v45 = vmul.f32 %v1616_v32, %v4180_v44  ;;  %v1564_v63 = vsel %vm1319_vm2, %v4419_v52, 0.0  ;;  %v1678_v41 = vrot.slane %v1677_v3, 2 }
 0x24f   : > { %v4426_v7 = vpop.eup %3630  ;;  %v1617_v10 = vmul.f32 %v3629_v46, %v4346_v20  ;;  %v1565_v53 = vrot.slane %v1564_v63, 4  ;;  %v4429_v5 = vadd.f32 %v1666_v62, %v1665_v61  ;;  %v1673_v17 = vrot.slane %v1672_v18, 1 }
 0x250   : > { %v3633_v15 = vpop.eup %3632  ;;  %v1710_v39 = vsel %vm1319_vm2, %v1646_v45, 0.0  ;;  %v1571_v19 = vsel %vm1319_vm2, %v4426_v7, 0.0  ;;  %v1679_v8 = vadd.f32 %v1678_v41, %v1677_v3  ;;  %v1684_v16 = vadd.f32 %v1683_v11, %v1682_v12 }
 0x251   : > { %v4434_v21 = vpop.eup %3634  ;;  %v1618_v22 = vmul.f32 %v3633_v15, %v4357_v27  ;;  %v1647_v23 = vmul.f32 %v1617_v10, %v4180_v44  ;;  %v1711_v25 = vrot.slane %v1710_v39, 4  ;;  %v1566_v20 = vadd.f32 %v1565_v53, %v1564_v63 }
 0x252   : > { %v4438_v26 = vpop.eup %3636  ;;  %v1572_v2 = vrot.slane %v1571_v19, 4  ;;  %v1578_v24 = vsel %vm1319_vm2, %v4434_v21, 0.0  ;;  %v1674_v28 = vadd.f32 %v1673_v17, %v1672_v18  ;;  %v1680_v29 = vrot.slane %v1679_v8, 1 }
 0x253   : > { %v4444_v1 = vmul.f32 %v1629_v59, %v1618_v22  ;;  %v4446_v4 = vadd.f32 %v1711_v25, %v1710_v39  ;;  %v4449_v27 = vsel %vm1319_vm2, %v1647_v23, 0.0  ;;  %v1567_v31 = vrot.slane %v1566_v20, 2 }
 0x254   : > { %v3639_v33 = vpop.eup %3638  ;;  %v1718_v50 = vrot.slane %v4449_v27, 4  ;;  %v1573_v34 = vadd.f32 %v1572_v2, %v1571_v19  ;;  %v1579_v35 = vrot.slane %v1578_v24, 4  ;;  %v1585_v37 = vsel %vm1319_vm2, %v4438_v26, 0.0 }
 0x255   : > { %v1619_v42 = vmul.f32 %v3639_v33, %v4372_v0  ;;  %v1568_v30 = vadd.f32 %v1567_v31, %v1566_v20  ;;  %v1586_v49 = vrot.slane %v1585_v37, 4  ;;  %v1681_v43 = vadd.f32 %v1680_v29, %v1679_v8 }
 0x256   : > { %v1574_v47 = vrot.slane %v1573_v34, 2  ;;  %v1580_v38 = vadd.f32 %v1579_v35, %v1578_v24  ;;  %v1685_v54 = vrot.slane %v1684_v16, 2  ;;  %v1690_v36 = vrot.slane %v1689_v13, 4 }
 0x257   : > { %v4457_v58 = vmul.f32 %v1629_v59, %v1619_v42  ;;  %v1569_v40 = vrot.slane %v1568_v30, 1  ;;  %v1587_v56 = vadd.f32 %v1586_v49, %v1585_v37  ;;  %v1696_v61 = vsel %vm1319_vm2, %v4364_v57, 0.0 }
 0x258   : > { %v1575_v6 = vadd.f32 %v1574_v47, %v1573_v34  ;;  %v1581_v12 = vrot.slane %v1580_v38, 2  ;;  %v1686_v48 = vadd.f32 %v1685_v54, %v1684_v16  ;;  %v1691_v0 = vadd.f32 %v1690_v36, %v1689_v13 }
 0x259   : > { %v1570_v32 = vadd.f32 %v1569_v40, %v1568_v30  ;;  %v1588_v3 = vrot.slane %v1587_v56, 2  ;;  %v1697_v62 = vrot.slane %v1696_v61, 4  ;;  %v1703_v18 = vsel %vm1319_vm2, %v4400_v51, 0.0 }
 0x25a   : > { %v1576_v11 = vrot.slane %v1575_v6, 1  ;;  %v1582_v46 = vadd.f32 %v1581_v12, %v1580_v38  ;;  %v1687_v45 = vrot.slane %v1686_v48, 1  ;;  %v1692_v59 = vrot.slane %v1691_v0, 2 }
 0x25b   : > { %v1589_v63 = vadd.f32 %v1588_v3, %v1587_v56  ;;  %3640 = vrcp.f32 %v1570_v32  ;;  %v1698_v41 = vadd.f32 %v1697_v62, %v1696_v61  ;;  %v1704_v10 = vrot.slane %v1703_v18, 4 }
 0x25c   : > { %v1577_v53 = vadd.f32 %v1576_v11, %v1575_v6  ;;  %v1583_v57 = vrot.slane %v1582_v46, 1  ;;  %v1688_v17 = vadd.f32 %v1687_v45, %v1686_v48  ;;  %v1693_v15 = vadd.f32 %v1692_v59, %v1691_v0 }
 0x25d   : > { %v1699_v39 = vrot.slane %v1698_v41, 2  ;;  %v1705_v13 = vadd.f32 %v1704_v10, %v1703_v18  ;;  %v1803_v51 = vsel %vm1802_vm3, %v4429_v5, %v4413_v55  ;;  %v1590_v5 = vrot.slane %v1589_v63, 1 }
 0x25e   : > { %v1584_v19 = vadd.f32 %v1583_v57, %v1582_v46  ;;  %3642 = vrcp.f32 %v1577_v53  ;;  %v1694_v8 = vrot.slane %v1693_v15, 1  ;;  %v1805_v23 = vsel %vm1804_vm4, %v1674_v28, %v1803_v51 }
 0x25f   : > { %v1700_v16 = vadd.f32 %v1699_v39, %v1698_v41  ;;  %v1706_v22 = vrot.slane %v1705_v13, 2  ;;  %v1807_v20 = vsel %vm1806_vm5, %v1681_v43, %v1805_v23  ;;  %v1713_v35 = vrot.slane %v4446_v4, 2 }
 0x260   : > { %v1695_v25 = vadd.f32 %v1694_v8, %v1693_v15  ;;  %v1809_v31 = vsel %vm1808_vm6, %v1688_v17, %v1807_v20  ;;  %3644 = vrcp.f32 %v1584_v19  ;;  %v1591_v30 = vadd.f32 %v1590_v5, %v1589_v63 }
 0x261   : > { %v3641_v2 = vpop.eup %3640  ;;  %v1701_v24 = vrot.slane %v1700_v16, 1  ;;  %v1707_v29 = vadd.f32 %v1706_v22, %v1705_v13  ;;  %v1719_v49 = vadd.f32 %v1718_v50, %v4449_v27  ;;  %v1714_v54 = vadd.f32 %v1713_v35, %v4446_v4 }
 0x262   : > { %v1620_v33 = vmul.f32 %v3641_v2, %v4419_v52  ;;  %v1811_v55 = vsel %vm1810_vm7, %v1695_v25, %v1809_v31  ;;  %v1724_v52 = vsel %vm1319_vm2, %v4444_v1, 0.0  ;;  %3646 = vrcp.f32 %v1591_v30 }
 0x263   : > { %v1702_v34 = vadd.f32 %v1701_v24, %v1700_v16  ;;  %v1708_v28 = vrot.slane %v1707_v29, 1  ;;  %v1720_v36 = vrot.slane %v1719_v49, 2  ;;  %v1725_v40 = vrot.slane %v1724_v52, 4 }
 0x264   : > { %v3643_v37 = vpop.eup %3642  ;;  %v1650_v42 = vmul.f32 %v1630_v60, %v1620_v33  ;;  %v1731_v56 = vsel %vm1319_vm2, %v4457_v58, 0.0  ;;  %v1715_v50 = vrot.slane %v1714_v54, 1  ;;  %v1631_v4 = vrot.slane %v4180_v44, 6 }
 0x265   : > { %v1709_v43 = vadd.f32 %v1708_v28, %v1707_v29  ;;  %v1813_v47 = vsel %vm1812_vm8, %v1702_v34, %v1811_v55  ;;  %v1621_v38 = vmul.f32 %v3643_v37, %v4426_v7  ;;  %v1732_v1 = vrot.slane %v1731_v56, 4 }
 0x266   : > { %v1721_v6 = vadd.f32 %v1720_v36, %v1719_v49  ;;  %v1726_v12 = vadd.f32 %v1725_v40, %v1724_v52  ;;  %v1738_v7 = vsel %vm1319_vm2, %v1650_v42, 0.0  ;;  %v3645_v48 = vpop.eup %3644  ;;  %v3578_v40 = vld [vmem:[%s6236_s10] ss:$0 sm:$0xff] }
 0x267   : > { %v1815_v61 = vsel %vm1814_vm9, %v1709_v43, %v1813_v47  ;;  %v1651_v27 = vmul.f32 %v1630_v60, %v1621_v38  ;;  %v1733_v0 = vadd.f32 %v1732_v1, %v1731_v56  ;;  %v1739_v32 = vrot.slane %v1738_v7, 4 }
 0x268   : > { %1841 = vmatmul.f32.vlgmr.msra.gmra.mxu3 %v1815_v61  ;;  %v1622_v58 = vmul.f32 %v3645_v48, %v4434_v21  ;;  %v1722_v62 = vrot.slane %v1721_v6, 1  ;;  %v1727_v18 = vrot.slane %v1726_v12, 2  ;;  %v1716_v60 = vadd.f32 %v1715_v50, %v1714_v54  ;;  %v3647_v59 = vpop.eup %3646 }
 0x269   : > { %v1745_v3 = vsel %vm1319_vm2, %v1651_v27, 0.0  ;;  %v1734_v46 = vrot.slane %v1733_v0, 2  ;;  %v1740_v45 = vadd.f32 %v1739_v32, %v1738_v7  ;;  %v1623_v57 = vmul.f32 %v3647_v59, %v4438_v26  ;;  %v2151_v32 = vld [vmem:[%s6239_s13 + $0x790] sm:$0xff]  ;;  %v2117_v59 = vld [vmem:[%s6239_s13 + $0x680] sm:$0xff] }
 0x26a   : > { %v1746_v11 = vrot.slane %v1745_v3, 4  ;;  %v1652_v63 = vmul.f32 %v1631_v4, %v1622_v58  ;;  %v1723_v41 = vadd.f32 %v1722_v62, %v1721_v6  ;;  %v1728_v10 = vadd.f32 %v1727_v18, %v1726_v12  ;;  %v2152_v58 = vld [vmem:[%s6239_s13 + $0x798] sm:$0xff]  ;;  %v2133_v62 = vld [vmem:[%s6239_s13 + $0x700] sm:$0xff]  ;;  %v2134_v18 = vld [vmem:[%s6239_s13 + $0x708] sm:$0xff]  ;;  %2247 = vmatpush.msrb.mxu2 %v2151_v32 }
 0x26b   : > { %v1735_v44 = vadd.f32 %v1734_v46, %v1733_v0  ;;  %v1741_v17 = vrot.slane %v1740_v45, 2  ;;  %v1653_v19 = vmul.f32 %v1631_v4, %v1623_v57  ;;  %v1848_v12 = vlaneseq  ;;  %v2149_v4 = vld [vmem:[%s6239_s13 + $0x780] sm:$0xff]  ;;  %v2150_v0 = vld [vmem:[%s6239_s13 + $0x788] sm:$0xff]  ;;  %2270 = vmatpush.msrb.mxu3 %v2152_v58  ;;  %v2135_v46 = vld [vmem:[%s6239_s13 + $0x710] sm:$0xff] }
 0x26c   : > { %v1747_v53 = vadd.f32 %v1746_v11, %v1745_v3  ;;  %v1729_v15 = vrot.slane %v1728_v10, 1  ;;  %v1752_v13 = vsel %vm1319_vm2, %v1652_v63, 0.0  ;;  %v1816_v21 = vsel %vm1802_vm3, %v1723_v41, %v1716_v60  ;;  %2201 = vmatpush.msrb.mxu0 %v2149_v4  ;;  %2224 = vmatpush.msrb.mxu1 %v2150_v0  ;;  %v2118_v41 = vld [vmem:[%s6239_s13 + $0x688] sm:$0xff]  ;;  %v2101_v57 = vld [vmem:[%s6239_s13 + $0x600] sm:$0xff]  ;;  %v1943_v0 = vld [vmem:[%s6239_s13 + $0x110] sm:$0xff] }
 0x26d   : > { %v1736_v8 = vrot.slane %v1735_v44, 1  ;;  %v1742_v51 = vadd.f32 %v1741_v17, %v1740_v45  ;;  %v1753_v16 = vrot.slane %v1752_v13, 4  ;;  %v1759_v2 = vsel %vm1319_vm2, %v1653_v19, 0.0  ;;  %v2136_v45 = vld [vmem:[%s6239_s13 + $0x718] sm:$0xff]  ;;  %2248 = vmatpush.msrb.mxu2 %v2135_v46  ;;  %v2086_v19 = vld [vmem:[%s6239_s13 + $0x588] sm:$0xff]  ;;  %v1925_v58 = vld [vmem:[%s6239_s13 + $0x80] sm:$0xff] }
 0x26e   : > { %v1748_v39 = vrot.slane %v1747_v53, 2  ;;  %v1730_v22 = vadd.f32 %v1729_v15, %v1728_v10  ;;  %v1760_v29 = vrot.slane %v1759_v2, 4  ;;  %v1849_v7 = vand.u32 127, %v1848_v12  ;;  %2202 = vmatpush.msrb.mxu0 %v2133_v62  ;;  %2225 = vmatpush.msrb.mxu1 %v2134_v18  ;;  %v2119_v10 = vld [vmem:[%s6239_s13 + $0x690] sm:$0xff]  ;;  %v1942_v4 = vld [vmem:[%s6239_s13 + $0x108] sm:$0xff]  ;;  %v1909_v46 = vld [vmem:[%s6239_s13] sm:$0xff] }
 0x26f   : > { %v1743_v25 = vrot.slane %v1742_v51, 1  ;;  %v1754_v20 = vadd.f32 %v1753_v16, %v1752_v13  ;;  %v1737_v24 = vadd.f32 %v1736_v8, %v1735_v44  ;;  %v3680_v11 = vmov 0.0   ;;  %2271 = vmatpush.msrb.mxu3 %v2136_v45  ;;  %v2102_v44 = vld [vmem:[%s6239_s13 + $0x608] sm:$0xff]  ;;  %v2103_v15 = vld [vmem:[%s6239_s13 + $0x610] sm:$0xff]  ;;  %2249 = vmatpush.msrb.mxu2 %v2119_v10  ;;  %v2085_v13 = vld [vmem:[%s6239_s13 + $0x580] sm:$0xff] }
 0x270   : > { %v1749_v23 = vadd.f32 %v1748_v39, %v1747_v53  ;;  %v1817_v31 = vsel %vm1804_vm4, %v1730_v22, %v1816_v21  ;;  %v1761_v34 = vadd.f32 %v1760_v29, %v1759_v2  ;;  %vm1850_vm10 = vcmp.lt.s32.totalorder %v1849_v7, 40  ;;  %v2120_v53 = vld [vmem:[%s6239_s13 + $0x698] sm:$0xff]  ;;  %2203 = vmatpush.msrb.mxu0 %v2117_v59  ;;  %2226 = vmatpush.msrb.mxu1 %v2118_v41  ;;  %v2087_v8 = vld [vmem:[%s6239_s13 + $0x590] sm:$0xff]  ;;  %v2069_v16 = vld [vmem:[%s6239_s13 + $0x500] sm:$0xff] }
 0x271   : > { %v1744_v33 = vadd.f32 %v1743_v25, %v1742_v51  ;;  %v1755_v55 = vrot.slane %v1754_v20, 2  ;;  %v1818_v28 = vsel %vm1806_vm5, %v1737_v24, %v1817_v31  ;;  %v4527_v60 = vsel %vm1850_vm10, 1.0, %v3680_v11  ;;  %v2104_v39 = vld [vmem:[%s6239_s13 + $0x618] sm:$0xff]  ;;  %2272 = vmatpush.msrb.mxu3 %v2120_v53  ;;  %2250 = vmatpush.msrb.mxu2 %v2103_v15  ;;  %v2070_v22 = vld [vmem:[%s6239_s13 + $0x508] sm:$0xff]  ;;  %v2055_v24 = vld [vmem:[%s6239_s13 + $0x490] sm:$0xff] }
 0x272   : > { %v1750_v26 = vrot.slane %v1749_v23, 1  ;;  %v1762_v42 = vrot.slane %v1761_v34, 2  ;;  %2204 = vmatpush.msrb.mxu0 %v2101_v57  ;;  %2227 = vmatpush.msrb.mxu1 %v2102_v44  ;;  %v2088_v51 = vld [vmem:[%s6239_s13 + $0x598] sm:$0xff]  ;;  %v2054_v2 = vld [vmem:[%s6239_s13 + $0x488] sm:$0xff]  ;;  %v2037_v29 = vld [vmem:[%s6239_s13 + $0x400] sm:$0xff] }
 0x273   : > { %v1756_v35 = vadd.f32 %v1755_v55, %v1754_v20  ;;  %v1819_v37 = vsel %vm1808_vm6, %v1744_v33, %v1818_v28  ;;  %2273 = vmatpush.msrb.mxu3 %v2104_v39  ;;  %2251 = vmatpush.msrb.mxu2 %v2087_v8  ;;  %v2072_v25 = vld [vmem:[%s6239_s13 + $0x518] sm:$0xff]  ;;  %v2053_v20 = vld [vmem:[%s6239_s13 + $0x480] sm:$0xff]  ;;  %v2038_v31 = vld [vmem:[%s6239_s13 + $0x408] sm:$0xff] }
 0x274   : > { %v1751_v5 = vadd.f32 %v1750_v26, %v1749_v23  ;;  %v1763_v49 = vadd.f32 %v1762_v42, %v1761_v34  ;;  %2205 = vmatpush.msrb.mxu0 %v2085_v13  ;;  %v2071_v23 = vld [vmem:[%s6239_s13 + $0x510] sm:$0xff]  ;;  %2228 = vmatpush.msrb.mxu1 %v2086_v19  ;;  %v2056_v26 = vld [vmem:[%s6239_s13 + $0x498] sm:$0xff]  ;;  %v2022_v34 = vld [vmem:[%s6239_s13 + $0x388] sm:$0xff] }
 0x275   : > { %v1757_v30 = vrot.slane %v1756_v35, 1  ;;  %2274 = vmatpush.msrb.mxu3 %v2088_v51  ;;  %2252 = vmatpush.msrb.mxu2 %v2071_v23  ;;  %v2039_v33 = vld [vmem:[%s6239_s13 + $0x410] sm:$0xff]  ;;  %v2040_v55 = vld [vmem:[%s6239_s13 + $0x418] sm:$0xff]  ;;  %v2006_v42 = vld [vmem:[%s6239_s13 + $0x308] sm:$0xff] }
 0x276   : > { %v1820_v52 = vsel %vm1810_vm7, %v1751_v5, %v1819_v37  ;;  %v1764_v47 = vrot.slane %v1763_v49, 1  ;;  %2206 = vmatpush.msrb.mxu0 %v2069_v16  ;;  %2229 = vmatpush.msrb.mxu1 %v2070_v22  ;;  %v2021_v5 = vld [vmem:[%s6239_s13 + $0x380] sm:$0xff]  ;;  %v2023_v28 = vld [vmem:[%s6239_s13 + $0x390] sm:$0xff]  ;;  %v1960_v7 = vld [vmem:[%s6239_s13 + $0x198] sm:$0xff] }
 0x277   : > { %v1758_v43 = vadd.f32 %v1757_v30, %v1756_v35  ;;  %2275 = vmatpush.msrb.mxu3 %v2072_v25  ;;  %2253 = vmatpush.msrb.mxu2 %v2055_v24  ;;  %v2024_v35 = vld [vmem:[%s6239_s13 + $0x398] sm:$0xff]  ;;  %v2005_v37 = vld [vmem:[%s6239_s13 + $0x300] sm:$0xff]  ;;  %v2007_v30 = vld [vmem:[%s6239_s13 + $0x310] sm:$0xff] }
 0x278   : > { %v1765_v54 = vadd.f32 %v1764_v47, %v1763_v49  ;;  %2207 = vmatpush.msrb.mxu0 %v2053_v20  ;;  %2230 = vmatpush.msrb.mxu1 %v2054_v2  ;;  %v2008_v49 = vld [vmem:[%s6239_s13 + $0x318] sm:$0xff]  ;;  %v1991_v47 = vld [vmem:[%s6239_s13 + $0x290] sm:$0xff]  ;;  %v1926_v62 = vld [vmem:[%s6239_s13 + $0x88] sm:$0xff] }
 0x279   : > { %v1821_v38 = vsel %vm1812_vm8, %v1758_v43, %v1820_v52  ;;  %2276 = vmatpush.msrb.mxu3 %v2056_v26  ;;  %2254 = vmatpush.msrb.mxu2 %v2039_v33  ;;  %v1989_v52 = vld [vmem:[%s6239_s13 + $0x280] sm:$0xff]  ;;  %v1990_v43 = vld [vmem:[%s6239_s13 + $0x288] sm:$0xff]  ;;  %v1928_v11 = vld [vmem:[%s6239_s13 + $0x98] sm:$0xff] }
 0x27a   : > { %v1822_v36 = vsel %vm1814_vm9, %v1765_v54, %v1821_v38  ;;  %2208 = vmatpush.msrb.mxu0 %v2037_v29  ;;  %2231 = vmatpush.msrb.mxu1 %v2038_v31  ;;  %v1992_v38 = vld [vmem:[%s6239_s13 + $0x298] sm:$0xff]  ;;  %v1973_v54 = vld [vmem:[%s6239_s13 + $0x200] sm:$0xff]  ;;  %v1910_v45 = vld [vmem:[%s6239_s13 + $0x8] sm:$0xff] }
 0x27b   : > { %1844 = vmatmul.f32.gmra.mxu3 %v1822_v36  ;;  %2255 = vmatpush.msrb.mxu2 %v2023_v28  ;;  %v1974_v36 = vld [vmem:[%s6239_s13 + $0x208] sm:$0xff]  ;;  %v1912_v41 = vld [vmem:[%s6239_s13 + $0x18] sm:$0xff]  ;;  %v2153_v10 = vld [vmem:[%s6239_s13 + $0x7a0] sm:$0xff] }
 0x27c   : > { %2277 = vmatpush.msrb.mxu3 %v2040_v55  ;;  %2209 = vmatpush.msrb.mxu0 %v2021_v5  ;;  %v2154_v53 = vld [vmem:[%s6239_s13 + $0x7a8] sm:$0xff]  ;;  %v2155_v57 = vld [vmem:[%s6239_s13 + $0x7b0] sm:$0xff]  ;;  %v2156_v44 = vld [vmem:[%s6239_s13 + $0x7b8] sm:$0xff] }
 0x27d   : > { %2232 = vmatpush.msrb.mxu1 %v2022_v34  ;;  %2256 = vmatpush.msrb.mxu2 %v2007_v30  ;;  %v2137_v15 = vld [vmem:[%s6239_s13 + $0x720] sm:$0xff]  ;;  %v2138_v39 = vld [vmem:[%s6239_s13 + $0x728] sm:$0xff]  ;;  %v2139_v13 = vld [vmem:[%s6239_s13 + $0x730] sm:$0xff] }
 0x27e   : > { %2278 = vmatpush.msrb.mxu3 %v2024_v35  ;;  %2210 = vmatpush.msrb.mxu0 %v2005_v37  ;;  %v2121_v19 = vld [vmem:[%s6239_s13 + $0x6a0] sm:$0xff]  ;;  %v2122_v8 = vld [vmem:[%s6239_s13 + $0x6a8] sm:$0xff]  ;;  %v2123_v51 = vld [vmem:[%s6239_s13 + $0x6b0] sm:$0xff] }
 0x27f   : > { %2233 = vmatpush.msrb.mxu1 %v2006_v42  ;;  %2257 = vmatpush.msrb.mxu2 %v1991_v47  ;;  %v2124_v16 = vld [vmem:[%s6239_s13 + $0x6b8] sm:$0xff]  ;;  %v2105_v22 = vld [vmem:[%s6239_s13 + $0x620] sm:$0xff]  ;;  %v2106_v23 = vld [vmem:[%s6239_s13 + $0x628] sm:$0xff] }
 0x280   : > { %2279 = vmatpush.msrb.mxu3 %v2008_v49  ;;  %2211 = vmatpush.msrb.mxu0 %v1989_v52  ;;  %v2107_v25 = vld [vmem:[%s6239_s13 + $0x630] sm:$0xff]  ;;  %v2108_v20 = vld [vmem:[%s6239_s13 + $0x638] sm:$0xff]  ;;  %v2089_v2 = vld [vmem:[%s6239_s13 + $0x5a0] sm:$0xff] }
 0x281   : > { %2234 = vmatpush.msrb.mxu1 %v1990_v43  ;;  %v2090_v24 = vld [vmem:[%s6239_s13 + $0x5a8] sm:$0xff]  ;;  %v2091_v26 = vld [vmem:[%s6239_s13 + $0x5b0] sm:$0xff]  ;;  %v2092_v29 = vld [vmem:[%s6239_s13 + $0x5b8] sm:$0xff] }
 0x282   : > { %2280 = vmatpush.msrb.mxu3 %v1992_v38  ;;  %2212 = vmatpush.msrb.mxu0 %v1973_v54  ;;  %v2073_v31 = vld [vmem:[%s6239_s13 + $0x520] sm:$0xff]  ;;  %v2074_v33 = vld [vmem:[%s6239_s13 + $0x528] sm:$0xff]  ;;  %v2075_v55 = vld [vmem:[%s6239_s13 + $0x530] sm:$0xff] }
 0x283   : > { %2235 = vmatpush.msrb.mxu1 %v1974_v36  ;;  %v2076_v5 = vld [vmem:[%s6239_s13 + $0x538] sm:$0xff]  ;;  %v2057_v34 = vld [vmem:[%s6239_s13 + $0x4a0] sm:$0xff]  ;;  %v2058_v28 = vld [vmem:[%s6239_s13 + $0x4a8] sm:$0xff] }
 0x284   : > { %v2059_v35 = vld [vmem:[%s6239_s13 + $0x4b0] sm:$0xff]  ;;  %v2060_v37 = vld [vmem:[%s6239_s13 + $0x4b8] sm:$0xff]  ;;  %v2041_v42 = vld [vmem:[%s6239_s13 + $0x420] sm:$0xff] }
 0x285   : > { %v2042_v30 = vld [vmem:[%s6239_s13 + $0x428] sm:$0xff]  ;;  %v2043_v49 = vld [vmem:[%s6239_s13 + $0x430] sm:$0xff]  ;;  %v2044_v52 = vld [vmem:[%s6239_s13 + $0x438] sm:$0xff] }
 0x286   : > { %v2025_v43 = vld [vmem:[%s6239_s13 + $0x3a0] sm:$0xff]  ;;  %v2026_v47 = vld [vmem:[%s6239_s13 + $0x3a8] sm:$0xff]  ;;  %v2027_v38 = vld [vmem:[%s6239_s13 + $0x3b0] sm:$0xff] }
 0x287   : > { %v2028_v54 = vld [vmem:[%s6239_s13 + $0x3b8] sm:$0xff]  ;;  %v2009_v36 = vld [vmem:[%s6239_s13 + $0x320] sm:$0xff] }
 0x2eb   : > { %v1842_v56 = vpop.f32.mrf.mxu3 }
 0x2ec   : > { %v1843_v61 = vadd.f32 %v3578_v40, %v1842_v56  ;;  %v1976_v56 = vld [vmem:[%s6239_s13 + $0x218] sm:$0xff] }
 0x2ed   : > { %2281 = vmatpush.msrb.mxu3 %v1976_v56  ;;  %v2011_v56 = vld [vmem:[%s6239_s13 + $0x330] sm:$0xff] }
 0x2ee   : > { %v1853_v27 = vadd.f32 %v1843_v61, %v4119_v9  ;;  %v1957_v61 = vld [vmem:[%s6239_s13 + $0x180] sm:$0xff] }
 0x2ef   : > { %2213 = vmatpush.msrb.mxu0 %v1957_v61  ;;  %2282 = vmatpush.msrb.mxu3 %v1960_v7  ;;  %v2012_v61 = vld [vmem:[%s6239_s13 + $0x338] sm:$0xff]  ;;  %v1977_v7 = vld [vmem:[%s6239_s13 + $0x220] sm:$0xff] }
 0x2f0   : > { %1857 = vadd.xlane.f32.xlu0 %v1853_v27 }
 0x2fe   : > { %v1845_v50 = vpop.f32.mrf.mxu3 }
 0x2ff   : > { %v1846_v1 = vadd.f32 %v3578_v40, %v1845_v50  ;;  %v1975_v40 = vld [vmem:[%s6239_s13 + $0x210] sm:$0xff]  ;;  %v1958_v50 = vld [vmem:[%s6239_s13 + $0x188] sm:$0xff] }
 0x300   : > { %2258 = vmatpush.msrb.mxu2 %v1975_v40  ;;  %2236 = vmatpush.msrb.mxu1 %v1958_v50  ;;  %v2010_v40 = vld [vmem:[%s6239_s13 + $0x328] sm:$0xff] }
 0x301   : > { %v4506_v6 = vadd.f32 %v1846_v1, %v4124_v14  ;;  %v1959_v1 = vld [vmem:[%s6239_s13 + $0x190] sm:$0xff]  ;;  %v1994_v50 = vld [vmem:[%s6239_s13 + $0x2a8] sm:$0xff] }
 0x302   : > { %2259 = vmatpush.msrb.mxu2 %v1959_v1  ;;  %2237 = vmatpush.msrb.mxu1 %v1942_v4  ;;  %v1995_v1 = vld [vmem:[%s6239_s13 + $0x2b0] sm:$0xff] }
 0x303   : > { %1859 = vadd.xlane.f32.xlu0 %v4506_v6  ;;  %v1979_v4 = vld [vmem:[%s6239_s13 + $0x230] sm:$0xff] }
 0x304   : > { %2260 = vmatpush.msrb.mxu2 %v1943_v0  ;;  %2238 = vmatpush.msrb.mxu1 %v1926_v62  ;;  %v1980_v0 = vld [vmem:[%s6239_s13 + $0x238] sm:$0xff] }
 0x305   : > { %v1964_v62 = vld [vmem:[%s6239_s13 + $0x1b8] sm:$0xff] }
 0x306   : > { %2239 = vmatpush.msrb.mxu1 %v1910_v45  ;;  %v1947_v45 = vld [vmem:[%s6239_s13 + $0x130] sm:$0xff] }
 0x308   : > { %2316 = vmatpush.msra.mxu1 %v2154_v53  ;;  %v1931_v53 = vld [vmem:[%s6239_s13 + $0xb0] sm:$0xff] }
 0x30a   : > { %2317 = vmatpush.msra.mxu1 %v2138_v39  ;;  %v1914_v39 = vld [vmem:[%s6239_s13 + $0x28] sm:$0xff] }
 0x30c   : > { %2318 = vmatpush.msra.mxu1 %v2122_v8 }
 0x30e   : > { %2319 = vmatpush.msra.mxu1 %v2106_v23 }
 0x310   : > { %2320 = vmatpush.msra.mxu1 %v2090_v24 }
 0x312   : > { %2321 = vmatpush.msra.mxu1 %v2074_v33 }
 0x314   : > { %2322 = vmatpush.msra.mxu1 %v2058_v28  ;;  %v2160_v28 = vld [vmem:[%s6239_s13 + $0x7d8] sm:$0xff] }
 0x316   : > { %2323 = vmatpush.msra.mxu1 %v2042_v30  ;;  %v2144_v30 = vld [vmem:[%s6239_s13 + $0x758] sm:$0xff] }
 0x318   : > { %2324 = vmatpush.msra.mxu1 %v2026_v47  ;;  %v2128_v47 = vld [vmem:[%s6239_s13 + $0x6d8] sm:$0xff] }
 0x31a   : > { %2325 = vmatpush.msra.mxu1 %v2010_v40 }
 0x31c   : > { %2326 = vmatpush.msra.mxu1 %v1994_v50  ;;  %v2094_v50 = vld [vmem:[%s6239_s13 + $0x5c8] sm:$0xff] }
 0x363   : > { %v1858_v48 = vpop.xlane.xlu0 %1857 }
 0x364   : > { %v1861_v3 = vmul.f32 0.025, %v1858_v48  ;;  %v1941_v48 = vld [vmem:[%s6239_s13 + $0x100] sm:$0xff] }
 0x365   : > { %2214 = vmatpush.msrb.mxu0 %v1941_v48  ;;  %v1978_v48 = vld [vmem:[%s6239_s13 + $0x228] sm:$0xff] }
 0x366   : > { %v1863_v63 = vsub.f32 %v1853_v27, %v1861_v3  ;;  %v1944_v3 = vld [vmem:[%s6239_s13 + $0x118] sm:$0xff]  ;;  %2327 = vmatpush.msra.mxu1 %v1978_v48  ;;  %v2077_v48 = vld [vmem:[%s6239_s13 + $0x540] sm:$0xff] }
 0x367   : > { %2283 = vmatpush.msrb.mxu3 %v1944_v3  ;;  %2215 = vmatpush.msrb.mxu0 %v1925_v58  ;;  %v1962_v3 = vld [vmem:[%s6239_s13 + $0x1a8] sm:$0xff]  ;;  %v1963_v58 = vld [vmem:[%s6239_s13 + $0x1b0] sm:$0xff] }
 0x368   : > { %v4554_v17 = vmul.f32 %v4527_v60, %v1863_v63  ;;  %v1911_v63 = vld [vmem:[%s6239_s13 + $0x10] sm:$0xff]  ;;  %2328 = vmatpush.msra.mxu1 %v1962_v3  ;;  %v2080_v3 = vld [vmem:[%s6239_s13 + $0x558] sm:$0xff] }
 0x369   : > { %2284 = vmatpush.msrb.mxu3 %v1928_v11  ;;  %2216 = vmatpush.msrb.mxu0 %v1909_v46  ;;  %v1945_v11 = vld [vmem:[%s6239_s13 + $0x120] sm:$0xff]  ;;  %v1946_v46 = vld [vmem:[%s6239_s13 + $0x128] sm:$0xff] }
 0x36a   : > { %v1867_v21 = vmul.f32 %v4554_v17, %v4554_v17  ;;  %2329 = vmatpush.msra.mxu1 %v1946_v46  ;;  %v2064_v46 = vld [vmem:[%s6239_s13 + $0x4d8] sm:$0xff] }
 0x36b   : > { %2285 = vmatpush.msrb.mxu3 %v1912_v41  ;;  %2293 = vmatpush.msra.mxu0 %v2153_v10  ;;  %v1929_v41 = vld [vmem:[%s6239_s13 + $0xa0] sm:$0xff]  ;;  %v1930_v10 = vld [vmem:[%s6239_s13 + $0xa8] sm:$0xff] }
 0x36c   : > { %1869 = vadd.xlane.f32.xlu1 %v1867_v21  ;;  %v2140_v21 = vld [vmem:[%s6239_s13 + $0x738] sm:$0xff]  ;;  %2330 = vmatpush.msra.mxu1 %v1930_v10 }
 0x36d   : > { %2362 = vmatpush.msra.mxu3 %v2156_v44  ;;  %2294 = vmatpush.msra.mxu0 %v2137_v15  ;;  %v1932_v44 = vld [vmem:[%s6239_s13 + $0xb8] sm:$0xff]  ;;  %v1913_v15 = vld [vmem:[%s6239_s13 + $0x20] sm:$0xff] }
 0x36e   : > { %2331 = vmatpush.msra.mxu1 %v1914_v39  ;;  %v2048_v10 = vld [vmem:[%s6239_s13 + $0x458] sm:$0xff] }
 0x36f   : > { %2363 = vmatpush.msra.mxu3 %v2140_v21  ;;  %2295 = vmatpush.msra.mxu0 %v2121_v19  ;;  %v1916_v21 = vld [vmem:[%s6239_s13 + $0x38] sm:$0xff] }
 0x370   : > { %v2032_v39 = vld [vmem:[%s6239_s13 + $0x3d8] sm:$0xff] }
 0x371   : > { %2364 = vmatpush.msra.mxu3 %v2124_v16  ;;  %2296 = vmatpush.msra.mxu0 %v2105_v22 }
 0x373   : > { %2365 = vmatpush.msra.mxu3 %v2108_v20  ;;  %2297 = vmatpush.msra.mxu0 %v2089_v2  ;;  %v4914_v2 = vld [vmem:[%s6238_s12] ss:$0 sm:$0xff] }
 0x375   : > { %2366 = vmatpush.msra.mxu3 %v2092_v29  ;;  %2298 = vmatpush.msra.mxu0 %v2073_v31 }
 0x376   : > { %v1860_v27 = vpop.xlane.xlu0 %1859 }
 0x377   : > { %v1862_v12 = vmul.f32 0.025, %v1860_v27  ;;  %2367 = vmatpush.msra.mxu3 %v2076_v5  ;;  %2299 = vmatpush.msra.mxu0 %v2057_v34  ;;  %v1993_v27 = vld [vmem:[%s6239_s13 + $0x2a0] sm:$0xff]  ;;  %v2158_v34 = vld [vmem:[%s6239_s13 + $0x7c8] sm:$0xff] }
 0x378   : > { %v2157_v5 = vld [vmem:[%s6239_s13 + $0x7c0] sm:$0xff] }
 0x379   : > { %v1864_v32 = vsub.f32 %v4506_v6, %v1862_v12  ;;  %v1927_v6 = vld [vmem:[%s6239_s13 + $0x90] sm:$0xff]  ;;  %2368 = vmatpush.msra.mxu3 %v2060_v37  ;;  %2300 = vmatpush.msra.mxu0 %v2041_v42  ;;  %v1996_v12 = vld [vmem:[%s6239_s13 + $0x2b8] sm:$0xff]  ;;  %v2142_v37 = vld [vmem:[%s6239_s13 + $0x748] sm:$0xff] }
 0x37a   : > { %2261 = vmatpush.msrb.mxu2 %v1927_v6  ;;  %v2143_v42 = vld [vmem:[%s6239_s13 + $0x750] sm:$0xff] }
 0x37b   : > { %v4695_v18 = vmul.f32 %v4527_v60, %v1864_v32  ;;  %2369 = vmatpush.msra.mxu3 %v2044_v52  ;;  %2301 = vmatpush.msra.mxu0 %v2025_v43  ;;  %v1961_v32 = vld [vmem:[%s6239_s13 + $0x1a0] sm:$0xff]  ;;  %v2126_v52 = vld [vmem:[%s6239_s13 + $0x6c8] sm:$0xff]  ;;  %v2127_v43 = vld [vmem:[%s6239_s13 + $0x6d0] sm:$0xff] }
 0x37c   : > { %2262 = vmatpush.msrb.mxu2 %v1911_v63  ;;  %v1948_v63 = vld [vmem:[%s6239_s13 + $0x138] sm:$0xff] }
 0x37d   : > { %v1868_v59 = vmul.f32 %v4695_v18, %v4695_v18  ;;  %2370 = vmatpush.msra.mxu3 %v2028_v54  ;;  %2302 = vmatpush.msra.mxu0 %v2009_v36  ;;  %v2109_v54 = vld [vmem:[%s6239_s13 + $0x640] sm:$0xff]  ;;  %v2110_v36 = vld [vmem:[%s6239_s13 + $0x648] sm:$0xff] }
 0x37e   : > { %2339 = vmatpush.msra.mxu2 %v2155_v57 }
 0x37f   : > { %1871 = vadd.xlane.f32.xlu1 %v1868_v59  ;;  %2371 = vmatpush.msra.mxu3 %v2012_v61  ;;  %v2112_v61 = vld [vmem:[%s6239_s13 + $0x658] sm:$0xff] }
 0x380   : > { %2340 = vmatpush.msra.mxu2 %v2139_v13  ;;  %2303 = vmatpush.msra.mxu0 %v1993_v27  ;;  %v1915_v13 = vld [vmem:[%s6239_s13 + $0x30] sm:$0xff]  ;;  %v2093_v27 = vld [vmem:[%s6239_s13 + $0x5c0] sm:$0xff] }
 0x381   : > { %2372 = vmatpush.msra.mxu3 %v1996_v12  ;;  %v2095_v12 = vld [vmem:[%s6239_s13 + $0x5d0] sm:$0xff] }
 0x382   : > { %2341 = vmatpush.msra.mxu2 %v2123_v51  ;;  %2304 = vmatpush.msra.mxu0 %v1977_v7  ;;  %v2096_v7 = vld [vmem:[%s6239_s13 + $0x5d8] sm:$0xff] }
 0x383   : > { %2373 = vmatpush.msra.mxu3 %v1980_v0 }
 0x384   : > { %2342 = vmatpush.msra.mxu2 %v2107_v25  ;;  %2305 = vmatpush.msra.mxu0 %v1961_v32  ;;  %v4909_v25 = vld [vmem:[%s6237_s11] ss:$0 sm:$0xff]  ;;  %v2079_v32 = vld [vmem:[%s6239_s13 + $0x550] sm:$0xff] }
 0x385   : > { %2374 = vmatpush.msra.mxu3 %v1964_v62  ;;  %v2062_v62 = vld [vmem:[%s6239_s13 + $0x4c8] sm:$0xff] }
 0x386   : > { %2343 = vmatpush.msra.mxu2 %v2091_v26  ;;  %2306 = vmatpush.msra.mxu0 %v1945_v11  ;;  %v2063_v11 = vld [vmem:[%s6239_s13 + $0x4d0] sm:$0xff] }
 0x387   : > { %2375 = vmatpush.msra.mxu3 %v1948_v63 }
 0x388   : > { %2344 = vmatpush.msra.mxu2 %v2075_v55  ;;  %2307 = vmatpush.msra.mxu0 %v1929_v41  ;;  %v2047_v41 = vld [vmem:[%s6239_s13 + $0x450] sm:$0xff] }
 0x389   : > { %2376 = vmatpush.msra.mxu3 %v1932_v44 }
 0x38a   : > { %2345 = vmatpush.msra.mxu2 %v2059_v35  ;;  %2308 = vmatpush.msra.mxu0 %v1913_v15  ;;  %v2141_v35 = vld [vmem:[%s6239_s13 + $0x740] sm:$0xff]  ;;  %v2031_v15 = vld [vmem:[%s6239_s13 + $0x3d0] sm:$0xff] }
 0x38b   : > { %2377 = vmatpush.msra.mxu3 %v1916_v21  ;;  %v2013_v21 = vld [vmem:[%s6239_s13 + $0x340] sm:$0xff] }
 0x38c   : > { %2346 = vmatpush.msra.mxu2 %v2043_v49  ;;  %v2125_v49 = vld [vmem:[%s6239_s13 + $0x6c0] sm:$0xff] }
 0x38e   : > { %2347 = vmatpush.msra.mxu2 %v2027_v38 }
 0x390   : > { %2348 = vmatpush.msra.mxu2 %v2011_v56  ;;  %v2111_v56 = vld [vmem:[%s6239_s13 + $0x650] sm:$0xff] }
 0x392   : > { %2349 = vmatpush.msra.mxu2 %v1995_v1 }
 0x394   : > { %2350 = vmatpush.msra.mxu2 %v1979_v4  ;;  %v2078_v4 = vld [vmem:[%s6239_s13 + $0x548] sm:$0xff] }
 0x396   : > { %2351 = vmatpush.msra.mxu2 %v1963_v58  ;;  %v2061_v58 = vld [vmem:[%s6239_s13 + $0x4c0] sm:$0xff] }
 0x398   : > { %2352 = vmatpush.msra.mxu2 %v1947_v45  ;;  %v2045_v45 = vld [vmem:[%s6239_s13 + $0x440] sm:$0xff] }
 0x39a   : > { %2353 = vmatpush.msra.mxu2 %v1931_v53  ;;  %v2029_v53 = vld [vmem:[%s6239_s13 + $0x3c0] sm:$0xff] }
 0x39c   : > { %2354 = vmatpush.msra.mxu2 %v1915_v13 }
 0x3df   : > { %v1870_v6 = vpop.xlane.xlu1 %1869 }
 0x3e0   : > { %v1873_v59 = vmul.f32 0.025, %v1870_v6 }
 0x3e2   : > { %v1875_v57 = vadd.f32 1e-05, %v1873_v59  ;;  %v2046_v59 = vld [vmem:[%s6239_s13 + $0x448] sm:$0xff] }
 0x3e4   : > { %3648 = vrsqrt.f32 %v1875_v57  ;;  %vm1883_vm12 = vweird.f32 %v1875_v57 }
 0x3ea   : > { %v3649_v19 = vpop.eup %3648 }
 0x3eb   : > { %v1878_v8 = vmul.f32 %v3649_v19, %v1875_v57  ;;  %vm1884_vm11 = vweird.f32 %v3649_v19  ;;  %v2030_v57 = vld [vmem:[%s6239_s13 + $0x3c8] sm:$0xff] }
 0x3ec   : > { %vm1885_vm13 = vmor %vm1883_vm12, %vm1884_vm11 }
 0x3ed   : > { %v1879_v51 = vmul.f32 %v3649_v19, %v1878_v8  ;;  %v2015_v8 = vld [vmem:[%s6239_s13 + $0x350] sm:$0xff] }
 0x3ef   : > { %v1880_v16 = vmul.f32 0.5, %v1879_v51 }
 0x3f1   : > { %v1881_v22 = vsub.f32 1.5, %v1880_v16  ;;  %v1997_v16 = vld [vmem:[%s6239_s13 + $0x2c0] sm:$0xff] }
 0x3f2   : > { %v1872_v26 = vpop.xlane.xlu1 %1871 }
 0x3f3   : > { %v1882_v23 = vmul.f32 %v3649_v19, %v1881_v22  ;;  %v1874_v29 = vmul.f32 0.025, %v1872_v26  ;;  %v1998_v22 = vld [vmem:[%s6239_s13 + $0x2c8] sm:$0xff]  ;;  %v1983_v26 = vld [vmem:[%s6239_s13 + $0x250] sm:$0xff] }
 0x3f5   : > { %v1886_v20 = vsel %vm1885_vm13, %v3649_v19, %v1882_v23  ;;  %v4918_v33 = vadd.f32 1e-05, %v1874_v29  ;;  %v2014_v19 = vld [vmem:[%s6239_s13 + $0x348] sm:$0xff]  ;;  %v1984_v29 = vld [vmem:[%s6239_s13 + $0x258] sm:$0xff] }
 0x3f6   : > { %v1897_v24 = vmul.f32 %v1886_v20, %v4554_v17  ;;  %v2159_v17 = vld [vmem:[%s6239_s13 + $0x7d0] sm:$0xff]  ;;  %v2000_v20 = vld [vmem:[%s6239_s13 + $0x2d8] sm:$0xff] }
 0x3f7   : > { %3650 = vrsqrt.f32 %v4918_v33  ;;  %vm1893_vm15 = vweird.f32 %v4918_v33 }
 0x3f8   : > { %v1902_v31 = vmul.f32 %v4909_v25, %v1897_v24  ;;  %v1982_v24 = vld [vmem:[%s6239_s13 + $0x248] sm:$0xff] }
 0x3fa   : > { %v4921_v55 = vadd.f32 %v4914_v2, %v1902_v31  ;;  %v1965_v31 = vld [vmem:[%s6239_s13 + $0x1c0] sm:$0xff] }
 0x3fc   : > { %2217 = vmatmul.f32.vlgmr.msrb.gmra.mxu0 %v4921_v55  ;;  %2240 = vmatmul.f32.vlgmr.msrb.gmra.mxu1 %v4921_v55 }
 0x3fd   : > { %2263 = vmatmul.f32.vlgmr.msrb.gmra.mxu2 %v4921_v55  ;;  %2286 = vmatmul.f32.vlgmr.msrb.gmra.mxu3 %v4921_v55  ;;  %v3651_v38 = vpop.eup %3650 }
 0x3fe   : > { %2385 = vmatpush.msrb.mxu0 %v2157_v5  ;;  %2408 = vmatpush.msrb.mxu1 %v2158_v34  ;;  %v1888_v40 = vmul.f32 %v3651_v38, %v4918_v33  ;;  %vm1894_vm14 = vweird.f32 %v3651_v38  ;;  %v1966_v33 = vld [vmem:[%s6239_s13 + $0x1c8] sm:$0xff]  ;;  %v1967_v5 = vld [vmem:[%s6239_s13 + $0x1d0] sm:$0xff]  ;;  %v1968_v34 = vld [vmem:[%s6239_s13 + $0x1d8] sm:$0xff] }
 0x3ff   : > { %2431 = vmatpush.msrb.mxu2 %v2159_v17  ;;  %2454 = vmatpush.msrb.mxu3 %v2160_v28  ;;  %vm1895_vm0 = vmor %vm1893_vm15, %vm1894_vm14  ;;  %v1949_v17 = vld [vmem:[%s6239_s13 + $0x140] sm:$0xff]  ;;  %v1950_v28 = vld [vmem:[%s6239_s13 + $0x148] sm:$0xff] }
 0x400   : > { %2386 = vmatpush.msrb.mxu0 %v2141_v35  ;;  %2409 = vmatpush.msrb.mxu1 %v2142_v37  ;;  %v1889_v1 = vmul.f32 %v3651_v38, %v1888_v40  ;;  %v1951_v35 = vld [vmem:[%s6239_s13 + $0x150] sm:$0xff]  ;;  %v1952_v37 = vld [vmem:[%s6239_s13 + $0x158] sm:$0xff]  ;;  %v2162_v40 = vld [vmem:[%s6239_s13 + $0x7e8] sm:$0xff] }
 0x401   : > { %2432 = vmatpush.msrb.mxu2 %v2143_v42  ;;  %2455 = vmatpush.msrb.mxu3 %v2144_v30  ;;  %v1933_v42 = vld [vmem:[%s6239_s13 + $0xc0] sm:$0xff]  ;;  %v1934_v30 = vld [vmem:[%s6239_s13 + $0xc8] sm:$0xff] }
 0x402   : > { %2387 = vmatpush.msrb.mxu0 %v2125_v49  ;;  %2410 = vmatpush.msrb.mxu1 %v2126_v52  ;;  %v1890_v0 = vmul.f32 0.5, %v1889_v1  ;;  %v1935_v49 = vld [vmem:[%s6239_s13 + $0xd0] sm:$0xff]  ;;  %v1936_v52 = vld [vmem:[%s6239_s13 + $0xd8] sm:$0xff] }
 0x403   : > { %2433 = vmatpush.msrb.mxu2 %v2127_v43  ;;  %2456 = vmatpush.msrb.mxu3 %v2128_v47  ;;  %v1917_v43 = vld [vmem:[%s6239_s13 + $0x40] sm:$0xff]  ;;  %v1918_v47 = vld [vmem:[%s6239_s13 + $0x48] sm:$0xff]  ;;  %v2147_v1 = vld [vmem:[%s6239_s13 + $0x770] sm:$0xff] }
 0x404   : > { %2388 = vmatpush.msrb.mxu0 %v2109_v54  ;;  %2411 = vmatpush.msrb.mxu1 %v2110_v36  ;;  %v1891_v6 = vsub.f32 1.5, %v1890_v0  ;;  %v1920_v54 = vld [vmem:[%s6239_s13 + $0x58] sm:$0xff]  ;;  %v2161_v36 = vld [vmem:[%s6239_s13 + $0x7e0] sm:$0xff] }
 0x405   : > { %2434 = vmatpush.msrb.mxu2 %v2111_v56  ;;  %2457 = vmatpush.msrb.mxu3 %v2112_v61  ;;  %v2163_v56 = vld [vmem:[%s6239_s13 + $0x7f0] sm:$0xff]  ;;  %v2164_v61 = vld [vmem:[%s6239_s13 + $0x7f8] sm:$0xff] }
 0x406   : > { %2389 = vmatpush.msrb.mxu0 %v2093_v27  ;;  %2412 = vmatpush.msrb.mxu1 %v2094_v50  ;;  %v1892_v63 = vmul.f32 %v3651_v38, %v1891_v6  ;;  %v2145_v27 = vld [vmem:[%s6239_s13 + $0x760] sm:$0xff]  ;;  %v2146_v50 = vld [vmem:[%s6239_s13 + $0x768] sm:$0xff]  ;;  %v2132_v0 = vld [vmem:[%s6239_s13 + $0x6f8] sm:$0xff] }
 0x407   : > { %2435 = vmatpush.msrb.mxu2 %v2095_v12  ;;  %2458 = vmatpush.msrb.mxu3 %v2096_v7  ;;  %v2148_v12 = vld [vmem:[%s6239_s13 + $0x778] sm:$0xff]  ;;  %v2129_v7 = vld [vmem:[%s6239_s13 + $0x6e0] sm:$0xff] }
 0x408   : > { %2390 = vmatpush.msrb.mxu0 %v2077_v48  ;;  %2413 = vmatpush.msrb.mxu1 %v2078_v4  ;;  %v1896_v44 = vsel %vm1895_vm0, %v3651_v38, %v1892_v63  ;;  %v1919_v38 = vld [vmem:[%s6239_s13 + $0x50] sm:$0xff]  ;;  %v2130_v48 = vld [vmem:[%s6239_s13 + $0x6e8] sm:$0xff]  ;;  %v2097_v6 = vld [vmem:[%s6239_s13 + $0x5e0] sm:$0xff] }
 0x409   : > { %2436 = vmatpush.msrb.mxu2 %v2079_v32  ;;  %2459 = vmatpush.msrb.mxu3 %v2080_v3  ;;  %v1898_v13 = vmul.f32 %v1896_v44, %v4695_v18  ;;  %v2016_v18 = vld [vmem:[%s6239_s13 + $0x358] sm:$0xff]  ;;  %v2131_v4 = vld [vmem:[%s6239_s13 + $0x6f0] sm:$0xff]  ;;  %v2113_v32 = vld [vmem:[%s6239_s13 + $0x660] sm:$0xff] }
 0x40a   : > { %2391 = vmatpush.msrb.mxu0 %v2061_v58  ;;  %2414 = vmatpush.msrb.mxu1 %v2062_v62  ;;  %v2114_v3 = vld [vmem:[%s6239_s13 + $0x668] sm:$0xff]  ;;  %v2115_v58 = vld [vmem:[%s6239_s13 + $0x670] sm:$0xff]  ;;  %v2116_v62 = vld [vmem:[%s6239_s13 + $0x678] sm:$0xff] }
 0x40b   : > { %2437 = vmatpush.msrb.mxu2 %v2063_v11  ;;  %2460 = vmatpush.msrb.mxu3 %v2064_v46  ;;  %v1903_v51 = vmul.f32 %v4909_v25, %v1898_v13  ;;  %v1999_v25 = vld [vmem:[%s6239_s13 + $0x2d0] sm:$0xff]  ;;  %v2098_v11 = vld [vmem:[%s6239_s13 + $0x5e8] sm:$0xff] }
 0x40c   : > { %2392 = vmatpush.msrb.mxu0 %v2045_v45  ;;  %2415 = vmatpush.msrb.mxu1 %v2046_v59  ;;  %v2099_v46 = vld [vmem:[%s6239_s13 + $0x5f0] sm:$0xff]  ;;  %v2100_v45 = vld [vmem:[%s6239_s13 + $0x5f8] sm:$0xff]  ;;  %v2081_v59 = vld [vmem:[%s6239_s13 + $0x560] sm:$0xff] }
 0x40d   : > { %2438 = vmatpush.msrb.mxu2 %v2047_v41  ;;  %2461 = vmatpush.msrb.mxu3 %v2048_v10  ;;  %v5060_v23 = vadd.f32 %v4914_v2, %v1903_v51  ;;  %v1981_v2 = vld [vmem:[%s6239_s13 + $0x240] sm:$0xff]  ;;  %v2082_v63 = vld [vmem:[%s6239_s13 + $0x568] sm:$0xff]  ;;  %v2083_v41 = vld [vmem:[%s6239_s13 + $0x570] sm:$0xff] }
 0x40e   : > { %2393 = vmatpush.msrb.mxu0 %v2029_v53  ;;  %2416 = vmatpush.msrb.mxu1 %v2030_v57  ;;  %v2084_v10 = vld [vmem:[%s6239_s13 + $0x578] sm:$0xff]  ;;  %v2065_v53 = vld [vmem:[%s6239_s13 + $0x4e0] sm:$0xff]  ;;  %v2066_v57 = vld [vmem:[%s6239_s13 + $0x4e8] sm:$0xff] }
 0x40f   : > { %2439 = vmatpush.msrb.mxu2 %v2031_v15  ;;  %2462 = vmatpush.msrb.mxu3 %v2032_v39  ;;  %v2067_v44 = vld [vmem:[%s6239_s13 + $0x4f0] sm:$0xff]  ;;  %v2068_v15 = vld [vmem:[%s6239_s13 + $0x4f8] sm:$0xff]  ;;  %v2049_v39 = vld [vmem:[%s6239_s13 + $0x460] sm:$0xff] }
 0x410   : > { %2394 = vmatpush.msrb.mxu0 %v2013_v21  ;;  %2417 = vmatpush.msrb.mxu1 %v2014_v19  ;;  %v2050_v13 = vld [vmem:[%s6239_s13 + $0x468] sm:$0xff]  ;;  %v2051_v21 = vld [vmem:[%s6239_s13 + $0x470] sm:$0xff]  ;;  %v2052_v19 = vld [vmem:[%s6239_s13 + $0x478] sm:$0xff] }
 0x411   : > { %2440 = vmatpush.msrb.mxu2 %v2015_v8  ;;  %2463 = vmatpush.msrb.mxu3 %v2016_v18  ;;  %v2033_v8 = vld [vmem:[%s6239_s13 + $0x3e0] sm:$0xff]  ;;  %v2034_v18 = vld [vmem:[%s6239_s13 + $0x3e8] sm:$0xff]  ;;  %v2035_v51 = vld [vmem:[%s6239_s13 + $0x3f0] sm:$0xff] }
 0x412   : > { %2395 = vmatpush.msrb.mxu0 %v1997_v16  ;;  %2418 = vmatpush.msrb.mxu1 %v1998_v22  ;;  %v2036_v16 = vld [vmem:[%s6239_s13 + $0x3f8] sm:$0xff]  ;;  %v2017_v22 = vld [vmem:[%s6239_s13 + $0x360] sm:$0xff] }
 0x413   : > { %2220 = vmatmul.f32.gmra.mxu0 %v5060_v23  ;;  %2243 = vmatmul.f32.gmra.mxu1 %v5060_v23 }
 0x414   : > { %2266 = vmatmul.f32.gmra.mxu2 %v5060_v23  ;;  %2289 = vmatmul.f32.gmra.mxu3 %v5060_v23 }
 0x415   : > { %2441 = vmatpush.msrb.mxu2 %v1999_v25  ;;  %2464 = vmatpush.msrb.mxu3 %v2000_v20  ;;  %v2018_v25 = vld [vmem:[%s6239_s13 + $0x368] sm:$0xff]  ;;  %v2019_v20 = vld [vmem:[%s6239_s13 + $0x370] sm:$0xff] }
 0x416   : > { %2396 = vmatpush.msrb.mxu0 %v1981_v2  ;;  %2419 = vmatpush.msrb.mxu1 %v1982_v24  ;;  %v2020_v2 = vld [vmem:[%s6239_s13 + $0x378] sm:$0xff]  ;;  %v2001_v24 = vld [vmem:[%s6239_s13 + $0x2e0] sm:$0xff] }
 0x417   : > { %2442 = vmatpush.msrb.mxu2 %v1983_v26  ;;  %2465 = vmatpush.msrb.mxu3 %v1984_v29  ;;  %v2002_v26 = vld [vmem:[%s6239_s13 + $0x2e8] sm:$0xff]  ;;  %v2003_v29 = vld [vmem:[%s6239_s13 + $0x2f0] sm:$0xff] }
 0x418   : > { %2397 = vmatpush.msrb.mxu0 %v1965_v31  ;;  %2420 = vmatpush.msrb.mxu1 %v1966_v33  ;;  %v2004_v31 = vld [vmem:[%s6239_s13 + $0x2f8] sm:$0xff]  ;;  %v1985_v33 = vld [vmem:[%s6239_s13 + $0x260] sm:$0xff] }
 0x419   : > { %2443 = vmatpush.msrb.mxu2 %v1967_v5  ;;  %2466 = vmatpush.msrb.mxu3 %v1968_v34  ;;  %v1986_v5 = vld [vmem:[%s6239_s13 + $0x268] sm:$0xff]  ;;  %v1987_v34 = vld [vmem:[%s6239_s13 + $0x270] sm:$0xff] }
 0x41a   : > { %2398 = vmatpush.msrb.mxu0 %v1949_v17  ;;  %2421 = vmatpush.msrb.mxu1 %v1950_v28  ;;  %v1988_v17 = vld [vmem:[%s6239_s13 + $0x278] sm:$0xff]  ;;  %v1969_v28 = vld [vmem:[%s6239_s13 + $0x1e0] sm:$0xff] }
 0x41b   : > { %2309 = vmatmul.f32.vlgmr.msra.gmra.mxu0 %v4921_v55  ;;  %2332 = vmatmul.f32.vlgmr.msra.gmra.mxu1 %v4921_v55 }
 0x41c   : > { %2355 = vmatmul.f32.vlgmr.msra.gmra.mxu2 %v4921_v55  ;;  %2378 = vmatmul.f32.vlgmr.msra.gmra.mxu3 %v4921_v55 }
 0x41d   : > { %2444 = vmatpush.msrb.mxu2 %v1951_v35  ;;  %2467 = vmatpush.msrb.mxu3 %v1952_v37  ;;  %v1970_v35 = vld [vmem:[%s6239_s13 + $0x1e8] sm:$0xff]  ;;  %v1971_v37 = vld [vmem:[%s6239_s13 + $0x1f0] sm:$0xff] }
 0x41e   : > { %2399 = vmatpush.msrb.mxu0 %v1933_v42  ;;  %2422 = vmatpush.msrb.mxu1 %v1934_v30  ;;  %v1972_v42 = vld [vmem:[%s6239_s13 + $0x1f8] sm:$0xff]  ;;  %v1953_v30 = vld [vmem:[%s6239_s13 + $0x160] sm:$0xff] }
 0x41f   : > { %2445 = vmatpush.msrb.mxu2 %v1935_v49  ;;  %2468 = vmatpush.msrb.mxu3 %v1936_v52  ;;  %v1954_v49 = vld [vmem:[%s6239_s13 + $0x168] sm:$0xff]  ;;  %v1955_v52 = vld [vmem:[%s6239_s13 + $0x170] sm:$0xff] }
 0x420   : > { %2400 = vmatpush.msrb.mxu0 %v1917_v43  ;;  %2423 = vmatpush.msrb.mxu1 %v1918_v47  ;;  %v1956_v43 = vld [vmem:[%s6239_s13 + $0x178] sm:$0xff]  ;;  %v1937_v47 = vld [vmem:[%s6239_s13 + $0xe0] sm:$0xff] }
 0x421   : > { %2446 = vmatpush.msrb.mxu2 %v1919_v38  ;;  %2469 = vmatpush.msrb.mxu3 %v1920_v54  ;;  %v1938_v38 = vld [vmem:[%s6239_s13 + $0xe8] sm:$0xff]  ;;  %v1939_v54 = vld [vmem:[%s6239_s13 + $0xf0] sm:$0xff] }
 0x422   : > { %2477 = vmatpush.msra.mxu0 %v2161_v36  ;;  %2500 = vmatpush.msra.mxu1 %v2162_v40  ;;  %v1940_v36 = vld [vmem:[%s6239_s13 + $0xf8] sm:$0xff]  ;;  %v1921_v40 = vld [vmem:[%s6239_s13 + $0x60] sm:$0xff] }
 0x423   : > { %2523 = vmatpush.msra.mxu2 %v2163_v56  ;;  %2546 = vmatpush.msra.mxu3 %v2164_v61  ;;  %v1922_v56 = vld [vmem:[%s6239_s13 + $0x68] sm:$0xff]  ;;  %v1923_v61 = vld [vmem:[%s6239_s13 + $0x70] sm:$0xff] }
 0x424   : > { %2312 = vmatmul.f32.gmra.mxu0 %v5060_v23  ;;  %2335 = vmatmul.f32.gmra.mxu1 %v5060_v23 }
 0x425   : > { %2358 = vmatmul.f32.gmra.mxu2 %v5060_v23  ;;  %2381 = vmatmul.f32.gmra.mxu3 %v5060_v23 }
 0x426   : > { %2478 = vmatpush.msra.mxu0 %v2145_v27  ;;  %2501 = vmatpush.msra.mxu1 %v2146_v50  ;;  %v1924_v27 = vld [vmem:[%s6239_s13 + $0x78] sm:$0xff] }
 0x427   : > { %2524 = vmatpush.msra.mxu2 %v2147_v1  ;;  %2547 = vmatpush.msra.mxu3 %v2148_v12  ;;  %v2616_v50 = vld [vmem:[%s6241_s15 + $0x78] sm:$0xff] }
 0x428   : > { %2479 = vmatpush.msra.mxu0 %v2129_v7  ;;  %2502 = vmatpush.msra.mxu1 %v2130_v48  ;;  %v2632_v1 = vld [vmem:[%s6241_s15 + $0xf8] sm:$0xff]  ;;  %v2615_v48 = vld [vmem:[%s6241_s15 + $0x70] sm:$0xff] }
 0x429   : > { %2525 = vmatpush.msra.mxu2 %v2131_v4  ;;  %2548 = vmatpush.msra.mxu3 %v2132_v0  ;;  %v2648_v12 = vld [vmem:[%s6241_s15 + $0x178] sm:$0xff]  ;;  %v2631_v4 = vld [vmem:[%s6241_s15 + $0xf0] sm:$0xff] }
 0x42a   : > { %2480 = vmatpush.msra.mxu0 %v2113_v32  ;;  %2503 = vmatpush.msra.mxu1 %v2114_v3  ;;  %v2664_v7 = vld [vmem:[%s6241_s15 + $0x1f8] sm:$0xff]  ;;  %v2647_v0 = vld [vmem:[%s6241_s15 + $0x170] sm:$0xff]  ;;  %v2614_v3 = vld [vmem:[%s6241_s15 + $0x68] sm:$0xff] }
 0x42b   : > { %2526 = vmatpush.msra.mxu2 %v2115_v58  ;;  %2549 = vmatpush.msra.mxu3 %v2116_v62  ;;  %v2663_v32 = vld [vmem:[%s6241_s15 + $0x1f0] sm:$0xff]  ;;  %v2630_v58 = vld [vmem:[%s6241_s15 + $0xe8] sm:$0xff] }
 0x42c   : > { %2481 = vmatpush.msra.mxu0 %v2097_v6  ;;  %2504 = vmatpush.msra.mxu1 %v2098_v11  ;;  %v2646_v62 = vld [vmem:[%s6241_s15 + $0x168] sm:$0xff]  ;;  %v2613_v11 = vld [vmem:[%s6241_s15 + $0x60] sm:$0xff] }
 0x42d   : > { %2527 = vmatpush.msra.mxu2 %v2099_v46  ;;  %2550 = vmatpush.msra.mxu3 %v2100_v45  ;;  %v2662_v6 = vld [vmem:[%s6241_s15 + $0x1e8] sm:$0xff]  ;;  %v2629_v46 = vld [vmem:[%s6241_s15 + $0xe0] sm:$0xff] }
 0x42e   : > { %2401 = vmatmul.f32.vlgmr.msrb.gmra.mxu0 %v4921_v55  ;;  %2424 = vmatmul.f32.vlgmr.msrb.gmra.mxu1 %v4921_v55  ;;  %v2645_v45 = vld [vmem:[%s6241_s15 + $0x160] sm:$0xff] }
 0x42f   : > { %2447 = vmatmul.f32.vlgmr.msrb.gmra.mxu2 %v4921_v55  ;;  %2470 = vmatmul.f32.vlgmr.msrb.gmra.mxu3 %v4921_v55 }
 0x430   : > { %2482 = vmatpush.msra.mxu0 %v2081_v59  ;;  %2505 = vmatpush.msra.mxu1 %v2082_v63  ;;  %v2661_v59 = vld [vmem:[%s6241_s15 + $0x1e0] sm:$0xff]  ;;  %v2612_v63 = vld [vmem:[%s6241_s15 + $0x58] sm:$0xff] }
 0x431   : > { %2528 = vmatpush.msra.mxu2 %v2083_v41  ;;  %2551 = vmatpush.msra.mxu3 %v2084_v10  ;;  %v2628_v41 = vld [vmem:[%s6241_s15 + $0xd8] sm:$0xff] }
 0x432   : > { %2483 = vmatpush.msra.mxu0 %v2065_v53  ;;  %2506 = vmatpush.msra.mxu1 %v2066_v57  ;;  %v2644_v10 = vld [vmem:[%s6241_s15 + $0x158] sm:$0xff]  ;;  %v2611_v57 = vld [vmem:[%s6241_s15 + $0x50] sm:$0xff] }
 0x433   : > { %2529 = vmatpush.msra.mxu2 %v2067_v44  ;;  %2552 = vmatpush.msra.mxu3 %v2068_v15  ;;  %v2660_v53 = vld [vmem:[%s6241_s15 + $0x1d8] sm:$0xff]  ;;  %v2627_v44 = vld [vmem:[%s6241_s15 + $0xd0] sm:$0xff] }
 0x434   : > { %2484 = vmatpush.msra.mxu0 %v2049_v39  ;;  %2507 = vmatpush.msra.mxu1 %v2050_v13  ;;  %v2643_v15 = vld [vmem:[%s6241_s15 + $0x150] sm:$0xff]  ;;  %v2610_v13 = vld [vmem:[%s6241_s15 + $0x48] sm:$0xff] }
 0x435   : > { %2530 = vmatpush.msra.mxu2 %v2051_v21  ;;  %2553 = vmatpush.msra.mxu3 %v2052_v19  ;;  %v2659_v39 = vld [vmem:[%s6241_s15 + $0x1d0] sm:$0xff]  ;;  %v2626_v21 = vld [vmem:[%s6241_s15 + $0xc8] sm:$0xff] }
 0x436   : > { %2485 = vmatpush.msra.mxu0 %v2033_v8  ;;  %2508 = vmatpush.msra.mxu1 %v2034_v18  ;;  %v2642_v19 = vld [vmem:[%s6241_s15 + $0x148] sm:$0xff]  ;;  %v2609_v18 = vld [vmem:[%s6241_s15 + $0x40] sm:$0xff] }
 0x437   : > { %2531 = vmatpush.msra.mxu2 %v2035_v51  ;;  %2554 = vmatpush.msra.mxu3 %v2036_v16  ;;  %v2658_v8 = vld [vmem:[%s6241_s15 + $0x1c8] sm:$0xff]  ;;  %v2625_v51 = vld [vmem:[%s6241_s15 + $0xc0] sm:$0xff] }
 0x438   : > { %2404 = vmatmul.f32.gmra.mxu0 %v5060_v23  ;;  %2427 = vmatmul.f32.gmra.mxu1 %v5060_v23  ;;  %v2641_v16 = vld [vmem:[%s6241_s15 + $0x140] sm:$0xff] }
 0x439   : > { %2450 = vmatmul.f32.gmra.mxu2 %v5060_v23  ;;  %2473 = vmatmul.f32.gmra.mxu3 %v5060_v23 }
 0x43a   : > { %2486 = vmatpush.msra.mxu0 %v2017_v22  ;;  %2509 = vmatpush.msra.mxu1 %v2018_v25  ;;  %v2657_v22 = vld [vmem:[%s6241_s15 + $0x1c0] sm:$0xff]  ;;  %v2608_v25 = vld [vmem:[%s6241_s15 + $0x38] sm:$0xff] }
 0x43b   : > { %2532 = vmatpush.msra.mxu2 %v2019_v20  ;;  %2555 = vmatpush.msra.mxu3 %v2020_v2  ;;  %v2624_v20 = vld [vmem:[%s6241_s15 + $0xb8] sm:$0xff] }
 0x43c   : > { %2487 = vmatpush.msra.mxu0 %v2001_v24  ;;  %2510 = vmatpush.msra.mxu1 %v2002_v26  ;;  %v2640_v2 = vld [vmem:[%s6241_s15 + $0x138] sm:$0xff]  ;;  %v2607_v26 = vld [vmem:[%s6241_s15 + $0x30] sm:$0xff] }
 0x43d   : > { %2533 = vmatpush.msra.mxu2 %v2003_v29  ;;  %2556 = vmatpush.msra.mxu3 %v2004_v31  ;;  %v2656_v24 = vld [vmem:[%s6241_s15 + $0x1b8] sm:$0xff]  ;;  %v2623_v29 = vld [vmem:[%s6241_s15 + $0xb0] sm:$0xff] }
 0x43e   : > { %2488 = vmatpush.msra.mxu0 %v1985_v33  ;;  %2511 = vmatpush.msra.mxu1 %v1986_v5  ;;  %v2639_v31 = vld [vmem:[%s6241_s15 + $0x130] sm:$0xff]  ;;  %v2606_v5 = vld [vmem:[%s6241_s15 + $0x28] sm:$0xff] }
 0x43f   : > { %2534 = vmatpush.msra.mxu2 %v1987_v34  ;;  %2557 = vmatpush.msra.mxu3 %v1988_v17  ;;  %v2655_v33 = vld [vmem:[%s6241_s15 + $0x1b0] sm:$0xff]  ;;  %v2622_v34 = vld [vmem:[%s6241_s15 + $0xa8] sm:$0xff] }
 0x440   : > { %2489 = vmatpush.msra.mxu0 %v1969_v28  ;;  %2512 = vmatpush.msra.mxu1 %v1970_v35  ;;  %v2638_v17 = vld [vmem:[%s6241_s15 + $0x128] sm:$0xff]  ;;  %v2605_v35 = vld [vmem:[%s6241_s15 + $0x20] sm:$0xff] }
 0x441   : > { %2535 = vmatpush.msra.mxu2 %v1971_v37  ;;  %2558 = vmatpush.msra.mxu3 %v1972_v42  ;;  %v2654_v28 = vld [vmem:[%s6241_s15 + $0x1a8] sm:$0xff]  ;;  %v2621_v37 = vld [vmem:[%s6241_s15 + $0xa0] sm:$0xff] }
 0x442   : > { %2490 = vmatpush.msra.mxu0 %v1953_v30  ;;  %2513 = vmatpush.msra.mxu1 %v1954_v49  ;;  %v2637_v42 = vld [vmem:[%s6241_s15 + $0x120] sm:$0xff]  ;;  %v2604_v49 = vld [vmem:[%s6241_s15 + $0x18] sm:$0xff] }
 0x443   : > { %2536 = vmatpush.msra.mxu2 %v1955_v52  ;;  %2559 = vmatpush.msra.mxu3 %v1956_v43  ;;  %v2653_v30 = vld [vmem:[%s6241_s15 + $0x1a0] sm:$0xff]  ;;  %v2620_v52 = vld [vmem:[%s6241_s15 + $0x98] sm:$0xff] }
 0x444   : > { %2491 = vmatpush.msra.mxu0 %v1937_v47  ;;  %2514 = vmatpush.msra.mxu1 %v1938_v38  ;;  %v2636_v43 = vld [vmem:[%s6241_s15 + $0x118] sm:$0xff]  ;;  %v2603_v38 = vld [vmem:[%s6241_s15 + $0x10] sm:$0xff] }
 0x445   : > { %2537 = vmatpush.msra.mxu2 %v1939_v54  ;;  %2560 = vmatpush.msra.mxu3 %v1940_v36  ;;  %v2652_v47 = vld [vmem:[%s6241_s15 + $0x198] sm:$0xff]  ;;  %v2619_v54 = vld [vmem:[%s6241_s15 + $0x90] sm:$0xff] }
 0x446   : > { %2492 = vmatpush.msra.mxu0 %v1921_v40  ;;  %2515 = vmatpush.msra.mxu1 %v1922_v56  ;;  %v2635_v36 = vld [vmem:[%s6241_s15 + $0x110] sm:$0xff]  ;;  %v2602_v56 = vld [vmem:[%s6241_s15 + $0x8] sm:$0xff] }
 0x447   : > { %2538 = vmatpush.msra.mxu2 %v1923_v61  ;;  %2561 = vmatpush.msra.mxu3 %v1924_v27  ;;  %v2651_v40 = vld [vmem:[%s6241_s15 + $0x190] sm:$0xff]  ;;  %v2618_v61 = vld [vmem:[%s6241_s15 + $0x88] sm:$0xff] }
 0x448   : > { %2493 = vmatmul.f32.vlgmr.msra.gmra.mxu0 %v4921_v55  ;;  %2516 = vmatmul.f32.vlgmr.msra.gmra.mxu1 %v4921_v55  ;;  %v2634_v27 = vld [vmem:[%s6241_s15 + $0x108] sm:$0xff] }
 0x449   : > { %2539 = vmatmul.f32.vlgmr.msra.gmra.mxu2 %v4921_v55  ;;  %2562 = vmatmul.f32.vlgmr.msra.gmra.mxu3 %v4921_v55 }
 0x44a   : > { %2861 = vmatpush.msrb.mxu0 %v2616_v50  ;;  %2884 = vmatpush.msrb.mxu1 %v2632_v1  ;;  %v2650_v50 = vld [vmem:[%s6241_s15 + $0x188] sm:$0xff]  ;;  %v2601_v1 = vld [vmem:[%s6241_s15] sm:$0xff] }
 0x44b   : > { %2907 = vmatpush.msrb.mxu2 %v2648_v12  ;;  %2930 = vmatpush.msrb.mxu3 %v2664_v7  ;;  %v2617_v12 = vld [vmem:[%s6241_s15 + $0x80] sm:$0xff]  ;;  %v2680_v7 = vld [vmem:[%s6241_s15 + $0x278] sm:$0xff] }
 0x44c   : > { %2862 = vmatpush.msrb.mxu0 %v2615_v48  ;;  %2885 = vmatpush.msrb.mxu1 %v2631_v4  ;;  %v2696_v48 = vld [vmem:[%s6241_s15 + $0x2f8] sm:$0xff]  ;;  %v2633_v4 = vld [vmem:[%s6241_s15 + $0x100] sm:$0xff] }
 0x44d   : > { %2908 = vmatpush.msrb.mxu2 %v2647_v0  ;;  %2931 = vmatpush.msrb.mxu3 %v2663_v32  ;;  %v2649_v0 = vld [vmem:[%s6241_s15 + $0x180] sm:$0xff]  ;;  %v2679_v32 = vld [vmem:[%s6241_s15 + $0x270] sm:$0xff] }
 0x44e   : > { %2863 = vmatpush.msrb.mxu0 %v2614_v3  ;;  %2886 = vmatpush.msrb.mxu1 %v2630_v58  ;;  %v2695_v3 = vld [vmem:[%s6241_s15 + $0x2f0] sm:$0xff]  ;;  %v2712_v58 = vld [vmem:[%s6241_s15 + $0x378] sm:$0xff] }
 0x44f   : > { %2909 = vmatpush.msrb.mxu2 %v2646_v62  ;;  %2932 = vmatpush.msrb.mxu3 %v2662_v6  ;;  %v2728_v62 = vld [vmem:[%s6241_s15 + $0x3f8] sm:$0xff]  ;;  %v2678_v6 = vld [vmem:[%s6241_s15 + $0x268] sm:$0xff] }
 0x450   : > { %2496 = vmatmul.f32.gmra.mxu0 %v5060_v23  ;;  %2519 = vmatmul.f32.gmra.mxu1 %v5060_v23 }
 0x451   : > { %2542 = vmatmul.f32.gmra.mxu2 %v5060_v23  ;;  %2565 = vmatmul.f32.gmra.mxu3 %v5060_v23 }
 0x452   : > { %2864 = vmatpush.msrb.mxu0 %v2613_v11  ;;  %2887 = vmatpush.msrb.mxu1 %v2629_v46  ;;  %v2694_v11 = vld [vmem:[%s6241_s15 + $0x2e8] sm:$0xff]  ;;  %v2711_v46 = vld [vmem:[%s6241_s15 + $0x370] sm:$0xff] }
 0x453   : > { %2910 = vmatpush.msrb.mxu2 %v2645_v45  ;;  %2933 = vmatpush.msrb.mxu3 %v2661_v59  ;;  %v2727_v45 = vld [vmem:[%s6241_s15 + $0x3f0] sm:$0xff]  ;;  %v2677_v59 = vld [vmem:[%s6241_s15 + $0x260] sm:$0xff] }
 0x454   : > { %2865 = vmatpush.msrb.mxu0 %v2612_v63  ;;  %2888 = vmatpush.msrb.mxu1 %v2628_v41  ;;  %v2693_v63 = vld [vmem:[%s6241_s15 + $0x2e0] sm:$0xff]  ;;  %v2710_v41 = vld [vmem:[%s6241_s15 + $0x368] sm:$0xff] }
 0x455   : > { %2911 = vmatpush.msrb.mxu2 %v2644_v10  ;;  %2934 = vmatpush.msrb.mxu3 %v2660_v53  ;;  %v2726_v10 = vld [vmem:[%s6241_s15 + $0x3e8] sm:$0xff]  ;;  %v2676_v53 = vld [vmem:[%s6241_s15 + $0x258] sm:$0xff] }
 0x456   : > { %2866 = vmatpush.msrb.mxu0 %v2611_v57  ;;  %2889 = vmatpush.msrb.mxu1 %v2627_v44  ;;  %v2692_v57 = vld [vmem:[%s6241_s15 + $0x2d8] sm:$0xff]  ;;  %v2709_v44 = vld [vmem:[%s6241_s15 + $0x360] sm:$0xff] }
 0x457   : > { %2912 = vmatpush.msrb.mxu2 %v2643_v15  ;;  %2935 = vmatpush.msrb.mxu3 %v2659_v39  ;;  %v2725_v15 = vld [vmem:[%s6241_s15 + $0x3e0] sm:$0xff]  ;;  %v2675_v39 = vld [vmem:[%s6241_s15 + $0x250] sm:$0xff] }
 0x458   : > { %2867 = vmatpush.msrb.mxu0 %v2610_v13  ;;  %2890 = vmatpush.msrb.mxu1 %v2626_v21  ;;  %v2691_v13 = vld [vmem:[%s6241_s15 + $0x2d0] sm:$0xff]  ;;  %v2708_v21 = vld [vmem:[%s6241_s15 + $0x358] sm:$0xff] }
 0x459   : > { %2913 = vmatpush.msrb.mxu2 %v2642_v19  ;;  %2936 = vmatpush.msrb.mxu3 %v2658_v8  ;;  %v2724_v19 = vld [vmem:[%s6241_s15 + $0x3d8] sm:$0xff]  ;;  %v2674_v8 = vld [vmem:[%s6241_s15 + $0x248] sm:$0xff] }
 0x45a   : > { %2868 = vmatpush.msrb.mxu0 %v2609_v18  ;;  %2891 = vmatpush.msrb.mxu1 %v2625_v51  ;;  %v2690_v18 = vld [vmem:[%s6241_s15 + $0x2c8] sm:$0xff]  ;;  %v2707_v51 = vld [vmem:[%s6241_s15 + $0x350] sm:$0xff] }
 0x45b   : > { %2914 = vmatpush.msrb.mxu2 %v2641_v16  ;;  %2937 = vmatpush.msrb.mxu3 %v2657_v22  ;;  %v2723_v16 = vld [vmem:[%s6241_s15 + $0x3d0] sm:$0xff]  ;;  %v2673_v22 = vld [vmem:[%s6241_s15 + $0x240] sm:$0xff] }
 0x45c   : > { %2869 = vmatpush.msrb.mxu0 %v2608_v25  ;;  %2892 = vmatpush.msrb.mxu1 %v2624_v20  ;;  %v2689_v25 = vld [vmem:[%s6241_s15 + $0x2c0] sm:$0xff]  ;;  %v2706_v20 = vld [vmem:[%s6241_s15 + $0x348] sm:$0xff] }
 0x45d   : > { %2915 = vmatpush.msrb.mxu2 %v2640_v2  ;;  %2938 = vmatpush.msrb.mxu3 %v2656_v24  ;;  %v2722_v2 = vld [vmem:[%s6241_s15 + $0x3c8] sm:$0xff]  ;;  %v2672_v24 = vld [vmem:[%s6241_s15 + $0x238] sm:$0xff] }
 0x45e   : > { %2870 = vmatpush.msrb.mxu0 %v2607_v26  ;;  %2893 = vmatpush.msrb.mxu1 %v2623_v29  ;;  %v2688_v26 = vld [vmem:[%s6241_s15 + $0x2b8] sm:$0xff]  ;;  %v2705_v29 = vld [vmem:[%s6241_s15 + $0x340] sm:$0xff] }
 0x45f   : > { %2916 = vmatpush.msrb.mxu2 %v2639_v31  ;;  %2939 = vmatpush.msrb.mxu3 %v2655_v33  ;;  %v2721_v31 = vld [vmem:[%s6241_s15 + $0x3c0] sm:$0xff] }
 0x460   : > { %2871 = vmatpush.msrb.mxu0 %v2606_v5  ;;  %2894 = vmatpush.msrb.mxu1 %v2622_v34  ;;  %v5645_v33 = vld [vmem:[%s6240_s14] sm:$0xff]  ;;  %v2671_v5 = vld [vmem:[%s6241_s15 + $0x230] sm:$0xff] }
 0x461   : > { %2917 = vmatpush.msrb.mxu2 %v2638_v17  ;;  %2940 = vmatpush.msrb.mxu3 %v2654_v28  ;;  %v2687_v34 = vld [vmem:[%s6241_s15 + $0x2b0] sm:$0xff]  ;;  %v2704_v17 = vld [vmem:[%s6241_s15 + $0x338] sm:$0xff] }
 0x462   : > { %2872 = vmatpush.msrb.mxu0 %v2605_v35  ;;  %2895 = vmatpush.msrb.mxu1 %v2621_v37  ;;  %v2720_v28 = vld [vmem:[%s6241_s15 + $0x3b8] sm:$0xff]  ;;  %v2670_v35 = vld [vmem:[%s6241_s15 + $0x228] sm:$0xff] }
 0x463   : > { %2918 = vmatpush.msrb.mxu2 %v2637_v42  ;;  %2941 = vmatpush.msrb.mxu3 %v2653_v30  ;;  %v2686_v37 = vld [vmem:[%s6241_s15 + $0x2a8] sm:$0xff]  ;;  %v2169_v42 = vperm.slane %v5645_v33, 0  ;;  %v2170_v30 = vperm.slane %v5645_v33, 1 }
 0x464   : > { %2873 = vmatpush.msrb.mxu0 %v2604_v49  ;;  %2896 = vmatpush.msrb.mxu1 %v2620_v52  ;;  %v2703_v49 = vld [vmem:[%s6241_s15 + $0x330] sm:$0xff] }
 0x465   : > { %2919 = vmatpush.msrb.mxu2 %v2636_v43  ;;  %2942 = vmatpush.msrb.mxu3 %v2652_v47  ;;  %v2719_v52 = vld [vmem:[%s6241_s15 + $0x3b0] sm:$0xff] }
 0x466   : > { %2874 = vmatpush.msrb.mxu0 %v2603_v38  ;;  %2897 = vmatpush.msrb.mxu1 %v2619_v54  ;;  %v2669_v38 = vld [vmem:[%s6241_s15 + $0x220] sm:$0xff] }
 0x467   : > { %2920 = vmatpush.msrb.mxu2 %v2635_v36  ;;  %2943 = vmatpush.msrb.mxu3 %v2651_v40  ;;  %v2685_v54 = vld [vmem:[%s6241_s15 + $0x2a0] sm:$0xff]  ;;  %v2702_v36 = vld [vmem:[%s6241_s15 + $0x328] sm:$0xff] }
 0x468   : > { %2875 = vmatpush.msrb.mxu0 %v2602_v56  ;;  %2898 = vmatpush.msrb.mxu1 %v2618_v61  ;;  %v2718_v40 = vld [vmem:[%s6241_s15 + $0x3a8] sm:$0xff]  ;;  %v2668_v56 = vld [vmem:[%s6241_s15 + $0x218] sm:$0xff] }
 0x469   : > { %2921 = vmatpush.msrb.mxu2 %v2634_v27  ;;  %2944 = vmatpush.msrb.mxu3 %v2650_v50  ;;  %v2684_v61 = vld [vmem:[%s6241_s15 + $0x298] sm:$0xff] }
 0x46a   : > { %2876 = vmatpush.msrb.mxu0 %v2601_v1  ;;  %2899 = vmatpush.msrb.mxu1 %v2617_v12  ;;  %v2701_v1 = vld [vmem:[%s6241_s15 + $0x320] sm:$0xff] }
 0x46b   : > { %2922 = vmatpush.msrb.mxu2 %v2633_v4  ;;  %2945 = vmatpush.msrb.mxu3 %v2649_v0  ;;  %v2717_v12 = vld [vmem:[%s6241_s15 + $0x3a0] sm:$0xff]  ;;  %v2700_v4 = vld [vmem:[%s6241_s15 + $0x318] sm:$0xff] }
 0x46c   : > { %2953 = vmatpush.msra.mxu0 %v2680_v7  ;;  %2976 = vmatpush.msra.mxu1 %v2696_v48  ;;  %v2667_v7 = vld [vmem:[%s6241_s15 + $0x210] sm:$0xff]  ;;  %v2716_v0 = vld [vmem:[%s6241_s15 + $0x398] sm:$0xff] }
 0x46d   : > { %2999 = vmatpush.msra.mxu2 %v2712_v58  ;;  %3022 = vmatpush.msra.mxu3 %v2728_v62  ;;  %v2683_v48 = vld [vmem:[%s6241_s15 + $0x290] sm:$0xff]  ;;  %v2666_v58 = vld [vmem:[%s6241_s15 + $0x208] sm:$0xff] }
 0x46e   : > { %2954 = vmatpush.msra.mxu0 %v2679_v32  ;;  %2977 = vmatpush.msra.mxu1 %v2695_v3  ;;  %v2682_v62 = vld [vmem:[%s6241_s15 + $0x288] sm:$0xff] }
 0x46f   : > { %3000 = vmatpush.msra.mxu2 %v2711_v46  ;;  %3023 = vmatpush.msra.mxu3 %v2727_v45 }
 0x470   : > { %2955 = vmatpush.msra.mxu0 %v2678_v6  ;;  %2978 = vmatpush.msra.mxu1 %v2694_v11  ;;  %v2171_v6 = vperm.slane %v5645_v33, 2  ;;  %v2172_v11 = vperm.slane %v5645_v33, 3 }
 0x471   : > { %3001 = vmatpush.msra.mxu2 %v2710_v41  ;;  %3024 = vmatpush.msra.mxu3 %v2726_v10  ;;  %v2744_v41 = vld [vmem:[%s6241_s15 + $0x478] sm:$0xff] }
 0x472   : > { %2956 = vmatpush.msra.mxu0 %v2677_v59  ;;  %2979 = vmatpush.msra.mxu1 %v2693_v63  ;;  %v2665_v59 = vld [vmem:[%s6241_s15 + $0x200] sm:$0xff]  ;;  %v2760_v10 = vld [vmem:[%s6241_s15 + $0x4f8] sm:$0xff] }
 0x473   : > { %3002 = vmatpush.msra.mxu2 %v2709_v44  ;;  %3025 = vmatpush.msra.mxu3 %v2725_v15  ;;  %v2681_v63 = vld [vmem:[%s6241_s15 + $0x280] sm:$0xff]  ;;  %v2699_v44 = vld [vmem:[%s6241_s15 + $0x310] sm:$0xff] }
 0x474   : > { %2957 = vmatpush.msra.mxu0 %v2676_v53  ;;  %2980 = vmatpush.msra.mxu1 %v2692_v57  ;;  %v2715_v15 = vld [vmem:[%s6241_s15 + $0x390] sm:$0xff] }
 0x475   : > { %3003 = vmatpush.msra.mxu2 %v2708_v21  ;;  %3026 = vmatpush.msra.mxu3 %v2724_v19  ;;  %v2698_v21 = vld [vmem:[%s6241_s15 + $0x308] sm:$0xff] }
 0x476   : > { %2958 = vmatpush.msra.mxu0 %v2675_v39  ;;  %2981 = vmatpush.msra.mxu1 %v2691_v13  ;;  %v2743_v39 = vld [vmem:[%s6241_s15 + $0x470] sm:$0xff]  ;;  %v2714_v19 = vld [vmem:[%s6241_s15 + $0x388] sm:$0xff] }
 0x477   : > { %3004 = vmatpush.msra.mxu2 %v2707_v51  ;;  %3027 = vmatpush.msra.mxu3 %v2723_v16  ;;  %v2759_v13 = vld [vmem:[%s6241_s15 + $0x4f0] sm:$0xff] }
 0x478   : > { %2959 = vmatpush.msra.mxu0 %v2674_v8  ;;  %2982 = vmatpush.msra.mxu1 %v2690_v18  ;;  %v2742_v8 = vld [vmem:[%s6241_s15 + $0x468] sm:$0xff] }
 0x479   : > { %3005 = vmatpush.msra.mxu2 %v2706_v20  ;;  %3028 = vmatpush.msra.mxu3 %v2722_v2  ;;  %v2218_v43 = vpop.f32.mrf.mxu0  ;;  %v2241_v47 = vpop.f32.mrf.mxu1  ;;  %v2758_v18 = vld [vmem:[%s6241_s15 + $0x4e8] sm:$0xff]  ;;  %v2741_v20 = vld [vmem:[%s6241_s15 + $0x460] sm:$0xff] }
 0x47a   : > { %2960 = vmatpush.msra.mxu0 %v2673_v22  ;;  %2983 = vmatpush.msra.mxu1 %v2689_v25  ;;  %v2219_v27 = vadd.f32 %v2218_v43, %v2169_v42  ;;  %v2242_v50 = vadd.f32 %v2241_v47, %v2170_v30  ;;  %v2697_v22 = vld [vmem:[%s6241_s15 + $0x300] sm:$0xff] }
 0x47b   : > { %3006 = vmatpush.msra.mxu2 %v2705_v29  ;;  %3029 = vmatpush.msra.mxu3 %v2721_v31  ;;  %v2713_v25 = vld [vmem:[%s6241_s15 + $0x380] sm:$0xff]  ;;  %v2740_v29 = vld [vmem:[%s6241_s15 + $0x458] sm:$0xff] }
 0x47c   : > { %2961 = vmatpush.msra.mxu0 %v2672_v24  ;;  %2984 = vmatpush.msra.mxu1 %v2688_v26  ;;  %v2569_v32 = vmax.f32 %v2219_v27, 0.0  ;;  %v2570_v3 = vmax.f32 %v2242_v50, 0.0  ;;  %v2757_v2 = vld [vmem:[%s6241_s15 + $0x4e0] sm:$0xff]  ;;  %v2776_v24 = vld [vmem:[%s6241_s15 + $0x578] sm:$0xff] }
 0x47d   : > { %3007 = vmatpush.msra.mxu2 %v2704_v17  ;;  %3030 = vmatpush.msra.mxu3 %v2720_v28  ;;  %v2792_v26 = vld [vmem:[%s6241_s15 + $0x5f8] sm:$0xff]  ;;  %v2775_v17 = vld [vmem:[%s6241_s15 + $0x570] sm:$0xff] }
 0x47e   : > { %2962 = vmatpush.msra.mxu0 %v2671_v5  ;;  %2985 = vmatpush.msra.mxu1 %v2687_v34  ;;  %v2756_v31 = vld [vmem:[%s6241_s15 + $0x4d8] sm:$0xff]  ;;  %v2791_v28 = vld [vmem:[%s6241_s15 + $0x5f0] sm:$0xff] }
 0x47f   : > { %3008 = vmatpush.msra.mxu2 %v2703_v49  ;;  %3031 = vmatpush.msra.mxu3 %v2719_v52  ;;  %v2774_v49 = vld [vmem:[%s6241_s15 + $0x568] sm:$0xff]  ;;  %v2772_v27 = vld [vmem:[%s6241_s15 + $0x558] sm:$0xff] }
 0x480   : > { %2963 = vmatpush.msra.mxu0 %v2670_v35  ;;  %2986 = vmatpush.msra.mxu1 %v2686_v37  ;;  %v2264_v46 = vpop.f32.mrf.mxu2  ;;  %v2287_v45 = vpop.f32.mrf.mxu3  ;;  %v2739_v35 = vld [vmem:[%s6241_s15 + $0x450] sm:$0xff]  ;;  %v2790_v52 = vld [vmem:[%s6241_s15 + $0x5e8] sm:$0xff]  ;;  %v2788_v50 = vld [vmem:[%s6241_s15 + $0x5d8] sm:$0xff] }
 0x481   : > { %3009 = vmatpush.msra.mxu2 %v2702_v36  ;;  %3032 = vmatpush.msra.mxu3 %v2718_v40  ;;  %v2265_v53 = vadd.f32 %v2264_v46, %v2171_v6  ;;  %v2288_v57 = vadd.f32 %v2287_v45, %v2172_v11  ;;  %v2755_v37 = vld [vmem:[%s6241_s15 + $0x4d0] sm:$0xff]  ;;  %v2773_v36 = vld [vmem:[%s6241_s15 + $0x560] sm:$0xff] }
 0x482   : > { %2964 = vmatpush.msra.mxu0 %v2669_v38  ;;  %2987 = vmatpush.msra.mxu1 %v2685_v54  ;;  %v2738_v38 = vld [vmem:[%s6241_s15 + $0x448] sm:$0xff]  ;;  %v2753_v40 = vld [vmem:[%s6241_s15 + $0x4c0] sm:$0xff] }
 0x483   : > { %3010 = vmatpush.msra.mxu2 %v2701_v1  ;;  %3033 = vmatpush.msra.mxu3 %v2717_v12  ;;  %v2571_v51 = vmax.f32 %v2265_v53, 0.0  ;;  %v2572_v16 = vmax.f32 %v2288_v57, 0.0  ;;  %v2754_v54 = vld [vmem:[%s6241_s15 + $0x4c8] sm:$0xff] }
 0x484   : > { %2965 = vmatpush.msra.mxu0 %v2668_v56  ;;  %2988 = vmatpush.msra.mxu1 %v2684_v61  ;;  %v2734_v53 = vld [vmem:[%s6241_s15 + $0x428] sm:$0xff] }
 0x485   : > { %3011 = vmatpush.msra.mxu2 %v2700_v4  ;;  %3034 = vmatpush.msra.mxu3 %v2716_v0  ;;  %v2173_v4 = vperm.slane %v5645_v33, 4  ;;  %v2174_v0 = vperm.slane %v5645_v33, 5  ;;  %v2750_v57 = vld [vmem:[%s6241_s15 + $0x4a8] sm:$0xff] }
 0x486   : > { %2966 = vmatpush.msra.mxu0 %v2667_v7  ;;  %2989 = vmatpush.msra.mxu1 %v2683_v48  ;;  %v2736_v7 = vld [vmem:[%s6241_s15 + $0x438] sm:$0xff] }
 0x487   : > { %2877 = vmatmul.f32.vlgmr.msrb.gmra.mxu0 %v2569_v32  ;;  %2900 = vmatmul.f32.vlgmr.msrb.gmra.mxu1 %v2570_v3  ;;  %v2752_v48 = vld [vmem:[%s6241_s15 + $0x4b8] sm:$0xff]  ;;  %v2771_v32 = vld [vmem:[%s6241_s15 + $0x550] sm:$0xff] }
 0x488   : > { %2967 = vmatpush.msra.mxu0 %v2666_v58  ;;  %2990 = vmatpush.msra.mxu1 %v2682_v62  ;;  %v2787_v3 = vld [vmem:[%s6241_s15 + $0x5d0] sm:$0xff] }
 0x489   : > { %3012 = vmatpush.msra.mxu2 %v2699_v44  ;;  %3035 = vmatpush.msra.mxu3 %v2715_v15 }
 0x48a   : > { %2968 = vmatpush.msra.mxu0 %v2665_v59  ;;  %2991 = vmatpush.msra.mxu1 %v2681_v63  ;;  %v2735_v59 = vld [vmem:[%s6241_s15 + $0x430] sm:$0xff] }
 0x48b   : > { %3013 = vmatpush.msra.mxu2 %v2698_v21  ;;  %3036 = vmatpush.msra.mxu3 %v2714_v19  ;;  %v2751_v63 = vld [vmem:[%s6241_s15 + $0x4b0] sm:$0xff]  ;;  %v2733_v21 = vld [vmem:[%s6241_s15 + $0x420] sm:$0xff] }
 0x48c   : > { %3045 = vmatpush.msrb.mxu0 %v2744_v41  ;;  %3068 = vmatpush.msrb.mxu1 %v2760_v10  ;;  %v2749_v19 = vld [vmem:[%s6241_s15 + $0x4a0] sm:$0xff] }
 0x48d   : > { %3014 = vmatpush.msra.mxu2 %v2697_v22  ;;  %3037 = vmatpush.msra.mxu3 %v2713_v25  ;;  %v2768_v22 = vld [vmem:[%s6241_s15 + $0x538] sm:$0xff] }
 0x48e   : > { %3046 = vmatpush.msrb.mxu0 %v2743_v39  ;;  %3069 = vmatpush.msrb.mxu1 %v2759_v13  ;;  %v2769_v39 = vld [vmem:[%s6241_s15 + $0x540] sm:$0xff]  ;;  %v2784_v25 = vld [vmem:[%s6241_s15 + $0x5b8] sm:$0xff] }
 0x48f   : > { %2923 = vmatmul.f32.vlgmr.msrb.gmra.mxu2 %v2571_v51  ;;  %2946 = vmatmul.f32.vlgmr.msrb.gmra.mxu3 %v2572_v16  ;;  %v2785_v13 = vld [vmem:[%s6241_s15 + $0x5c0] sm:$0xff] }
 0x490   : > { %3047 = vmatpush.msrb.mxu0 %v2742_v8  ;;  %3070 = vmatpush.msrb.mxu1 %v2758_v18  ;;  %v2221_v5 = vpop.f32.mrf.mxu0  ;;  %v2244_v34 = vpop.f32.mrf.mxu1  ;;  %v2175_v8 = vperm.slane %v5645_v33, 6  ;;  %v2176_v18 = vperm.slane %v5645_v33, 7  ;;  %v2822_v33 = vld [vmem:[%s6241_s15 + $0x6e8] sm:$0xff] }
 0x491   : > { %3091 = vmatpush.msrb.mxu2 %v2776_v24  ;;  %3114 = vmatpush.msrb.mxu3 %v2792_v26  ;;  %v2222_v43 = vadd.f32 %v2221_v5, %v2169_v42  ;;  %v2245_v47 = vadd.f32 %v2244_v34, %v2170_v30  ;;  %v2789_v42 = vld [vmem:[%s6241_s15 + $0x5e0] sm:$0xff]  ;;  %v2732_v24 = vld [vmem:[%s6241_s15 + $0x418] sm:$0xff] }
 0x492   : > { %3048 = vmatpush.msrb.mxu0 %v2741_v20  ;;  %3071 = vmatpush.msrb.mxu1 %v2757_v2  ;;  %v2737_v30 = vld [vmem:[%s6241_s15 + $0x440] sm:$0xff]  ;;  %v2748_v26 = vld [vmem:[%s6241_s15 + $0x498] sm:$0xff] }
 0x493   : > { %3092 = vmatpush.msrb.mxu2 %v2775_v17  ;;  %3115 = vmatpush.msrb.mxu3 %v2791_v28  ;;  %v2585_v56 = vmax.f32 %v2222_v43, 0.0  ;;  %v2586_v61 = vmax.f32 %v2245_v47, 0.0  ;;  %v2731_v17 = vld [vmem:[%s6241_s15 + $0x410] sm:$0xff]  ;;  %v2730_v43 = vld [vmem:[%s6241_s15 + $0x408] sm:$0xff] }
 0x494   : > { %3049 = vmatpush.msrb.mxu0 %v2740_v29  ;;  %3072 = vmatpush.msrb.mxu1 %v2756_v31  ;;  %v2767_v29 = vld [vmem:[%s6241_s15 + $0x530] sm:$0xff]  ;;  %v2746_v47 = vld [vmem:[%s6241_s15 + $0x488] sm:$0xff] }
 0x495   : > { %3093 = vmatpush.msrb.mxu2 %v2774_v49  ;;  %3116 = vmatpush.msrb.mxu3 %v2790_v52  ;;  %v2783_v31 = vld [vmem:[%s6241_s15 + $0x5b0] sm:$0xff]  ;;  %v2766_v49 = vld [vmem:[%s6241_s15 + $0x528] sm:$0xff] }
 0x496   : > { %3050 = vmatpush.msrb.mxu0 %v2739_v35  ;;  %3073 = vmatpush.msrb.mxu1 %v2755_v37  ;;  %v2747_v28 = vld [vmem:[%s6241_s15 + $0x490] sm:$0xff]  ;;  %v2782_v52 = vld [vmem:[%s6241_s15 + $0x5a8] sm:$0xff] }
 0x497   : > { %v2267_v1 = vpop.f32.mrf.mxu2  ;;  %v2290_v12 = vpop.f32.mrf.mxu3  ;;  %3094 = vmatpush.msrb.mxu2 %v2773_v36  ;;  %3117 = vmatpush.msrb.mxu3 %v2789_v42 }
 0x498   : > { %3051 = vmatpush.msrb.mxu0 %v2738_v38  ;;  %3074 = vmatpush.msrb.mxu1 %v2754_v54  ;;  %v2268_v58 = vadd.f32 %v2267_v1, %v2171_v6  ;;  %v2291_v62 = vadd.f32 %v2290_v12, %v2172_v11  ;;  %v2310_v46 = vpop.f32.mrf.mxu0  ;;  %v2333_v45 = vpop.f32.mrf.mxu1  ;;  %v2770_v6 = vld [vmem:[%s6241_s15 + $0x548] sm:$0xff] }
 0x499   : > { %3095 = vmatpush.msrb.mxu2 %v2772_v27  ;;  %3118 = vmatpush.msrb.mxu3 %v2788_v50  ;;  %v2786_v11 = vld [vmem:[%s6241_s15 + $0x5c8] sm:$0xff]  ;;  %v2311_v41 = vadd.f32 %v2310_v46, %v2173_v4  ;;  %v2334_v10 = vadd.f32 %v2333_v45, %v2174_v0  ;;  %v2764_v27 = vld [vmem:[%s6241_s15 + $0x518] sm:$0xff]  ;;  %v2823_v46 = vld [vmem:[%s6241_s15 + $0x6f0] sm:$0xff] }
 0x49a   : > { %3052 = vmatpush.msrb.mxu0 %v2737_v30  ;;  %3075 = vmatpush.msrb.mxu1 %v2753_v40  ;;  %v2587_v44 = vmax.f32 %v2268_v58, 0.0  ;;  %v2588_v15 = vmax.f32 %v2291_v62, 0.0  ;;  %v2765_v30 = vld [vmem:[%s6241_s15 + $0x520] sm:$0xff]  ;;  %v2780_v50 = vld [vmem:[%s6241_s15 + $0x598] sm:$0xff]  ;;  %v2779_v58 = vld [vmem:[%s6241_s15 + $0x590] sm:$0xff] }
 0x49b   : > { %2880 = vmatmul.f32.gmra.mxu0 %v2585_v56  ;;  %2903 = vmatmul.f32.gmra.mxu1 %v2586_v61  ;;  %v2573_v51 = vmax.f32 %v2311_v41, 0.0  ;;  %v2574_v16 = vmax.f32 %v2334_v10, 0.0  ;;  %v2781_v40 = vld [vmem:[%s6241_s15 + $0x5a0] sm:$0xff]  ;;  %v2807_v62 = vld [vmem:[%s6241_s15 + $0x670] sm:$0xff]  ;;  %v2778_v41 = vld [vmem:[%s6241_s15 + $0x588] sm:$0xff] }
 0x49c   : > { %3053 = vmatpush.msrb.mxu0 %v2736_v7  ;;  %3076 = vmatpush.msrb.mxu1 %v2752_v48  ;;  %v2729_v56 = vld [vmem:[%s6241_s15 + $0x400] sm:$0xff]  ;;  %v2808_v7 = vld [vmem:[%s6241_s15 + $0x678] sm:$0xff] }
 0x49d   : > { %3096 = vmatpush.msrb.mxu2 %v2771_v32  ;;  %3119 = vmatpush.msrb.mxu3 %v2787_v3  ;;  %v2745_v61 = vld [vmem:[%s6241_s15 + $0x480] sm:$0xff]  ;;  %v2824_v48 = vld [vmem:[%s6241_s15 + $0x6f8] sm:$0xff]  ;;  %v2763_v3 = vld [vmem:[%s6241_s15 + $0x510] sm:$0xff] }
 0x49e   : > { %3054 = vmatpush.msrb.mxu0 %v2735_v59  ;;  %3077 = vmatpush.msrb.mxu1 %v2751_v63 }
 0x49f   : > { %3097 = vmatpush.msrb.mxu2 %v2770_v6  ;;  %3120 = vmatpush.msrb.mxu3 %v2786_v11  ;;  %v2356_v20 = vpop.f32.mrf.mxu2  ;;  %v2379_v2 = vpop.f32.mrf.mxu3  ;;  %v2762_v11 = vld [vmem:[%s6241_s15 + $0x508] sm:$0xff] }
 0x4a0   : > { %3055 = vmatpush.msrb.mxu0 %v2734_v53  ;;  %3078 = vmatpush.msrb.mxu1 %v2750_v57  ;;  %v2357_v5 = vadd.f32 %v2356_v20, %v2175_v8  ;;  %v2380_v34 = vadd.f32 %v2379_v2, %v2176_v18  ;;  %v2806_v57 = vld [vmem:[%s6241_s15 + $0x668] sm:$0xff] }
 0x4a1   : > { %3098 = vmatpush.msrb.mxu2 %v2769_v39  ;;  %3121 = vmatpush.msrb.mxu3 %v2785_v13  ;;  %v2313_v35 = vpop.f32.mrf.mxu0  ;;  %v2336_v37 = vpop.f32.mrf.mxu1 }
 0x4a2   : > { %2926 = vmatmul.f32.gmra.mxu2 %v2587_v44  ;;  %2949 = vmatmul.f32.gmra.mxu3 %v2588_v15  ;;  %v2575_v38 = vmax.f32 %v2357_v5, 0.0  ;;  %v2576_v54 = vmax.f32 %v2380_v34, 0.0  ;;  %v2314_v36 = vadd.f32 %v2313_v35, %v2173_v4  ;;  %v2337_v42 = vadd.f32 %v2336_v37, %v2174_v0  ;;  %v5956_v4 = vld [vmem:[%s6240_s14 + $0x8] sm:$0xff]  ;;  %v2761_v44 = vld [vmem:[%s6241_s15 + $0x500] sm:$0xff] }
 0x4a3   : > { %3056 = vmatpush.msrb.mxu0 %v2733_v21  ;;  %3079 = vmatpush.msrb.mxu1 %v2749_v19  ;;  %v2177_v45 = vperm.slane %v5956_v4, 0  ;;  %v2178_v59 = vperm.slane %v5956_v4, 1  ;;  %v2777_v15 = vld [vmem:[%s6241_s15 + $0x580] sm:$0xff]  ;;  %v2179_v20 = vperm.slane %v5956_v4, 2  ;;  %v2180_v2 = vperm.slane %v5956_v4, 3 }
 0x4a4   : > { %3099 = vmatpush.msrb.mxu2 %v2768_v22  ;;  %3122 = vmatpush.msrb.mxu3 %v2784_v25  ;;  %v2589_v1 = vmax.f32 %v2314_v36, 0.0  ;;  %v2590_v12 = vmax.f32 %v2337_v42, 0.0  ;;  %v2805_v21 = vld [vmem:[%s6241_s15 + $0x660] sm:$0xff]  ;;  %v2804_v22 = vld [vmem:[%s6241_s15 + $0x658] sm:$0xff] }
 0x4a5   : > { %2969 = vmatmul.f32.vlgmr.msra.gmra.mxu0 %v2573_v51  ;;  %2992 = vmatmul.f32.vlgmr.msra.gmra.mxu1 %v2574_v16  ;;  %v2821_v19 = vld [vmem:[%s6241_s15 + $0x6e0] sm:$0xff]  ;;  %v2840_v51 = vld [vmem:[%s6241_s15 + $0x778] sm:$0xff] }
 0x4a6   : > { %3057 = vmatpush.msrb.mxu0 %v2732_v24  ;;  %3080 = vmatpush.msrb.mxu1 %v2748_v26  ;;  %v2856_v16 = vld [vmem:[%s6241_s15 + $0x7f8] sm:$0xff]  ;;  %v2837_v36 = vld [vmem:[%s6241_s15 + $0x760] sm:$0xff] }
 0x4a7   : > { %3100 = vmatpush.msrb.mxu2 %v2767_v29  ;;  %3123 = vmatpush.msrb.mxu3 %v2783_v31  ;;  %v2820_v25 = vld [vmem:[%s6241_s15 + $0x6d8] sm:$0xff]  ;;  %v2839_v29 = vld [vmem:[%s6241_s15 + $0x770] sm:$0xff]  ;;  %v2853_v42 = vld [vmem:[%s6241_s15 + $0x7e0] sm:$0xff] }
 0x4a8   : > { %3058 = vmatpush.msrb.mxu0 %v2731_v17  ;;  %3081 = vmatpush.msrb.mxu1 %v2747_v28  ;;  %v2359_v0 = vpop.f32.mrf.mxu2  ;;  %v2382_v32 = vpop.f32.mrf.mxu3  ;;  %v2855_v31 = vld [vmem:[%s6241_s15 + $0x7f0] sm:$0xff] }
 0x4a9   : > { %3101 = vmatpush.msrb.mxu2 %v2766_v49  ;;  %3124 = vmatpush.msrb.mxu3 %v2782_v52  ;;  %v2360_v63 = vadd.f32 %v2359_v0, %v2175_v8  ;;  %v2383_v6 = vadd.f32 %v2382_v32, %v2176_v18  ;;  %v2803_v17 = vld [vmem:[%s6241_s15 + $0x650] sm:$0xff]  ;;  %v2838_v49 = vld [vmem:[%s6241_s15 + $0x768] sm:$0xff] }
 0x4aa   : > { %3059 = vmatpush.msrb.mxu0 %v2730_v43  ;;  %3082 = vmatpush.msrb.mxu1 %v2746_v47  ;;  %v2819_v28 = vld [vmem:[%s6241_s15 + $0x6d0] sm:$0xff]  ;;  %v2854_v52 = vld [vmem:[%s6241_s15 + $0x7e8] sm:$0xff] }
 0x4ab   : > { %3102 = vmatpush.msrb.mxu2 %v2765_v30  ;;  %3125 = vmatpush.msrb.mxu3 %v2781_v40  ;;  %v2402_v10 = vpop.f32.mrf.mxu0  ;;  %v2425_v53 = vpop.f32.mrf.mxu1  ;;  %v2591_v8 = vmax.f32 %v2360_v63, 0.0  ;;  %v2592_v18 = vmax.f32 %v2383_v6, 0.0 }
 0x4ac   : > { %3015 = vmatmul.f32.vlgmr.msra.gmra.mxu2 %v2575_v38  ;;  %3038 = vmatmul.f32.vlgmr.msra.gmra.mxu3 %v2576_v54  ;;  %v2403_v39 = vadd.f32 %v2402_v10, %v2177_v45  ;;  %v2426_v13 = vadd.f32 %v2425_v53, %v2178_v59  ;;  %v2802_v38 = vld [vmem:[%s6241_s15 + $0x648] sm:$0xff] }
 0x4ad   : > { %3060 = vmatpush.msrb.mxu0 %v2729_v56  ;;  %3083 = vmatpush.msrb.mxu1 %v2745_v61  ;;  %v2818_v54 = vld [vmem:[%s6241_s15 + $0x6c8] sm:$0xff]  ;;  %v2801_v56 = vld [vmem:[%s6241_s15 + $0x640] sm:$0xff] }
 0x4ae   : > { %3103 = vmatpush.msrb.mxu2 %v2764_v27  ;;  %3126 = vmatpush.msrb.mxu3 %v2780_v50  ;;  %v2577_v24 = vmax.f32 %v2403_v39, 0.0  ;;  %v2578_v26 = vmax.f32 %v2426_v13, 0.0  ;;  %v2817_v61 = vld [vmem:[%s6241_s15 + $0x6c0] sm:$0xff]  ;;  %v2798_v10 = vld [vmem:[%s6241_s15 + $0x628] sm:$0xff] }
 0x4af   : > { %3137 = vmatpush.msra.mxu0 %v2808_v7  ;;  %3160 = vmatpush.msra.mxu1 %v2824_v48  ;;  %v2800_v7 = vld [vmem:[%s6241_s15 + $0x638] sm:$0xff]  ;;  %v2814_v53 = vld [vmem:[%s6241_s15 + $0x6a8] sm:$0xff] }
 0x4b0   : > { %2972 = vmatmul.f32.gmra.mxu0 %v2589_v1  ;;  %2995 = vmatmul.f32.gmra.mxu1 %v2590_v12  ;;  %v2836_v1 = vld [vmem:[%s6241_s15 + $0x758] sm:$0xff] }
 0x4b1   : > { %3104 = vmatpush.msrb.mxu2 %v2763_v3  ;;  %3127 = vmatpush.msrb.mxu3 %v2779_v58  ;;  %v2852_v12 = vld [vmem:[%s6241_s15 + $0x7d8] sm:$0xff]  ;;  %v2835_v3 = vld [vmem:[%s6241_s15 + $0x750] sm:$0xff] }
 0x4b2   : > { %3138 = vmatpush.msra.mxu0 %v2807_v62  ;;  %3161 = vmatpush.msra.mxu1 %v2823_v46  ;;  %v2448_v5 = vpop.f32.mrf.mxu2  ;;  %v2471_v34 = vpop.f32.mrf.mxu3  ;;  %v2816_v48 = vld [vmem:[%s6241_s15 + $0x6b8] sm:$0xff]  ;;  %v2851_v58 = vld [vmem:[%s6241_s15 + $0x7d0] sm:$0xff] }
 0x4b3   : > { %3105 = vmatpush.msrb.mxu2 %v2762_v11  ;;  %3128 = vmatpush.msrb.mxu3 %v2778_v41  ;;  %v2449_v35 = vadd.f32 %v2448_v5, %v2179_v20  ;;  %v2472_v37 = vadd.f32 %v2471_v34, %v2180_v2  ;;  %v2834_v11 = vld [vmem:[%s6241_s15 + $0x748] sm:$0xff] }
 0x4b4   : > { %3139 = vmatpush.msra.mxu0 %v2806_v57  ;;  %3162 = vmatpush.msra.mxu1 %v2822_v33  ;;  %v2850_v41 = vld [vmem:[%s6241_s15 + $0x7c8] sm:$0xff]  ;;  %v2833_v57 = vld [vmem:[%s6241_s15 + $0x740] sm:$0xff] }
 0x4b5   : > { %3106 = vmatpush.msrb.mxu2 %v2761_v44  ;;  %3129 = vmatpush.msrb.mxu3 %v2777_v15  ;;  %v2405_v43 = vpop.f32.mrf.mxu0  ;;  %v2428_v47 = vpop.f32.mrf.mxu1  ;;  %v2579_v27 = vmax.f32 %v2449_v35, 0.0  ;;  %v2580_v50 = vmax.f32 %v2472_v37, 0.0  ;;  %v2849_v33 = vld [vmem:[%s6241_s15 + $0x7c0] sm:$0xff]  ;;  %v2830_v5 = vld [vmem:[%s6241_s15 + $0x728] sm:$0xff] }
 0x4b6   : > { %3140 = vmatpush.msra.mxu0 %v2805_v21  ;;  %3163 = vmatpush.msra.mxu1 %v2821_v19  ;;  %v2406_v30 = vadd.f32 %v2405_v43, %v2177_v45  ;;  %v2429_v40 = vadd.f32 %v2428_v47, %v2178_v59  ;;  %v2799_v45 = vld [vmem:[%s6241_s15 + $0x630] sm:$0xff]  ;;  %v2797_v44 = vld [vmem:[%s6241_s15 + $0x620] sm:$0xff]  ;;  %v2832_v21 = vld [vmem:[%s6241_s15 + $0x738] sm:$0xff]  ;;  %v2183_v43 = vperm.slane %v5956_v4, 6  ;;  %v2184_v47 = vperm.slane %v5956_v4, 7 }
 0x4b7   : > { %3183 = vmatpush.msra.mxu2 %v2840_v51  ;;  %3206 = vmatpush.msra.mxu3 %v2856_v16  ;;  %v2815_v59 = vld [vmem:[%s6241_s15 + $0x6b0] sm:$0xff]  ;;  %v2813_v15 = vld [vmem:[%s6241_s15 + $0x6a0] sm:$0xff]  ;;  %v2848_v19 = vld [vmem:[%s6241_s15 + $0x7b8] sm:$0xff]  ;;  %v2181_v51 = vperm.slane %v5956_v4, 4  ;;  %v2182_v16 = vperm.slane %v5956_v4, 5 }
 0x4b8   : > { %3018 = vmatmul.f32.gmra.mxu2 %v2591_v8  ;;  %3041 = vmatmul.f32.gmra.mxu3 %v2592_v18  ;;  %v2593_v0 = vmax.f32 %v2406_v30, 0.0  ;;  %v2594_v32 = vmax.f32 %v2429_v40, 0.0  ;;  %v2846_v34 = vld [vmem:[%s6241_s15 + $0x7a8] sm:$0xff]  ;;  %v2828_v30 = vld [vmem:[%s6241_s15 + $0x718] sm:$0xff] }
 0x4b9   : > { %3141 = vmatpush.msra.mxu0 %v2804_v22  ;;  %3164 = vmatpush.msra.mxu1 %v2820_v25  ;;  %v2796_v22 = vld [vmem:[%s6241_s15 + $0x618] sm:$0xff] }
 0x4ba   : > { %3184 = vmatpush.msra.mxu2 %v2839_v29  ;;  %3207 = vmatpush.msra.mxu3 %v2855_v31  ;;  %v2812_v25 = vld [vmem:[%s6241_s15 + $0x698] sm:$0xff] }
 0x4bb   : > { %3061 = vmatmul.f32.vlgmr.msrb.gmra.mxu0 %v2577_v24  ;;  %3084 = vmatmul.f32.vlgmr.msrb.gmra.mxu1 %v2578_v26  ;;  %v2795_v24 = vld [vmem:[%s6241_s15 + $0x610] sm:$0xff]  ;;  %v2844_v4 = vld [vmem:[%s6241_s15 + $0x798] sm:$0xff] }
 0x4bc   : > { %3142 = vmatpush.msra.mxu0 %v2803_v17  ;;  %3165 = vmatpush.msra.mxu1 %v2819_v28  ;;  %v2451_v62 = vpop.f32.mrf.mxu2  ;;  %v2474_v46 = vpop.f32.mrf.mxu3  ;;  %v2811_v26 = vld [vmem:[%s6241_s15 + $0x690] sm:$0xff]  ;;  %v2794_v17 = vld [vmem:[%s6241_s15 + $0x608] sm:$0xff] }
 0x4bd   : > { %3185 = vmatpush.msra.mxu2 %v2838_v49  ;;  %3208 = vmatpush.msra.mxu3 %v2854_v52  ;;  %v2452_v63 = vadd.f32 %v2451_v62, %v2179_v20  ;;  %v2475_v6 = vadd.f32 %v2474_v46, %v2180_v2  ;;  %v2831_v20 = vld [vmem:[%s6241_s15 + $0x730] sm:$0xff]  ;;  %v2810_v28 = vld [vmem:[%s6241_s15 + $0x688] sm:$0xff]  ;;  %v2829_v49 = vld [vmem:[%s6241_s15 + $0x720] sm:$0xff] }
 0x4be   : > { %3143 = vmatpush.msra.mxu0 %v2802_v38  ;;  %3166 = vmatpush.msra.mxu1 %v2818_v54  ;;  %v2847_v2 = vld [vmem:[%s6241_s15 + $0x7b0] sm:$0xff]  ;;  %v2845_v52 = vld [vmem:[%s6241_s15 + $0x7a0] sm:$0xff] }
 0x4bf   : > { %3186 = vmatpush.msra.mxu2 %v2837_v36  ;;  %3209 = vmatpush.msra.mxu3 %v2853_v42  ;;  %v2595_v39 = vmax.f32 %v2452_v63, 0.0  ;;  %v2596_v13 = vmax.f32 %v2475_v6, 0.0  ;;  %v2793_v38 = vld [vmem:[%s6241_s15 + $0x600] sm:$0xff] }
 0x4c0   : > { %3144 = vmatpush.msra.mxu0 %v2801_v56  ;;  %3167 = vmatpush.msra.mxu1 %v2817_v61  ;;  %v2809_v54 = vld [vmem:[%s6241_s15 + $0x680] sm:$0xff] }
 0x4c1   : > { %3187 = vmatpush.msra.mxu2 %v2836_v1  ;;  %3210 = vmatpush.msra.mxu3 %v2852_v12  ;;  %v2843_v1 = vld [vmem:[%s6241_s15 + $0x790] sm:$0xff]  ;;  %v2841_v62 = vld [vmem:[%s6241_s15 + $0x780] sm:$0xff] }
 0x4c2   : > { %3107 = vmatmul.f32.vlgmr.msrb.gmra.mxu2 %v2579_v27  ;;  %3130 = vmatmul.f32.vlgmr.msrb.gmra.mxu3 %v2580_v50  ;;  %v2827_v50 = vld [vmem:[%s6241_s15 + $0x710] sm:$0xff] }
 0x4c3   : > { %3145 = vmatpush.msra.mxu0 %v2800_v7  ;;  %3168 = vmatpush.msra.mxu1 %v2816_v48  ;;  %v2826_v48 = vld [vmem:[%s6241_s15 + $0x708] sm:$0xff] }
 0x4c4   : > { %3188 = vmatpush.msra.mxu2 %v2835_v3  ;;  %3211 = vmatpush.msra.mxu3 %v2851_v58  ;;  %v2825_v58 = vld [vmem:[%s6241_s15 + $0x700] sm:$0xff] }
 0x4c5   : > { %3064 = vmatmul.f32.gmra.mxu0 %v2593_v0  ;;  %3087 = vmatmul.f32.gmra.mxu1 %v2594_v32  ;;  %v2494_v8 = vpop.f32.mrf.mxu0  ;;  %v2517_v18 = vpop.f32.mrf.mxu1  ;;  %v2842_v0 = vld [vmem:[%s6241_s15 + $0x788] sm:$0xff] }
 0x4c6   : > { %3146 = vmatpush.msra.mxu0 %v2799_v45  ;;  %3169 = vmatpush.msra.mxu1 %v2815_v59  ;;  %v2495_v29 = vadd.f32 %v2494_v8, %v2181_v51  ;;  %v2518_v31 = vadd.f32 %v2517_v18, %v2182_v16  ;;  %v3581_v8 = vld [vmem:[%s6242_s16] ss:$0 sm:$0xff] }
 0x4c7   : > { %3189 = vmatpush.msra.mxu2 %v2834_v11  ;;  %3212 = vmatpush.msra.mxu3 %v2850_v41 }
 0x4c8   : > { %3147 = vmatpush.msra.mxu0 %v2798_v10  ;;  %3170 = vmatpush.msra.mxu1 %v2814_v53  ;;  %v2581_v36 = vmax.f32 %v2495_v29, 0.0  ;;  %v2582_v42 = vmax.f32 %v2518_v31, 0.0 }
 0x4c9   : > { %3190 = vmatpush.msra.mxu2 %v2833_v57  ;;  %3213 = vmatpush.msra.mxu3 %v2849_v33 }
 0x4ca   : > { %3148 = vmatpush.msra.mxu0 %v2797_v44  ;;  %3171 = vmatpush.msra.mxu1 %v2813_v15 }
 0x4cb   : > { %3191 = vmatpush.msra.mxu2 %v2832_v21  ;;  %3214 = vmatpush.msra.mxu3 %v2848_v19 }
 0x4cc   : > { %3110 = vmatmul.f32.gmra.mxu2 %v2595_v39  ;;  %3133 = vmatmul.f32.gmra.mxu3 %v2596_v13  ;;  %v2540_v35 = vpop.f32.mrf.mxu2  ;;  %v2563_v37 = vpop.f32.mrf.mxu3 }
 0x4cd   : > { %3149 = vmatpush.msra.mxu0 %v2796_v22  ;;  %3172 = vmatpush.msra.mxu1 %v2812_v25  ;;  %v2497_v40 = vpop.f32.mrf.mxu0  ;;  %v2520_v56 = vpop.f32.mrf.mxu1  ;;  %v2541_v61 = vadd.f32 %v2540_v35, %v2183_v43  ;;  %v2564_v27 = vadd.f32 %v2563_v37, %v2184_v47 }
 0x4ce   : > { %3192 = vmatpush.msra.mxu2 %v2831_v20  ;;  %3215 = vmatpush.msra.mxu3 %v2847_v2  ;;  %v2498_v12 = vadd.f32 %v2497_v40, %v2181_v51  ;;  %v2521_v7 = vadd.f32 %v2520_v56, %v2182_v16 }
 0x4cf   : > { %3150 = vmatpush.msra.mxu0 %v2795_v24  ;;  %3173 = vmatpush.msra.mxu1 %v2811_v26  ;;  %v2583_v32 = vmax.f32 %v2541_v61, 0.0  ;;  %v2584_v3 = vmax.f32 %v2564_v27, 0.0 }
 0x4d0   : > { %3193 = vmatpush.msra.mxu2 %v2830_v5  ;;  %3216 = vmatpush.msra.mxu3 %v2846_v34  ;;  %v2597_v59 = vmax.f32 %v2498_v12, 0.0  ;;  %v2598_v63 = vmax.f32 %v2521_v7, 0.0 }
 0x4d1   : > { %3151 = vmatpush.msra.mxu0 %v2794_v17  ;;  %3174 = vmatpush.msra.mxu1 %v2810_v28 }
 0x4d2   : > { %3194 = vmatpush.msra.mxu2 %v2829_v49  ;;  %3217 = vmatpush.msra.mxu3 %v2845_v52 }
 0x4d3   : > { %3152 = vmatpush.msra.mxu0 %v2793_v38  ;;  %3175 = vmatpush.msra.mxu1 %v2809_v54 }
 0x4d4   : > { %3195 = vmatpush.msra.mxu2 %v2828_v30  ;;  %3218 = vmatpush.msra.mxu3 %v2844_v4  ;;  %v2543_v46 = vpop.f32.mrf.mxu2  ;;  %v2566_v45 = vpop.f32.mrf.mxu3 }
 0x4d5   : > { %3153 = vmatmul.f32.vlgmr.msra.gmra.mxu0 %v2581_v36  ;;  %3176 = vmatmul.f32.vlgmr.msra.gmra.mxu1 %v2582_v42  ;;  %v2544_v6 = vadd.f32 %v2543_v46, %v2183_v43  ;;  %v2567_v11 = vadd.f32 %v2566_v45, %v2184_v47 }
 0x4d6   : > { %3196 = vmatpush.msra.mxu2 %v2827_v50  ;;  %3219 = vmatpush.msra.mxu3 %v2843_v1 }
 0x4d7   : > { %v2599_v41 = vmax.f32 %v2544_v6, 0.0  ;;  %v2600_v10 = vmax.f32 %v2567_v11, 0.0 }
 0x4d8   : > { %3197 = vmatpush.msra.mxu2 %v2826_v48  ;;  %3220 = vmatpush.msra.mxu3 %v2842_v0 }
 0x4da   : > { %3198 = vmatpush.msra.mxu2 %v2825_v58  ;;  %3221 = vmatpush.msra.mxu3 %v2841_v62 }
 0x4db   : > { %3199 = vmatmul.f32.vlgmr.msra.gmra.mxu2 %v2583_v32  ;;  %3222 = vmatmul.f32.vlgmr.msra.gmra.mxu3 %v2584_v3 }
 0x4dd   : > { %3156 = vmatmul.f32.gmra.mxu0 %v2597_v59  ;;  %3179 = vmatmul.f32.gmra.mxu1 %v2598_v63 }
 0x4e3   : > { %3202 = vmatmul.f32.gmra.mxu2 %v2599_v41  ;;  %3225 = vmatmul.f32.gmra.mxu3 %v2600_v10 }
 0x504   : > { %v2878_v53 = vpop.f32.mrf.mxu0  ;;  %v2901_v57 = vpop.f32.mrf.mxu1 }
 0x505   : > { %v2879_v18 = vadd.f32 %v3581_v8, %v2878_v53 }
 0x507   : > { %v2902_v16 = vadd.f32 %v2901_v57, %v2879_v18 }
 0x512   : > { %v2924_v44 = vpop.f32.mrf.mxu2  ;;  %v2947_v15 = vpop.f32.mrf.mxu3 }
 0x513   : > { %v2925_v2 = vadd.f32 %v2924_v44, %v2902_v16 }
 0x515   : > { %v2948_v26 = vadd.f32 %v2947_v15, %v2925_v2 }
 0x518   : > { %v2881_v33 = vpop.f32.mrf.mxu0  ;;  %v2904_v39 = vpop.f32.mrf.mxu1 }
 0x519   : > { %v2882_v24 = vadd.f32 %v3581_v8, %v2881_v33 }
 0x51b   : > { %v2905_v29 = vadd.f32 %v2904_v39, %v2882_v24 }
 0x522   : > { %v2970_v13 = vpop.f32.mrf.mxu0  ;;  %v2993_v51 = vpop.f32.mrf.mxu1 }
 0x523   : > { %v2971_v5 = vadd.f32 %v2970_v13, %v2948_v26 }
 0x525   : > { %v2927_v21 = vpop.f32.mrf.mxu2  ;;  %v2950_v19 = vpop.f32.mrf.mxu3  ;;  %v2994_v37 = vadd.f32 %v2993_v51, %v2971_v5 }
 0x526   : > { %v2928_v34 = vadd.f32 %v2927_v21, %v2905_v29 }
 0x528   : > { %v2951_v49 = vadd.f32 %v2950_v19, %v2928_v34 }
 0x52d   : > { %v2973_v22 = vpop.f32.mrf.mxu0  ;;  %v2996_v31 = vpop.f32.mrf.mxu1 }
 0x52e   : > { %v2974_v43 = vadd.f32 %v2973_v22, %v2951_v49 }
 0x52f   : > { %v3016_v25 = vpop.f32.mrf.mxu2  ;;  %v3039_v20 = vpop.f32.mrf.mxu3 }
 0x530   : > { %v3017_v52 = vadd.f32 %v3016_v25, %v2994_v37  ;;  %v2997_v54 = vadd.f32 %v2996_v31, %v2974_v43  ;;  %v3582_v43 = vld [vmem:[%s6243_s17] ss:$0 sm:$0xff] }
 0x532   : > { %v3040_v38 = vadd.f32 %v3039_v20, %v3017_v52 }
 0x538   : > { %v3062_v17 = vpop.f32.mrf.mxu0  ;;  %v3085_v47 = vpop.f32.mrf.mxu1 }
 0x539   : > { %v3063_v4 = vadd.f32 %v3062_v17, %v3040_v38 }
 0x53b   : > { %v3019_v28 = vpop.f32.mrf.mxu2  ;;  %v3042_v35 = vpop.f32.mrf.mxu3  ;;  %v3086_v56 = vadd.f32 %v3085_v47, %v3063_v4 }
 0x53c   : > { %v3020_v40 = vadd.f32 %v3019_v28, %v2997_v54  ;;  %v3583_v54 = vld [vmem:[%s6244_s18] ss:$0 sm:$0xff] }
 0x53e   : > { %v3043_v61 = vadd.f32 %v3042_v35, %v3020_v40 }
 0x542   : > { %v3065_v36 = vpop.f32.mrf.mxu0  ;;  %v3088_v27 = vpop.f32.mrf.mxu1 }
 0x543   : > { %v3066_v12 = vadd.f32 %v3065_v36, %v3043_v61 }
 0x545   : > { %v3108_v42 = vpop.f32.mrf.mxu2  ;;  %v3131_v30 = vpop.f32.mrf.mxu3  ;;  %v3089_v32 = vadd.f32 %v3088_v27, %v3066_v12 }
 0x546   : > { %v3109_v50 = vadd.f32 %v3108_v42, %v3086_v56 }
 0x548   : > { %v3132_v0 = vadd.f32 %v3131_v30, %v3109_v50 }
 0x54f   : > { %v3111_v7 = vpop.f32.mrf.mxu2  ;;  %v3134_v48 = vpop.f32.mrf.mxu3 }
 0x550   : > { %v3112_v62 = vadd.f32 %v3111_v7, %v3089_v32 }
 0x552   : > { %v3154_v1 = vpop.f32.mrf.mxu0  ;;  %v3177_v58 = vpop.f32.mrf.mxu1  ;;  %v3135_v6 = vadd.f32 %v3134_v48, %v3112_v62 }
 0x553   : > { %v3155_v3 = vadd.f32 %v3154_v1, %v3132_v0 }
 0x555   : > { %v3178_v46 = vadd.f32 %v3177_v58, %v3155_v3 }
 0x55a   : > { %v3157_v45 = vpop.f32.mrf.mxu0  ;;  %v3180_v57 = vpop.f32.mrf.mxu1 }
 0x55b   : > { %v3158_v41 = vadd.f32 %v3157_v45, %v3135_v6 }
 0x55d   : > { %v3181_v33 = vadd.f32 %v3180_v57, %v3158_v41 }
 0x55e   : > { %v3200_v59 = vpop.f32.mrf.mxu2  ;;  %v3223_v63 = vpop.f32.mrf.mxu3 }
 0x55f   : > { %v3201_v11 = vadd.f32 %v3200_v59, %v3178_v46 }
 0x561   : > { %v3224_v10 = vadd.f32 %v3223_v63, %v3201_v11 }
 0x563   : > { %v3229_v53 = vadd.f32 %v3224_v10, %v4921_v55 }
 0x565   : > { %3233 = vadd.xlane.f32.xlu2 %v3229_v53 }
 0x566   : > { %v3203_v44 = vpop.f32.mrf.mxu2  ;;  %v3226_v39 = vpop.f32.mrf.mxu3 }
 0x567   : > { %v3204_v15 = vadd.f32 %v3203_v44, %v3181_v33 }
 0x569   : > { %v3227_v13 = vadd.f32 %v3226_v39, %v3204_v15 }
 0x56b   : > { %v3230_v21 = vadd.f32 %v3227_v13, %v5060_v23 }
 0x56d   : > { %3235 = vadd.xlane.f32.xlu2 %v3230_v21 }
 0x5d8   : > { %v3234_v19 = vpop.xlane.xlu2 %3233 }
 0x5d9   : > { %v3237_v8 = vmul.f32 0.025, %v3234_v19 }
 0x5db   : > { %v3239_v18 = vsub.f32 %v3229_v53, %v3237_v8 }
 0x5dd   : > { %v3241_v51 = vmul.f32 %v4527_v60, %v3239_v18 }
 0x5df   : > { %v3243_v16 = vmul.f32 %v3241_v51, %v3241_v51 }
 0x5e0   : > { %v3236_v22 = vpop.xlane.xlu2 %3235 }
 0x5e1   : > { %v3238_v25 = vmul.f32 0.025, %v3236_v22  ;;  %3245 = vadd.xlane.f32.xlu0 %v3243_v16 }
 0x5e3   : > { %v3240_v55 = vsub.f32 %v3230_v21, %v3238_v25 }
 0x5e5   : > { %v3242_v20 = vmul.f32 %v4527_v60, %v3240_v55 }
 0x5e7   : > { %v3244_v2 = vmul.f32 %v3242_v20, %v3242_v20 }
 0x5e9   : > { %3247 = vadd.xlane.f32.xlu1 %v3244_v2 }
 0x654   : > { %v3246_v24 = vpop.xlane.xlu0 %3245 }
 0x655   : > { %v3249_v26 = vmul.f32 0.025, %v3246_v24 }
 0x657   : > { %v3251_v29 = vadd.f32 1e-05, %v3249_v26 }
 0x659   : > { %3652 = vrsqrt.f32 %v3251_v29  ;;  %vm3259_vm3 = vweird.f32 %v3251_v29 }
 0x65c   : > { %v3248_v23 = vpop.xlane.xlu1 %3247 }
 0x65d   : > { %v3250_v31 = vmul.f32 0.025, %v3248_v23 }
 0x65f   : > { %v3653_v5 = vpop.eup %3652  ;;  %v3252_v34 = vadd.f32 1e-05, %v3250_v31 }
 0x660   : > { %v3254_v17 = vmul.f32 %v3653_v5, %v3251_v29  ;;  %vm3260_vm1 = vweird.f32 %v3653_v5 }
 0x661   : > { %3654 = vrsqrt.f32 %v3252_v34  ;;  %vm3261_vm4 = vmor %vm3259_vm3, %vm3260_vm1  ;;  %vm3269_vm6 = vweird.f32 %v3252_v34 }
 0x662   : > { %v3255_v28 = vmul.f32 %v3653_v5, %v3254_v17 }
 0x664   : > { %v3256_v35 = vmul.f32 0.5, %v3255_v28 }
 0x666   : > { %v3257_v37 = vsub.f32 1.5, %v3256_v35 }
 0x667   : > { %v3655_v49 = vpop.eup %3654 }
 0x668   : > { %v3258_v52 = vmul.f32 %v3653_v5, %v3257_v37  ;;  %v3264_v60 = vmul.f32 %v3655_v49, %v3252_v34  ;;  %vm3270_vm5 = vweird.f32 %v3655_v49 }
 0x669   : > { %vm3271_vm8 = vmor %vm3269_vm6, %vm3270_vm5 }
 0x66a   : > { %v3262_v47 = vsel %vm3261_vm4, %v3653_v5, %v3258_v52  ;;  %v3265_v38 = vmul.f32 %v3655_v49, %v3264_v60 }
 0x66b   : > { %v3273_v36 = vmul.f32 %v3262_v47, %v3241_v51 }
 0x66c   : > { %v3266_v42 = vmul.f32 0.5, %v3265_v38 }
 0x66d   : > { %v3278_v30 = vmul.f32 %v3582_v43, %v3273_v36 }
 0x66e   : > { %v3267_v4 = vsub.f32 1.5, %v3266_v42 }
 0x66f   : > { %v3283_v40 = vadd.f32 %v3583_v54, %v3278_v30 }
 0x670   : > { %v3268_v56 = vmul.f32 %v3655_v49, %v3267_v4 }
 0x671   : > { %vm3285_vm7 = vcmp.gt.f32.partialorder %v3283_v40, 0.0  ;;  %v3287_v61 = vmul.f32 0.1, %v3283_v40 }
 0x672   : > { %v3272_v27 = vsel %vm3271_vm8, %v3655_v49, %v3268_v56 }
 0x673   : > { %v3274_v50 = vmul.f32 %v3272_v27, %v3242_v20  ;;  %v3289_v1 = vsel %vm3285_vm7, %v3283_v40, %v3287_v61 }
 0x674   : > { %v3291_v7 = vmul.f32 %v3289_v1, %v4119_v9 }
 0x675   : > { %v3279_v12 = vmul.f32 %v3582_v43, %v3274_v50 }
 0x676   : > { %v3295_v32 = vrot.slane %v3291_v7, 2  ;;  %v3296_v3 = vrot.slane %v3291_v7, 4  ;;  %v3297_v62 = vrot.slane %v3291_v7, 6  ;;  %v3307_v11 = vsel %vm1319_vm2, %v3291_v7, -inf }
 0x677   : > { %v3284_v48 = vadd.f32 %v3583_v54, %v3279_v12 }
 0x678   : > { %v3308_v41 = vsel %vm1319_vm2, %v3295_v32, -inf  ;;  %v3309_v9 = vsel %vm1319_vm2, %v3296_v3, -inf  ;;  %v3310_v10 = vsel %vm1319_vm2, %v3297_v62, -inf }
 0x679   : > { %vm3286_vm9 = vcmp.gt.f32.partialorder %v3284_v48, 0.0  ;;  %v3288_v0 = vmul.f32 0.1, %v3284_v48 }
 0x67b   : > { %v3290_v58 = vsel %vm3286_vm9, %v3284_v48, %v3288_v0 }
 0x67c   : > { %v3292_v46 = vmul.f32 %v3290_v58, %v4124_v14 }
 0x67e   : > { %v3298_v45 = vrot.slane %v3292_v46, 2  ;;  %v3299_v59 = vrot.slane %v3292_v46, 4  ;;  %v3300_v63 = vrot.slane %v3292_v46, 6  ;;  %v3311_v6 = vsel %vm1319_vm2, %v3292_v46, -inf }
 0x67f   : > { %v3312_v14 = vmax.f32 %v3307_v11, %v3311_v6 }
 0x680   : > { %v3313_v53 = vsel %vm1319_vm2, %v3298_v45, -inf  ;;  %v3315_v57 = vsel %vm1319_vm2, %v3299_v59, -inf  ;;  %v3317_v33 = vsel %vm1319_vm2, %v3300_v63, -inf }
 0x681   : > { %v3314_v44 = vmax.f32 %v3308_v41, %v3313_v53  ;;  %v3316_v15 = vmax.f32 %v3309_v9, %v3315_v57  ;;  %v3318_v39 = vmax.f32 %v3310_v10, %v3317_v33 }
 0x683   : > { %v3319_v13 = vmax.f32 %v3312_v14, %v3314_v44  ;;  %v3320_v21 = vmax.f32 %v3316_v15, %v3318_v39 }
 0x685   : > { %v3321_v19 = vmax.f32 %v3319_v13, %v3320_v21 }
 0x687   : > { %3326 = vst [vmem:[%s653_s0] sm:$0x3] %v3321_v19 }
 0x688 PF: > { %s30_s23 = sadd.s32 1, %s3678_s23   ;;  %s6265_s1 = sld [smem:[#allocation2_spill]] }
 0x689   : > { %p27_p5 = scmp.ge.s32.totalorder %s30_s23, 5   ;;  %s6266_s22 = sld [smem:[#allocation3_spill]] }
 0x68b   :  { %29 = sbr.rel (!%p27_p5) target bundleno = 6 (0x6), region = 161 }

</bundles_post_ra>
